<compile_context>
chip_gen: v7x
topology: tpu7x:2x2x1
jax: 0.10.0
libtpu: 0.0.40
codegen_flags: <defaults>
</compile_context>

<pallas_src>
import functools

import jax
import jax.numpy as jnp
from jax.experimental import pallas as pl
from jax.experimental.pallas import tpu as pltpu

LANE = 128     # TPU lane width  (last dim tile)
SUBLANE = 8    # TPU sublane width (second-to-last dim tile)


def _round_up(x, m):
    return (x + m - 1) // m * m


def _cdiv(a, b):
    return -(-a // b)


def _num_tensorcores():
    """Best-effort TensorCore count of the local device (1 if unknown)."""
    try:
        d = jax.devices()[0]
        return int(getattr(d, "num_cores", 0) or 1)
    except Exception:
        return 1


def _vmem_capacity_bytes():
    """Per-core VMEM capacity; conservative 64 MiB (v7x) fallback."""
    try:
        return int(pltpu.get_tpu_info().vmem_capacity_bytes)
    except Exception:
        return 64 << 20


# Probed once, eagerly and OUTSIDE any jit trace (see lstm_model wrapper):
# kwargs that single-buffer the resident weight BlockSpecs.
_WEIGHT_SPEC_KW = None


def _resolve_weight_spec_kwargs():
    global _WEIGHT_SPEC_KW
    if _WEIGHT_SPEC_KW is not None:
        return _WEIGHT_SPEC_KW
    try:
        kw = {"pipeline_mode": pl.Buffered(1)}

        def _probe_kernel(x_ref, o_ref):
            o_ref[...] = x_ref[...] + 1.0

        probe = pl.pallas_call(
            _probe_kernel,
            out_shape=jax.ShapeDtypeStruct((8, 128), jnp.float32),
            grid=(2,),
            in_specs=[pl.BlockSpec((8, 128), lambda i: (0, 0), **kw)],
            out_specs=pl.BlockSpec((8, 128), lambda i: (0, 0)),
        )
        jax.block_until_ready(probe(jnp.zeros((8, 128), jnp.float32)))
        _WEIGHT_SPEC_KW = kw
    except Exception:
        _WEIGHT_SPEC_KW = {}
    return _WEIGHT_SPEC_KW


def _layer_vmem_bytes(Tc, Bc, Dp, Hp, itemsize, weight_bufs):
    """Estimate of the kernel's resident VMEM for one LSTM layer."""
    x_chunk = 2 * Tc * Bc * Dp * itemsize            # double-buffered input slab
    y_chunk = 2 * Tc * Bc * Hp * itemsize            # double-buffered output slab
    weights = weight_bufs * (Dp + Hp) * 4 * Hp * itemsize
    bias = 2 * 4 * Hp * 4                             # f32 folded bias (default buffering)
    xg = Tc * Bc * 4 * Hp * itemsize                  # hoisted projection scratch
    state = Bc * Hp * (itemsize + 4)                  # h (compute dtype) + c (f32)
    return x_chunk + y_chunk + weights + bias + xg + state


# ----------------------------------------------------------------------------
# Pallas kernel: one LSTM layer, grid = (batch_chunks, time_chunks).
#   x_ref      : (Tc, Bc, Dp)        input slab for this (batch, time) chunk
#   w_ih_ref   : (Dp, 4*Hp)          input->gate weights (gate-blocked, lane-aligned)
#   w_hh_ref   : (Hp, 4*Hp)          hidden->gate weights
#   b_ref      : (1, 4*Hp) f32       folded bias (b_ih + b_hh)
#   y_ref      : (Tc, Bc, Hp)        hidden-state outputs for this chunk
#   h_scr      : (Bc, Hp) compute    recurrent h carry (persists across time chunks)
#   c_scr      : (Bc, Hp) f32        recurrent c carry
#   xg_scr     : (Tc*Bc, 4*Hp) compute  hoisted input-projection slab
# ----------------------------------------------------------------------------
def _make_lstm_chunk_kernel(Tc, Bc, Dp, Hp, sub, out_dtype):
    sub = max(1, min(sub, Tc))
    starts = list(range(0, Tc, sub))

    def kernel(x_ref, w_ih_ref, w_hh_ref, b_ref, y_ref, h_scr, c_scr, xg_scr):
        # NOTE: correctness of the h/c carry requires the time axis to be the
        # innermost, sequentially-iterated ("arbitrary") grid axis.
        @pl.when(pl.program_id(1) == 0)
        def _():
            h_scr[...] = jnp.zeros_like(h_scr)
            c_scr[...] = jnp.zeros_like(c_scr)

        w_ih = w_ih_ref[...]
        w_hh = w_hh_ref[...]
        bias = b_ref[...]                      # f32 (1, 4*Hp)

        def project(s0):
            """Hoisted x @ W_ih + bias for time steps [s0, s0+slen)."""
            slen = min(sub, Tc - s0)
            x_blk = x_ref[s0:s0 + slen].reshape(slen * Bc, Dp)
            acc = jnp.dot(x_blk, w_ih, preferred_element_type=jnp.float32) + bias
            xg_scr[s0 * Bc:(s0 + slen) * Bc, :] = acc.astype(xg_scr.dtype)

        project(starts[0])                     # prime the first sub-block

        h = h_scr[...]                         # compute dtype
        c = c_scr[...]                         # f32

        for gi, s0 in enumerate(starts):
            # Kick the NEXT sub-block's projection so its MXU work can hide
            # under this sub-block's (EUP/VPU-bound) recurrence.  Writes and
            # reads of xg_scr never alias (disjoint static row ranges).
            if gi + 1 < len(starts):
                project(starts[gi + 1])

            for t in range(s0, min(s0 + sub, Tc)):     # fully unrolled recurrence
                row = t * Bc
                gates = (xg_scr[row:row + Bc, :].astype(jnp.float32)
                         + jnp.dot(h, w_hh, preferred_element_type=jnp.float32))
                # Hp % 128 == 0, so each gate slice is a whole-lane-block view.
                i = jax.nn.sigmoid(gates[:, 0 * Hp:1 * Hp])
                f = jax.nn.sigmoid(gates[:, 1 * Hp:2 * Hp])
                g = jnp.tanh(gates[:, 2 * Hp:3 * Hp])
                o = jax.nn.sigmoid(gates[:, 3 * Hp:4 * Hp])

                c = f * c + i * g                       # f32 carry (no drift)
                h = (o * jnp.tanh(c)).astype(out_dtype)  # compute-dtype h
                y_ref[t] = h                             # lane-dense (Bc, Hp) store

        h_scr[...] = h
        c_scr[...] = c

    return kernel


def lstm_layer(x_tm, w_ih, w_hh, b, *, time_chunk=64, sub_block=8):
    """One LSTM layer.

    x_tm: (T, Bp, Dp) time-major, Bp % 8 == 0, Dp % 128 == 0.
    Returns all hidden states (Tp, Bp, Hp) with Tp >= T (time zero-padded up to
    a multiple of the chunk size); entries at t >= T are never read by callers.
    """
    T, Bp, Dp = x_tm.shape
    Hp = w_hh.shape[0]
    assert Bp % SUBLANE == 0 and Dp % LANE == 0 and Hp % LANE == 0

    compute_dtype = x_tm.dtype
    itemsize = jnp.dtype(compute_dtype).itemsize

    wkw = _WEIGHT_SPEC_KW or {}            # resolved by lstm_model (outside jit)
    weight_bufs = 1 if wkw else 2

    # Batch split only pays on a multi-TensorCore chip with a healthy per-core
    # batch; on 1-TC chips it is pure overhead.
    n_cores = _num_tensorcores()
    nb = 2 if (n_cores >= 2 and Bp % (2 * SUBLANE) == 0 and Bp // 2 >= 64) else 1
    Bc = Bp // nb

    # Pick the time-chunk size: as large as time_chunk allows, shrunk so the
    # resident VMEM fits the budget; Tc = ceil(T / nchunks) keeps time padding
    # below nchunks steps even for awkward T.
    cap = _vmem_capacity_bytes()
    budget = int(cap * 0.8)
    nchunks = max(1, _cdiv(T, time_chunk))
    while True:
        Tc = _cdiv(T, nchunks)
        need = _layer_vmem_bytes(Tc, Bc, Dp, Hp, itemsize, weight_bufs)
        if need <= budget or Tc <= sub_block or nchunks >= T:
            break
        nchunks += 1
    Tp = Tc * nchunks
    if Tp > T:
        # Zero-pad the time axis; padded steps are computed but never consumed.
        x_tm = jnp.pad(x_tm, ((0, Tp - T), (0, 0), (0, 0)))

    vmem_limit = int(min(max(cap - (4 << 20), 32 << 20),
                         max(need + (8 << 20), 32 << 20)))

    kernel = _make_lstm_chunk_kernel(Tc, Bc, Dp, Hp, sub_block, compute_dtype)

    return pl.pallas_call(
        kernel,
        out_shape=jax.ShapeDtypeStruct((Tp, Bp, Hp), compute_dtype),
        grid_spec=pltpu.PrefetchScalarGridSpec(
            num_scalar_prefetch=0,
            grid=(nb, Tp // Tc),          # time MUST stay the innermost axis
            in_specs=[
                pl.BlockSpec((Tc, Bc, Dp), lambda bi, ti: (ti, bi, 0)),     # x chunk
                pl.BlockSpec((Dp, 4 * Hp), lambda bi, ti: (0, 0), **wkw),   # W_ih (resident)
                pl.BlockSpec((Hp, 4 * Hp), lambda bi, ti: (0, 0), **wkw),   # W_hh (resident)
                pl.BlockSpec((1, 4 * Hp), lambda bi, ti: (0, 0)),           # bias (f32, tiny)
            ],
            out_specs=pl.BlockSpec((Tc, Bc, Hp), lambda bi, ti: (ti, bi, 0)),
            scratch_shapes=[
                pltpu.VMEM((Bc, Hp), compute_dtype),           # h carry (compute dtype)
                pltpu.VMEM((Bc, Hp), jnp.float32),             # c carry (f32)
                pltpu.VMEM((Tc * Bc, 4 * Hp), compute_dtype),  # hoisted x @ W_ih slab
            ],
        ),
        compiler_params=pltpu.CompilerParams(
            dimension_semantics=("parallel", "arbitrary"),
            vmem_limit_bytes=vmem_limit,
        ),
    )(x_tm, w_ih, w_hh, b)


# ----------------------------------------------------------------------------
# Final fully-connected head (padded to lane-dense output columns).
# ----------------------------------------------------------------------------
def _fc_kernel(h_ref, w_ref, b_ref, o_ref):
    o_ref[...] = (
        jnp.dot(h_ref[...], w_ref[...], preferred_element_type=jnp.float32)
        + b_ref[...].astype(jnp.float32)
    )


def fc(h_out, w_fc, b_fc):
    """h_out: (N, Hp); w_fc: (Hp, Cp); b_fc: (1, Cp). Returns f32 (N, Cp)."""
    N, Hp = h_out.shape
    Cp = w_fc.shape[1]
    return pl.pallas_call(
        _fc_kernel,
        out_shape=jax.ShapeDtypeStruct((N, Cp), jnp.float32),
        in_specs=[
            pl.BlockSpec((N, Hp), lambda: (0, 0)),
            pl.BlockSpec((Hp, Cp), lambda: (0, 0)),
            pl.BlockSpec((1, Cp), lambda: (0, 0)),
        ],
        out_specs=pl.BlockSpec((N, Cp), lambda: (0, 0)),
    )(h_out, w_fc, b_fc)


# ----------------------------------------------------------------------------
# Full model forward (mirrors the PyTorch LSTM module's forward()).
# ----------------------------------------------------------------------------
@functools.partial(jax.jit, static_argnames=("num_layers", "num_classes"))
def _lstm_model_impl(x, params, *, num_layers, num_classes):
    B, T, D = x.shape
    w_ih0 = params["layers"][0][0]
    dtype = w_ih0.dtype
    Dp = w_ih0.shape[0]
    Bp = _round_up(max(B, SUBLANE), SUBLANE)

    # Time-major + pad batch to a sublane multiple and features to a lane
    # multiple.  Padded rows/cols are zero and padded weight rows are zero, so
    # real outputs are exact and padded hidden columns stay identically zero.
    x_tm = jnp.transpose(x.astype(dtype), (1, 0, 2))
    x_tm = jnp.pad(x_tm, ((0, 0), (0, Bp - B), (0, Dp - D)))

    h_finals = []
    inp = x_tm
    for l in range(num_layers):
        w_ih, w_hh, b = params["layers"][l]
        h_seq = lstm_layer(inp, w_ih, w_hh, b)     # (Tp, Bp, Hp), Tp >= T
        h_finals.append(h_seq[T - 1, :B, :])       # final hidden at the real last step
        inp = h_seq                                # padded tail steps are never read

    # h_out.view(-1, hidden) in PyTorch == layer-major stack of final h states.
    h_out = jnp.concatenate(h_finals, axis=0)      # (num_layers * B, Hp)
    logits = fc(h_out, params["w_fc"], params["b_fc"])
    return logits[:, :num_classes]


def lstm_model(x, params, *, num_layers, num_classes):
    """x: (B, T, input_size) batch_first, like the PyTorch module."""
    _resolve_weight_spec_kwargs()   # eager probe; must happen OUTSIDE the jit trace
    return _lstm_model_impl(x, params, num_layers=num_layers, num_classes=num_classes)


# ----------------------------------------------------------------------------
# Parameters: PyTorch-layout init + conversion to the padded kernel layout.
# ----------------------------------------------------------------------------
def init_raw_params(key, input_size, hidden_size, num_layers, num_classes):
    """PyTorch-layout parameters (same shapes as nn.LSTM / nn.Linear)."""
    scale = 1.0 / jnp.sqrt(hidden_size)
    lstm = []
    for l in range(num_layers):
        d_in = input_size if l == 0 else hidden_size
        key, k1, k2, k3, k4 = jax.random.split(key, 5)
        w_ih = jax.random.uniform(k1, (4 * hidden_size, d_in), jnp.float32, -scale, scale)
        w_hh = jax.random.uniform(k2, (4 * hidden_size, hidden_size), jnp.float32, -scale, scale)
        b_ih = jax.random.uniform(k3, (4 * hidden_size,), jnp.float32, -scale, scale)
        b_hh = jax.random.uniform(k4, (4 * hidden_size,), jnp.float32, -scale, scale)
        lstm.append((w_ih, w_hh, b_ih, b_hh))
    key, k5, k6 = jax.random.split(key, 3)
    fc_w = jax.random.uniform(k5, (num_classes, hidden_size), jnp.float32, -scale, scale)
    fc_b = jax.random.uniform(k6, (num_classes,), jnp.float32, -scale, scale)
    return {"lstm": lstm, "fc_w": fc_w, "fc_b": fc_b}


def prepare_params(raw, compute_dtype=jnp.float32):
    """Pad / transpose / cast PyTorch-layout params into the kernel layout:
    gate-blocked, 128-lane-aligned, weights transposed to (in, 4*Hp).
    The folded bias stays in f32 (tiny, added once per chunk)."""
    layers = []
    for (w_ih, w_hh, b_ih, b_hh) in raw["lstm"]:
        d_in = w_ih.shape[1]
        H = w_hh.shape[1]
        Hp = _round_up(H, LANE)
        Dp = _round_up(d_in, LANE)
        w_ih_t = w_ih.T            # (d_in, 4H), gate order i|f|g|o
        w_hh_t = w_hh.T            # (H,    4H)
        bias = b_ih + b_hh         # biases fold together
        w_ih_p = jnp.zeros((Dp, 4 * Hp), jnp.float32)
        w_hh_p = jnp.zeros((Hp, 4 * Hp), jnp.float32)
        b_p = jnp.zeros((1, 4 * Hp), jnp.float32)
        for g in range(4):
            w_ih_p = w_ih_p.at[:d_in, g * Hp:g * Hp + H].set(w_ih_t[:, g * H:(g + 1) * H])
            w_hh_p = w_hh_p.at[:H, g * Hp:g * Hp + H].set(w_hh_t[:, g * H:(g + 1) * H])
            b_p = b_p.at[0, g * Hp:g * Hp + H].set(bias[g * H:(g + 1) * H])
        layers.append((w_ih_p.astype(compute_dtype),
                       w_hh_p.astype(compute_dtype),
                       b_p))                       # bias stays f32

    C, H = raw["fc_w"].shape
    Hp = _round_up(H, LANE)
    Cp = _round_up(C, LANE)
    w_fc = jnp.zeros((Hp, Cp), jnp.float32).at[:H, :C].set(raw["fc_w"].T)
    b_fc = jnp.zeros((1, Cp), jnp.float32).at[0, :C].set(raw["fc_b"])
    return {"layers": layers,
            "w_fc": w_fc.astype(compute_dtype),
            "b_fc": b_fc.astype(compute_dtype)}


# ----------------------------------------------------------------------------
# Pure-JAX reference (for correctness check).
# ----------------------------------------------------------------------------
def lstm_model_ref(x, raw):
    B, T, D = x.shape
    inp = jnp.transpose(x, (1, 0, 2))
    h_finals = []
    for (w_ih, w_hh, b_ih, b_hh) in raw["lstm"]:
        H = w_hh.shape[1]
        h = jnp.zeros((B, H), jnp.float32)
        c = jnp.zeros((B, H), jnp.float32)
        outs = []
        for t in range(T):
            gates = inp[t] @ w_ih.T + h @ w_hh.T + b_ih + b_hh
            i = jax.nn.sigmoid(gates[:, 0 * H:1 * H])
            f = jax.nn.sigmoid(gates[:, 1 * H:2 * H])
            g = jnp.tanh(gates[:, 2 * H:3 * H])
            o = jax.nn.sigmoid(gates[:, 3 * H:4 * H])
            c = f * c + i * g
            h = o * jnp.tanh(c)
            outs.append(h)
        inp = jnp.stack(outs, axis=0)
        h_finals.append(h)
    h_out = jnp.concatenate(h_finals, axis=0)
    return h_out @ raw["fc_w"].T + raw["fc_b"]


if __name__ == "__main__":
    master_key = jax.random.PRNGKey(0)

    def run_case(key, batch, seq_len, input_size, hidden_size, num_layers, num_classes,
                 atol):
        kx, kp = jax.random.split(key)
        x = jax.random.normal(kx, (batch, seq_len, input_size), jnp.float32)
        raw = init_raw_params(kp, input_size, hidden_size, num_layers, num_classes)
        ref = lstm_model_ref(x, raw)
        params32 = prepare_params(raw, jnp.float32)
        out32 = jax.block_until_ready(
            lstm_model(x, params32, num_layers=num_layers, num_classes=num_classes))
        assert out32.shape == (num_layers * batch, num_classes), out32.shape
        err = float(jnp.max(jnp.abs(out32 - ref)))
        assert err < atol, err
        return x, raw, ref

    # Small canonical shapes consistent with the module's forward().
    k1, k2 = jax.random.split(master_key)
    x, raw, ref = run_case(k1, batch=2, seq_len=8, input_size=16,
                           hidden_size=32, num_layers=2, num_classes=4, atol=1e-4)

    # bf16 weights/activations (f32 accumulation + f32 c carry): loose check.
    params16 = prepare_params(raw, jnp.bfloat16)
    out16 = jax.block_until_ready(
        lstm_model(x, params16, num_layers=2, num_classes=4))
    assert out16.shape == (2 * 2, 4), out16.shape
    assert jnp.allclose(out16, ref, atol=1e-1, rtol=1e-1), \
        jnp.max(jnp.abs(out16 - ref))

    # Awkward shapes: non-multiple batch/feature/hidden and a sequence length
    # that does not divide the time chunk (exercises padding + tail sub-block).
    run_case(k2, batch=3, seq_len=33, input_size=20,
             hidden_size=40, num_layers=2, num_classes=5, atol=5e-4)

    print("KERNEL_OK")
</pallas_src>

<mosaic_0001>
module attributes {stable_mosaic.version = 11 : i64} {
  func.func @_probe_kernel(%arg0: i32, %arg1: memref<8x128xf32, #tpu.memory_space<vmem>>, %arg2: memref<8x128xf32, #tpu.memory_space<vmem>>) attributes {dimension_semantics = [#tpu.dimension_semantics<arbitrary>], iteration_bounds = array<i64: 2>, scalar_prefetch = 0 : i64, scratch_operands = 0 : i64, tpu.core_type = #tpu.core_type<tc>, window_params = [{pipeline_mode = #tpu.pipeline_mode<synchronous>, transform_indices = @transform_0, window_bounds = array<i64: 8, 128>}, {pipeline_mode = #tpu.pipeline_mode<synchronous>, transform_indices = @transform_1, window_bounds = array<i64: 8, 128>}]} {
    %c0 = arith.constant 0 : index
    %c0_0 = arith.constant 0 : index
    %0 = vector.load %arg1[%c0, %c0_0] : memref<8x128xf32, #tpu.memory_space<vmem>>, vector<8x128xf32>
    %cst = arith.constant 1.000000e+00 : f32
    %1 = vector.broadcast %cst : f32 to vector<8x128xf32>
    %2 = arith.addf %0, %1 : vector<8x128xf32>
    %c0_1 = arith.constant 0 : index
    %c0_2 = arith.constant 0 : index
    %3 = vector.load %arg2[%c0_1, %c0_2] : memref<8x128xf32, #tpu.memory_space<vmem>>, vector<8x128xf32>
    tpu.vector_store %arg2[%c0_1, %c0_2], %2 {strides = array<i32>} : memref<8x128xf32, #tpu.memory_space<vmem>>, vector<8x128xf32>,
    return
  }
  func.func @transform_0(%arg0: i32) -> (i32, i32) {
    %c0_i32 = arith.constant 0 : i32
    %c0_i32_0 = arith.constant 0 : i32
    %c0_i32_1 = arith.constant 0 : i32
    return %c0_i32, %c0_i32_0 : i32, i32
  }
  func.func @transform_1(%arg0: i32) -> (i32, i32) {
    %c0_i32 = arith.constant 0 : i32
    %c0_i32_0 = arith.constant 0 : i32
    %c0_i32_1 = arith.constant 0 : i32
    return %c0_i32, %c0_i32_0 : i32, i32
  }
}

module attributes {stable_mosaic.version = 11 : i64} {
  func.func @kernel(%arg0: i32, %arg1: i32, %arg2: memref<8x8x128xf32, #tpu.memory_space<vmem>>, %arg3: memref<128x512xf32, #tpu.memory_space<vmem>>, %arg4: memref<128x512xf32, #tpu.memory_space<vmem>>, %arg5: memref<1x512xf32, #tpu.memory_space<vmem>>, %arg6: memref<8x8x128xf32, #tpu.memory_space<vmem>>, %arg7: memref<8x128xf32, #tpu.memory_space<vmem>>, %arg8: memref<8x128xf32, #tpu.memory_space<vmem>>, %arg9: memref<64x512xf32, #tpu.memory_space<vmem>>) attributes {dimension_semantics = [#tpu.dimension_semantics<parallel>, #tpu.dimension_semantics<arbitrary>], iteration_bounds = array<i64: 1, 1>, scalar_prefetch = 0 : i64, scratch_operands = 3 : i64, tpu.core_type = #tpu.core_type<tc>, window_params = [{transform_indices = @transform_0, window_bounds = array<i64: 8, 8, 128>}, {pipeline_mode = #tpu.pipeline_mode<synchronous>, transform_indices = @transform_1, window_bounds = array<i64: 128, 512>}, {pipeline_mode = #tpu.pipeline_mode<synchronous>, transform_indices = @transform_2, window_bounds = array<i64: 128, 512>}, {pipeline_mode = #tpu.pipeline_mode<synchronous>, transform_indices = @transform_3, window_bounds = array<i64: 1, 512>}, {transform_indices = @transform_4, window_bounds = array<i64: 8, 8, 128>}]} {
    %c0_i32 = arith.constant 0 : i32
    %0 = arith.cmpi eq, %arg1, %c0_i32 : i32
    %1 = arith.extui %0 : i1 to i32
    %c0_i32_0 = arith.constant 0 : i32
    %2 = arith.cmpi ne, %1, %c0_i32_0 : i32
    scf.if %2 {
      %cst_77 = arith.constant 0.000000e+00 : f32
      %264 = vector.broadcast %cst_77 : f32 to vector<8x128xf32>
      %c0_78 = arith.constant 0 : index
      %c0_79 = arith.constant 0 : index
      %265 = vector.load %arg7[%c0_78, %c0_79] : memref<8x128xf32, #tpu.memory_space<vmem>>, vector<8x128xf32>
      tpu.vector_store %arg7[%c0_78, %c0_79], %264 {strides = array<i32>} : memref<8x128xf32, #tpu.memory_space<vmem>>, vector<8x128xf32>,
      %cst_80 = arith.constant 0.000000e+00 : f32
      %266 = vector.broadcast %cst_80 : f32 to vector<8x128xf32>
      %c0_81 = arith.constant 0 : index
      %c0_82 = arith.constant 0 : index
      %267 = vector.load %arg8[%c0_81, %c0_82] : memref<8x128xf32, #tpu.memory_space<vmem>>, vector<8x128xf32>
      tpu.vector_store %arg8[%c0_81, %c0_82], %266 {strides = array<i32>} : memref<8x128xf32, #tpu.memory_space<vmem>>, vector<8x128xf32>,
    } else {
    }
    %c0 = arith.constant 0 : index
    %c0_1 = arith.constant 0 : index
    %3 = vector.load %arg3[%c0, %c0_1] : memref<128x512xf32, #tpu.memory_space<vmem>>, vector<128x512xf32>
    %c0_2 = arith.constant 0 : index
    %c0_3 = arith.constant 0 : index
    %4 = vector.load %arg4[%c0_2, %c0_3] : memref<128x512xf32, #tpu.memory_space<vmem>>, vector<128x512xf32>
    %c0_4 = arith.constant 0 : index
    %c0_5 = arith.constant 0 : index
    %5 = vector.load %arg5[%c0_4, %c0_5] : memref<1x512xf32, #tpu.memory_space<vmem>>, vector<1x512xf32>
    %c0_6 = arith.constant 0 : index
    %c0_7 = arith.constant 0 : index
    %c0_8 = arith.constant 0 : index
    %6 = vector.load %arg2[%c0_6, %c0_7, %c0_8] : memref<8x8x128xf32, #tpu.memory_space<vmem>>, vector<8x8x128xf32>
    %7 = vector.shape_cast %6 : vector<8x8x128xf32> to vector<64x128xf32>
    %cst = arith.constant dense<0.000000e+00> : vector<64x512xf32>
    %8 = tpu.matmul %7, %3, %cst {dimension_numbers = #tpu.dot_dimension_numbers<[1], [0], [0], [1], [0, 0, 1, 1], [], []>} : vector<64x128xf32>, vector<128x512xf32>, vector<64x512xf32> -> vector<64x512xf32>
    %9 = vector.broadcast %5 : vector<1x512xf32> to vector<64x512xf32>
    %10 = arith.addf %8, %9 : vector<64x512xf32>
    %c0_9 = arith.constant 0 : index
    %c0_10 = arith.constant 0 : index
    %11 = vector.load %arg9[%c0_9, %c0_10] : memref<64x512xf32, #tpu.memory_space<vmem>>, vector<64x512xf32>
    tpu.vector_store %arg9[%c0_9, %c0_10], %10 {strides = array<i32>} : memref<64x512xf32, #tpu.memory_space<vmem>>, vector<64x512xf32>,
    %c0_11 = arith.constant 0 : index
    %c0_12 = arith.constant 0 : index
    %12 = vector.load %arg7[%c0_11, %c0_12] : memref<8x128xf32, #tpu.memory_space<vmem>>, vector<8x128xf32>
    %c0_13 = arith.constant 0 : index
    %c0_14 = arith.constant 0 : index
    %13 = vector.load %arg8[%c0_13, %c0_14] : memref<8x128xf32, #tpu.memory_space<vmem>>, vector<8x128xf32>
    %c0_15 = arith.constant 0 : index
    %c0_16 = arith.constant 0 : index
    %14 = vector.load %arg9[%c0_15, %c0_16] : memref<64x512xf32, #tpu.memory_space<vmem>>, vector<8x512xf32>
    %cst_17 = arith.constant dense<0.000000e+00> : vector<8x512xf32>
    %15 = tpu.matmul %12, %4, %cst_17 {dimension_numbers = #tpu.dot_dimension_numbers<[1], [0], [0], [1], [0, 0, 1, 1], [], []>} : vector<8x128xf32>, vector<128x512xf32>, vector<8x512xf32> -> vector<8x512xf32>
    %16 = arith.addf %14, %15 : vector<8x512xf32>
    %17 = vector.extract_strided_slice %16 {offsets = [0, 0], sizes = [8, 128], strides = [1, 1]} : vector<8x512xf32> to vector<8x128xf32>
    %18 = arith.negf %17 : vector<8x128xf32>
    %19 = math.exp %18 : vector<8x128xf32>
    %cst_18 = arith.constant 1.000000e+00 : f32
    %20 = vector.broadcast %cst_18 : f32 to vector<8x128xf32>
    %21 = arith.addf %20, %19 : vector<8x128xf32>
    %22 = arith.divf %20, %21 : vector<8x128xf32>
    %23 = vector.extract_strided_slice %16 {offsets = [0, 128], sizes = [8, 128], strides = [1, 1]} : vector<8x512xf32> to vector<8x128xf32>
    %24 = arith.negf %23 : vector<8x128xf32>
    %25 = math.exp %24 : vector<8x128xf32>
    %cst_19 = arith.constant 1.000000e+00 : f32
    %26 = vector.broadcast %cst_19 : f32 to vector<8x128xf32>
    %27 = arith.addf %26, %25 : vector<8x128xf32>
    %28 = arith.divf %26, %27 : vector<8x128xf32>
    %29 = vector.extract_strided_slice %16 {offsets = [0, 256], sizes = [8, 128], strides = [1, 1]} : vector<8x512xf32> to vector<8x128xf32>
    %30 = math.tanh %29 : vector<8x128xf32>
    %31 = vector.extract_strided_slice %16 {offsets = [0, 384], sizes = [8, 128], strides = [1, 1]} : vector<8x512xf32> to vector<8x128xf32>
    %32 = arith.negf %31 : vector<8x128xf32>
    %33 = math.exp %32 : vector<8x128xf32>
    %cst_20 = arith.constant 1.000000e+00 : f32
    %34 = vector.broadcast %cst_20 : f32 to vector<8x128xf32>
    %35 = arith.addf %34, %33 : vector<8x128xf32>
    %36 = arith.divf %34, %35 : vector<8x128xf32>
    %37 = arith.mulf %28, %13 : vector<8x128xf32>
    %38 = arith.mulf %22, %30 : vector<8x128xf32>
    %39 = arith.addf %37, %38 : vector<8x128xf32>
    %40 = math.tanh %39 : vector<8x128xf32>
    %41 = arith.mulf %36, %40 : vector<8x128xf32>
    %c0_21 = arith.constant 0 : index
    %c0_22 = arith.constant 0 : index
    %c0_23 = arith.constant 0 : index
    %42 = vector.load %arg6[%c0_21, %c0_22, %c0_23] : memref<8x8x128xf32, #tpu.memory_space<vmem>>, vector<1x8x128xf32>
    %43 = vector.shape_cast %42 : vector<1x8x128xf32> to vector<8x128xf32>
    %44 = vector.shape_cast %41 : vector<8x128xf32> to vector<1x8x128xf32>
    tpu.vector_store %arg6[%c0_21, %c0_22, %c0_23], %44 {strides = array<i32>} : memref<8x8x128xf32, #tpu.memory_space<vmem>>, vector<1x8x128xf32>,
    %c8 = arith.constant 8 : index
    %c0_24 = arith.constant 0 : index
    %45 = vector.load %arg9[%c8, %c0_24] : memref<64x512xf32, #tpu.memory_space<vmem>>, vector<8x512xf32>
    %cst_25 = arith.constant dense<0.000000e+00> : vector<8x512xf32>
    %46 = tpu.matmul %41, %4, %cst_25 {dimension_numbers = #tpu.dot_dimension_numbers<[1], [0], [0], [1], [0, 0, 1, 1], [], []>} : vector<8x128xf32>, vector<128x512xf32>, vector<8x512xf32> -> vector<8x512xf32>
    %47 = arith.addf %45, %46 : vector<8x512xf32>
    %48 = vector.extract_strided_slice %47 {offsets = [0, 0], sizes = [8, 128], strides = [1, 1]} : vector<8x512xf32> to vector<8x128xf32>
    %49 = arith.negf %48 : vector<8x128xf32>
    %50 = math.exp %49 : vector<8x128xf32>
    %cst_26 = arith.constant 1.000000e+00 : f32
    %51 = vector.broadcast %cst_26 : f32 to vector<8x128xf32>
    %52 = arith.addf %51, %50 : vector<8x128xf32>
    %53 = arith.divf %51, %52 : vector<8x128xf32>
    %54 = vector.extract_strided_slice %47 {offsets = [0, 128], sizes = [8, 128], strides = [1, 1]} : vector<8x512xf32> to vector<8x128xf32>
    %55 = arith.negf %54 : vector<8x128xf32>
    %56 = math.exp %55 : vector<8x128xf32>
    %cst_27 = arith.constant 1.000000e+00 : f32
    %57 = vector.broadcast %cst_27 : f32 to vector<8x128xf32>
    %58 = arith.addf %57, %56 : vector<8x128xf32>
    %59 = arith.divf %57, %58 : vector<8x128xf32>
    %60 = vector.extract_strided_slice %47 {offsets = [0, 256], sizes = [8, 128], strides = [1, 1]} : vector<8x512xf32> to vector<8x128xf32>
    %61 = math.tanh %60 : vector<8x128xf32>
    %62 = vector.extract_strided_slice %47 {offsets = [0, 384], sizes = [8, 128], strides = [1, 1]} : vector<8x512xf32> to vector<8x128xf32>
    %63 = arith.negf %62 : vector<8x128xf32>
    %64 = math.exp %63 : vector<8x128xf32>
    %cst_28 = arith.constant 1.000000e+00 : f32
    %65 = vector.broadcast %cst_28 : f32 to vector<8x128xf32>
    %66 = arith.addf %65, %64 : vector<8x128xf32>
    %67 = arith.divf %65, %66 : vector<8x128xf32>
    %68 = arith.mulf %59, %39 : vector<8x128xf32>
    %69 = arith.mulf %53, %61 : vector<8x128xf32>
    %70 = arith.addf %68, %69 : vector<8x128xf32>
    %71 = math.tanh %70 : vector<8x128xf32>
    %72 = arith.mulf %67, %71 : vector<8x128xf32>
    %c1 = arith.constant 1 : index
    %c0_29 = arith.constant 0 : index
    %c0_30 = arith.constant 0 : index
    %73 = vector.load %arg6[%c1, %c0_29, %c0_30] : memref<8x8x128xf32, #tpu.memory_space<vmem>>, vector<1x8x128xf32>
    %74 = vector.shape_cast %73 : vector<1x8x128xf32> to vector<8x128xf32>
    %75 = vector.shape_cast %72 : vector<8x128xf32> to vector<1x8x128xf32>
    tpu.vector_store %arg6[%c1, %c0_29, %c0_30], %75 {strides = array<i32>} : memref<8x8x128xf32, #tpu.memory_space<vmem>>, vector<1x8x128xf32>,
    %c16 = arith.constant 16 : index
    %c0_31 = arith.constant 0 : index
    %76 = vector.load %arg9[%c16, %c0_31] : memref<64x512xf32, #tpu.memory_space<vmem>>, vector<8x512xf32>
    %cst_32 = arith.constant dense<0.000000e+00> : vector<8x512xf32>
    %77 = tpu.matmul %72, %4, %cst_32 {dimension_numbers = #tpu.dot_dimension_numbers<[1], [0], [0], [1], [0, 0, 1, 1], [], []>} : vector<8x128xf32>, vector<128x512xf32>, vector<8x512xf32> -> vector<8x512xf32>
    %78 = arith.addf %76, %77 : vector<8x512xf32>
    %79 = vector.extract_strided_slice %78 {offsets = [0, 0], sizes = [8, 128], strides = [1, 1]} : vector<8x512xf32> to vector<8x128xf32>
    %80 = arith.negf %79 : vector<8x128xf32>
    %81 = math.exp %80 : vector<8x128xf32>
    %cst_33 = arith.constant 1.000000e+00 : f32
    %82 = vector.broadcast %cst_33 : f32 to vector<8x128xf32>
    %83 = arith.addf %82, %81 : vector<8x128xf32>
    %84 = arith.divf %82, %83 : vector<8x128xf32>
    %85 = vector.extract_strided_slice %78 {offsets = [0, 128], sizes = [8, 128], strides = [1, 1]} : vector<8x512xf32> to vector<8x128xf32>
    %86 = arith.negf %85 : vector<8x128xf32>
    %87 = math.exp %86 : vector<8x128xf32>
    %cst_34 = arith.constant 1.000000e+00 : f32
    %88 = vector.broadcast %cst_34 : f32 to vector<8x128xf32>
    %89 = arith.addf %88, %87 : vector<8x128xf32>
    %90 = arith.divf %88, %89 : vector<8x128xf32>
    %91 = vector.extract_strided_slice %78 {offsets = [0, 256], sizes = [8, 128], strides = [1, 1]} : vector<8x512xf32> to vector<8x128xf32>
    %92 = math.tanh %91 : vector<8x128xf32>
    %93 = vector.extract_strided_slice %78 {offsets = [0, 384], sizes = [8, 128], strides = [1, 1]} : vector<8x512xf32> to vector<8x128xf32>
    %94 = arith.negf %93 : vector<8x128xf32>
    %95 = math.exp %94 : vector<8x128xf32>
    %cst_35 = arith.constant 1.000000e+00 : f32
    %96 = vector.broadcast %cst_35 : f32 to vector<8x128xf32>
    %97 = arith.addf %96, %95 : vector<8x128xf32>
    %98 = arith.divf %96, %97 : vector<8x128xf32>
    %99 = arith.mulf %90, %70 : vector<8x128xf32>
    %100 = arith.mulf %84, %92 : vector<8x128xf32>
    %101 = arith.addf %99, %100 : vector<8x128xf32>
    %102 = math.tanh %101 : vector<8x128xf32>
    %103 = arith.mulf %98, %102 : vector<8x128xf32>
    %c2 = arith.constant 2 : index
    %c0_36 = arith.constant 0 : index
    %c0_37 = arith.constant 0 : index
    %104 = vector.load %arg6[%c2, %c0_36, %c0_37] : memref<8x8x128xf32, #tpu.memory_space<vmem>>, vector<1x8x128xf32>
    %105 = vector.shape_cast %104 : vector<1x8x128xf32> to vector<8x128xf32>
    %106 = vector.shape_cast %103 : vector<8x128xf32> to vector<1x8x128xf32>
    tpu.vector_store %arg6[%c2, %c0_36, %c0_37], %106 {strides = array<i32>} : memref<8x8x128xf32, #tpu.memory_space<vmem>>, vector<1x8x128xf32>,
    %c24 = arith.constant 24 : index
    %c0_38 = arith.constant 0 : index
    %107 = vector.load %arg9[%c24, %c0_38] : memref<64x512xf32, #tpu.memory_space<vmem>>, vector<8x512xf32>
    %cst_39 = arith.constant dense<0.000000e+00> : vector<8x512xf32>
    %108 = tpu.matmul %103, %4, %cst_39 {dimension_numbers = #tpu.dot_dimension_numbers<[1], [0], [0], [1], [0, 0, 1, 1], [], []>} : vector<8x128xf32>, vector<128x512xf32>, vector<8x512xf32> -> vector<8x512xf32>
    %109 = arith.addf %107, %108 : vector<8x512xf32>
    %110 = vector.extract_strided_slice %109 {offsets = [0, 0], sizes = [8, 128], strides = [1, 1]} : vector<8x512xf32> to vector<8x128xf32>
    %111 = arith.negf %110 : vector<8x128xf32>
    %112 = math.exp %111 : vector<8x128xf32>
    %cst_40 = arith.constant 1.000000e+00 : f32
    %113 = vector.broadcast %cst_40 : f32 to vector<8x128xf32>
    %114 = arith.addf %113, %112 : vector<8x128xf32>
    %115 = arith.divf %113, %114 : vector<8x128xf32>
    %116 = vector.extract_strided_slice %109 {offsets = [0, 128], sizes = [8, 128], strides = [1, 1]} : vector<8x512xf32> to vector<8x128xf32>
    %117 = arith.negf %116 : vector<8x128xf32>
    %118 = math.exp %117 : vector<8x128xf32>
    %cst_41 = arith.constant 1.000000e+00 : f32
    %119 = vector.broadcast %cst_41 : f32 to vector<8x128xf32>
    %120 = arith.addf %119, %118 : vector<8x128xf32>
    %121 = arith.divf %119, %120 : vector<8x128xf32>
    %122 = vector.extract_strided_slice %109 {offsets = [0, 256], sizes = [8, 128], strides = [1, 1]} : vector<8x512xf32> to vector<8x128xf32>
    %123 = math.tanh %122 : vector<8x128xf32>
    %124 = vector.extract_strided_slice %109 {offsets = [0, 384], sizes = [8, 128], strides = [1, 1]} : vector<8x512xf32> to vector<8x128xf32>
    %125 = arith.negf %124 : vector<8x128xf32>
    %126 = math.exp %125 : vector<8x128xf32>
    %cst_42 = arith.constant 1.000000e+00 : f32
    %127 = vector.broadcast %cst_42 : f32 to vector<8x128xf32>
    %128 = arith.addf %127, %126 : vector<8x128xf32>
    %129 = arith.divf %127, %128 : vector<8x128xf32>
    %130 = arith.mulf %121, %101 : vector<8x128xf32>
    %131 = arith.mulf %115, %123 : vector<8x128xf32>
    %132 = arith.addf %130, %131 : vector<8x128xf32>
    %133 = math.tanh %132 : vector<8x128xf32>
    %134 = arith.mulf %129, %133 : vector<8x128xf32>
    %c3 = arith.constant 3 : index
    %c0_43 = arith.constant 0 : index
    %c0_44 = arith.constant 0 : index
    %135 = vector.load %arg6[%c3, %c0_43, %c0_44] : memref<8x8x128xf32, #tpu.memory_space<vmem>>, vector<1x8x128xf32>
    %136 = vector.shape_cast %135 : vector<1x8x128xf32> to vector<8x128xf32>
    %137 = vector.shape_cast %134 : vector<8x128xf32> to vector<1x8x128xf32>
    tpu.vector_store %arg6[%c3, %c0_43, %c0_44], %137 {strides = array<i32>} : memref<8x8x128xf32, #tpu.memory_space<vmem>>, vector<1x8x128xf32>,
    %c32 = arith.constant 32 : index
    %c0_45 = arith.constant 0 : index
    %138 = vector.load %arg9[%c32, %c0_45] : memref<64x512xf32, #tpu.memory_space<vmem>>, vector<8x512xf32>
    %cst_46 = arith.constant dense<0.000000e+00> : vector<8x512xf32>
    %139 = tpu.matmul %134, %4, %cst_46 {dimension_numbers = #tpu.dot_dimension_numbers<[1], [0], [0], [1], [0, 0, 1, 1], [], []>} : vector<8x128xf32>, vector<128x512xf32>, vector<8x512xf32> -> vector<8x512xf32>
    %140 = arith.addf %138, %139 : vector<8x512xf32>
    %141 = vector.extract_strided_slice %140 {offsets = [0, 0], sizes = [8, 128], strides = [1, 1]} : vector<8x512xf32> to vector<8x128xf32>
    %142 = arith.negf %141 : vector<8x128xf32>
    %143 = math.exp %142 : vector<8x128xf32>
    %cst_47 = arith.constant 1.000000e+00 : f32
    %144 = vector.broadcast %cst_47 : f32 to vector<8x128xf32>
    %145 = arith.addf %144, %143 : vector<8x128xf32>
    %146 = arith.divf %144, %145 : vector<8x128xf32>
    %147 = vector.extract_strided_slice %140 {offsets = [0, 128], sizes = [8, 128], strides = [1, 1]} : vector<8x512xf32> to vector<8x128xf32>
    %148 = arith.negf %147 : vector<8x128xf32>
    %149 = math.exp %148 : vector<8x128xf32>
    %cst_48 = arith.constant 1.000000e+00 : f32
    %150 = vector.broadcast %cst_48 : f32 to vector<8x128xf32>
    %151 = arith.addf %150, %149 : vector<8x128xf32>
    %152 = arith.divf %150, %151 : vector<8x128xf32>
    %153 = vector.extract_strided_slice %140 {offsets = [0, 256], sizes = [8, 128], strides = [1, 1]} : vector<8x512xf32> to vector<8x128xf32>
    %154 = math.tanh %153 : vector<8x128xf32>
    %155 = vector.extract_strided_slice %140 {offsets = [0, 384], sizes = [8, 128], strides = [1, 1]} : vector<8x512xf32> to vector<8x128xf32>
    %156 = arith.negf %155 : vector<8x128xf32>
    %157 = math.exp %156 : vector<8x128xf32>
    %cst_49 = arith.constant 1.000000e+00 : f32
    %158 = vector.broadcast %cst_49 : f32 to vector<8x128xf32>
    %159 = arith.addf %158, %157 : vector<8x128xf32>
    %160 = arith.divf %158, %159 : vector<8x128xf32>
    %161 = arith.mulf %152, %132 : vector<8x128xf32>
    %162 = arith.mulf %146, %154 : vector<8x128xf32>
    %163 = arith.addf %161, %162 : vector<8x128xf32>
    %164 = math.tanh %163 : vector<8x128xf32>
    %165 = arith.mulf %160, %164 : vector<8x128xf32>
    %c4 = arith.constant 4 : index
    %c0_50 = arith.constant 0 : index
    %c0_51 = arith.constant 0 : index
    %166 = vector.load %arg6[%c4, %c0_50, %c0_51] : memref<8x8x128xf32, #tpu.memory_space<vmem>>, vector<1x8x128xf32>
    %167 = vector.shape_cast %166 : vector<1x8x128xf32> to vector<8x128xf32>
    %168 = vector.shape_cast %165 : vector<8x128xf32> to vector<1x8x128xf32>
    tpu.vector_store %arg6[%c4, %c0_50, %c0_51], %168 {strides = array<i32>} : memref<8x8x128xf32, #tpu.memory_space<vmem>>, vector<1x8x128xf32>,
    %c40 = arith.constant 40 : index
    %c0_52 = arith.constant 0 : index
    %169 = vector.load %arg9[%c40, %c0_52] : memref<64x512xf32, #tpu.memory_space<vmem>>, vector<8x512xf32>
    %cst_53 = arith.constant dense<0.000000e+00> : vector<8x512xf32>
    %170 = tpu.matmul %165, %4, %cst_53 {dimension_numbers = #tpu.dot_dimension_numbers<[1], [0], [0], [1], [0, 0, 1, 1], [], []>} : vector<8x128xf32>, vector<128x512xf32>, vector<8x512xf32> -> vector<8x512xf32>
    %171 = arith.addf %169, %170 : vector<8x512xf32>
    %172 = vector.extract_strided_slice %171 {offsets = [0, 0], sizes = [8, 128], strides = [1, 1]} : vector<8x512xf32> to vector<8x128xf32>
    %173 = arith.negf %172 : vector<8x128xf32>
    %174 = math.exp %173 : vector<8x128xf32>
    %cst_54 = arith.constant 1.000000e+00 : f32
    %175 = vector.broadcast %cst_54 : f32 to vector<8x128xf32>
    %176 = arith.addf %175, %174 : vector<8x128xf32>
    %177 = arith.divf %175, %176 : vector<8x128xf32>
    %178 = vector.extract_strided_slice %171 {offsets = [0, 128], sizes = [8, 128], strides = [1, 1]} : vector<8x512xf32> to vector<8x128xf32>
    %179 = arith.negf %178 : vector<8x128xf32>
    %180 = math.exp %179 : vector<8x128xf32>
    %cst_55 = arith.constant 1.000000e+00 : f32
    %181 = vector.broadcast %cst_55 : f32 to vector<8x128xf32>
    %182 = arith.addf %181, %180 : vector<8x128xf32>
    %183 = arith.divf %181, %182 : vector<8x128xf32>
    %184 = vector.extract_strided_slice %171 {offsets = [0, 256], sizes = [8, 128], strides = [1, 1]} : vector<8x512xf32> to vector<8x128xf32>
    %185 = math.tanh %184 : vector<8x128xf32>
    %186 = vector.extract_strided_slice %171 {offsets = [0, 384], sizes = [8, 128], strides = [1, 1]} : vector<8x512xf32> to vector<8x128xf32>
    %187 = arith.negf %186 : vector<8x128xf32>
    %188 = math.exp %187 : vector<8x128xf32>
    %cst_56 = arith.constant 1.000000e+00 : f32
    %189 = vector.broadcast %cst_56 : f32 to vector<8x128xf32>
    %190 = arith.addf %189, %188 : vector<8x128xf32>
    %191 = arith.divf %189, %190 : vector<8x128xf32>
    %192 = arith.mulf %183, %163 : vector<8x128xf32>
    %193 = arith.mulf %177, %185 : vector<8x128xf32>
    %194 = arith.addf %192, %193 : vector<8x128xf32>
    %195 = math.tanh %194 : vector<8x128xf32>
    %196 = arith.mulf %191, %195 : vector<8x128xf32>
    %c5 = arith.constant 5 : index
    %c0_57 = arith.constant 0 : index
    %c0_58 = arith.constant 0 : index
    %197 = vector.load %arg6[%c5, %c0_57, %c0_58] : memref<8x8x128xf32, #tpu.memory_space<vmem>>, vector<1x8x128xf32>
    %198 = vector.shape_cast %197 : vector<1x8x128xf32> to vector<8x128xf32>
    %199 = vector.shape_cast %196 : vector<8x128xf32> to vector<1x8x128xf32>
    tpu.vector_store %arg6[%c5, %c0_57, %c0_58], %199 {strides = array<i32>} : memref<8x8x128xf32, #tpu.memory_space<vmem>>, vector<1x8x128xf32>,
    %c48 = arith.constant 48 : index
    %c0_59 = arith.constant 0 : index
    %200 = vector.load %arg9[%c48, %c0_59] : memref<64x512xf32, #tpu.memory_space<vmem>>, vector<8x512xf32>
    %cst_60 = arith.constant dense<0.000000e+00> : vector<8x512xf32>
    %201 = tpu.matmul %196, %4, %cst_60 {dimension_numbers = #tpu.dot_dimension_numbers<[1], [0], [0], [1], [0, 0, 1, 1], [], []>} : vector<8x128xf32>, vector<128x512xf32>, vector<8x512xf32> -> vector<8x512xf32>
    %202 = arith.addf %200, %201 : vector<8x512xf32>
    %203 = vector.extract_strided_slice %202 {offsets = [0, 0], sizes = [8, 128], strides = [1, 1]} : vector<8x512xf32> to vector<8x128xf32>
    %204 = arith.negf %203 : vector<8x128xf32>
    %205 = math.exp %204 : vector<8x128xf32>
    %cst_61 = arith.constant 1.000000e+00 : f32
    %206 = vector.broadcast %cst_61 : f32 to vector<8x128xf32>
    %207 = arith.addf %206, %205 : vector<8x128xf32>
    %208 = arith.divf %206, %207 : vector<8x128xf32>
    %209 = vector.extract_strided_slice %202 {offsets = [0, 128], sizes = [8, 128], strides = [1, 1]} : vector<8x512xf32> to vector<8x128xf32>
    %210 = arith.negf %209 : vector<8x128xf32>
    %211 = math.exp %210 : vector<8x128xf32>
    %cst_62 = arith.constant 1.000000e+00 : f32
    %212 = vector.broadcast %cst_62 : f32 to vector<8x128xf32>
    %213 = arith.addf %212, %211 : vector<8x128xf32>
    %214 = arith.divf %212, %213 : vector<8x128xf32>
    %215 = vector.extract_strided_slice %202 {offsets = [0, 256], sizes = [8, 128], strides = [1, 1]} : vector<8x512xf32> to vector<8x128xf32>
    %216 = math.tanh %215 : vector<8x128xf32>
    %217 = vector.extract_strided_slice %202 {offsets = [0, 384], sizes = [8, 128], strides = [1, 1]} : vector<8x512xf32> to vector<8x128xf32>
    %218 = arith.negf %217 : vector<8x128xf32>
    %219 = math.exp %218 : vector<8x128xf32>
    %cst_63 = arith.constant 1.000000e+00 : f32
    %220 = vector.broadcast %cst_63 : f32 to vector<8x128xf32>
    %221 = arith.addf %220, %219 : vector<8x128xf32>
    %222 = arith.divf %220, %221 : vector<8x128xf32>
    %223 = arith.mulf %214, %194 : vector<8x128xf32>
    %224 = arith.mulf %208, %216 : vector<8x128xf32>
    %225 = arith.addf %223, %224 : vector<8x128xf32>
    %226 = math.tanh %225 : vector<8x128xf32>
    %227 = arith.mulf %222, %226 : vector<8x128xf32>
    %c6 = arith.constant 6 : index
    %c0_64 = arith.constant 0 : index
    %c0_65 = arith.constant 0 : index
    %228 = vector.load %arg6[%c6, %c0_64, %c0_65] : memref<8x8x128xf32, #tpu.memory_space<vmem>>, vector<1x8x128xf32>
    %229 = vector.shape_cast %228 : vector<1x8x128xf32> to vector<8x128xf32>
    %230 = vector.shape_cast %227 : vector<8x128xf32> to vector<1x8x128xf32>
    tpu.vector_store %arg6[%c6, %c0_64, %c0_65], %230 {strides = array<i32>} : memref<8x8x128xf32, #tpu.memory_space<vmem>>, vector<1x8x128xf32>,
    %c56 = arith.constant 56 : index
    %c0_66 = arith.constant 0 : index
    %231 = vector.load %arg9[%c56, %c0_66] : memref<64x512xf32, #tpu.memory_space<vmem>>, vector<8x512xf32>
    %cst_67 = arith.constant dense<0.000000e+00> : vector<8x512xf32>
    %232 = tpu.matmul %227, %4, %cst_67 {dimension_numbers = #tpu.dot_dimension_numbers<[1], [0], [0], [1], [0, 0, 1, 1], [], []>} : vector<8x128xf32>, vector<128x512xf32>, vector<8x512xf32> -> vector<8x512xf32>
    %233 = arith.addf %231, %232 : vector<8x512xf32>
    %234 = vector.extract_strided_slice %233 {offsets = [0, 0], sizes = [8, 128], strides = [1, 1]} : vector<8x512xf32> to vector<8x128xf32>
    %235 = arith.negf %234 : vector<8x128xf32>
    %236 = math.exp %235 : vector<8x128xf32>
    %cst_68 = arith.constant 1.000000e+00 : f32
    %237 = vector.broadcast %cst_68 : f32 to vector<8x128xf32>
    %238 = arith.addf %237, %236 : vector<8x128xf32>
    %239 = arith.divf %237, %238 : vector<8x128xf32>
    %240 = vector.extract_strided_slice %233 {offsets = [0, 128], sizes = [8, 128], strides = [1, 1]} : vector<8x512xf32> to vector<8x128xf32>
    %241 = arith.negf %240 : vector<8x128xf32>
    %242 = math.exp %241 : vector<8x128xf32>
    %cst_69 = arith.constant 1.000000e+00 : f32
    %243 = vector.broadcast %cst_69 : f32 to vector<8x128xf32>
    %244 = arith.addf %243, %242 : vector<8x128xf32>
    %245 = arith.divf %243, %244 : vector<8x128xf32>
    %246 = vector.extract_strided_slice %233 {offsets = [0, 256], sizes = [8, 128], strides = [1, 1]} : vector<8x512xf32> to vector<8x128xf32>
    %247 = math.tanh %246 : vector<8x128xf32>
    %248 = vector.extract_strided_slice %233 {offsets = [0, 384], sizes = [8, 128], strides = [1, 1]} : vector<8x512xf32> to vector<8x128xf32>
    %249 = arith.negf %248 : vector<8x128xf32>
    %250 = math.exp %249 : vector<8x128xf32>
    %cst_70 = arith.constant 1.000000e+00 : f32
    %251 = vector.broadcast %cst_70 : f32 to vector<8x128xf32>
    %252 = arith.addf %251, %250 : vector<8x128xf32>
    %253 = arith.divf %251, %252 : vector<8x128xf32>
    %254 = arith.mulf %245, %225 : vector<8x128xf32>
    %255 = arith.mulf %239, %247 : vector<8x128xf32>
    %256 = arith.addf %254, %255 : vector<8x128xf32>
    %257 = math.tanh %256 : vector<8x128xf32>
    %258 = arith.mulf %253, %257 : vector<8x128xf32>
    %c7 = arith.constant 7 : index
    %c0_71 = arith.constant 0 : index
    %c0_72 = arith.constant 0 : index
    %259 = vector.load %arg6[%c7, %c0_71, %c0_72] : memref<8x8x128xf32, #tpu.memory_space<vmem>>, vector<1x8x128xf32>
    %260 = vector.shape_cast %259 : vector<1x8x128xf32> to vector<8x128xf32>
    %261 = vector.shape_cast %258 : vector<8x128xf32> to vector<1x8x128xf32>
    tpu.vector_store %arg6[%c7, %c0_71, %c0_72], %261 {strides = array<i32>} : memref<8x8x128xf32, #tpu.memory_space<vmem>>, vector<1x8x128xf32>,
    %c0_73 = arith.constant 0 : index
    %c0_74 = arith.constant 0 : index
    %262 = vector.load %arg7[%c0_73, %c0_74] : memref<8x128xf32, #tpu.memory_space<vmem>>, vector<8x128xf32>
    tpu.vector_store %arg7[%c0_73, %c0_74], %258 {strides = array<i32>} : memref<8x128xf32, #tpu.memory_space<vmem>>, vector<8x128xf32>,
    %c0_75 = arith.constant 0 : index
    %c0_76 = arith.constant 0 : index
    %263 = vector.load %arg8[%c0_75, %c0_76] : memref<8x128xf32, #tpu.memory_space<vmem>>, vector<8x128xf32>
    tpu.vector_store %arg8[%c0_75, %c0_76], %256 {strides = array<i32>} : memref<8x128xf32, #tpu.memory_space<vmem>>, vector<8x128xf32>,
    return
  }
  func.func @transform_0(%arg0: i32, %arg1: i32) -> (i32, i32, i32) {
    %c0_i32 = arith.constant 0 : i32
    %c0_i32_0 = arith.constant 0 : i32
    return %arg1, %arg0, %c0_i32 : i32, i32, i32
  }
  func.func @transform_1(%arg0: i32, %arg1: i32) -> (i32, i32) {
    %c0_i32 = arith.constant 0 : i32
    %c0_i32_0 = arith.constant 0 : i32
    %c0_i32_1 = arith.constant 0 : i32
    return %c0_i32, %c0_i32_0 : i32, i32
  }
  func.func @transform_2(%arg0: i32, %arg1: i32) -> (i32, i32) {
    %c0_i32 = arith.constant 0 : i32
    %c0_i32_0 = arith.constant 0 : i32
    %c0_i32_1 = arith.constant 0 : i32
    return %c0_i32, %c0_i32_0 : i32, i32
  }
  func.func @transform_3(%arg0: i32, %arg1: i32) -> (i32, i32) {
    %c0_i32 = arith.constant 0 : i32
    %c0_i32_0 = arith.constant 0 : i32
    %c0_i32_1 = arith.constant 0 : i32
    return %c0_i32, %c0_i32_0 : i32, i32
  }
  func.func @transform_4(%arg0: i32, %arg1: i32) -> (i32, i32, i32) {
    %c0_i32 = arith.constant 0 : i32
    %c0_i32_0 = arith.constant 0 : i32
    return %arg1, %arg0, %c0_i32 : i32, i32, i32
  }
}

module attributes {stable_mosaic.version = 11 : i64} {
  func.func @kernel(%arg0: i32, %arg1: i32, %arg2: memref<8x8x128xf32, #tpu.memory_space<vmem>>, %arg3: memref<128x512xf32, #tpu.memory_space<vmem>>, %arg4: memref<128x512xf32, #tpu.memory_space<vmem>>, %arg5: memref<1x512xf32, #tpu.memory_space<vmem>>, %arg6: memref<8x8x128xf32, #tpu.memory_space<vmem>>, %arg7: memref<8x128xf32, #tpu.memory_space<vmem>>, %arg8: memref<8x128xf32, #tpu.memory_space<vmem>>, %arg9: memref<64x512xf32, #tpu.memory_space<vmem>>) attributes {dimension_semantics = [#tpu.dimension_semantics<parallel>, #tpu.dimension_semantics<arbitrary>], iteration_bounds = array<i64: 1, 1>, scalar_prefetch = 0 : i64, scratch_operands = 3 : i64, tpu.core_type = #tpu.core_type<tc>, window_params = [{transform_indices = @transform_0, window_bounds = array<i64: 8, 8, 128>}, {pipeline_mode = #tpu.pipeline_mode<synchronous>, transform_indices = @transform_1, window_bounds = array<i64: 128, 512>}, {pipeline_mode = #tpu.pipeline_mode<synchronous>, transform_indices = @transform_2, window_bounds = array<i64: 128, 512>}, {pipeline_mode = #tpu.pipeline_mode<synchronous>, transform_indices = @transform_3, window_bounds = array<i64: 1, 512>}, {transform_indices = @transform_4, window_bounds = array<i64: 8, 8, 128>}]} {
    %c0_i32 = arith.constant 0 : i32
    %0 = arith.cmpi eq, %arg1, %c0_i32 : i32
    %1 = arith.extui %0 : i1 to i32
    %c0_i32_0 = arith.constant 0 : i32
    %2 = arith.cmpi ne, %1, %c0_i32_0 : i32
    scf.if %2 {
      %cst_77 = arith.constant 0.000000e+00 : f32
      %264 = vector.broadcast %cst_77 : f32 to vector<8x128xf32>
      %c0_78 = arith.constant 0 : index
      %c0_79 = arith.constant 0 : index
      %265 = vector.load %arg7[%c0_78, %c0_79] : memref<8x128xf32, #tpu.memory_space<vmem>>, vector<8x128xf32>
      tpu.vector_store %arg7[%c0_78, %c0_79], %264 {strides = array<i32>} : memref<8x128xf32, #tpu.memory_space<vmem>>, vector<8x128xf32>,
      %cst_80 = arith.constant 0.000000e+00 : f32
      %266 = vector.broadcast %cst_80 : f32 to vector<8x128xf32>
      %c0_81 = arith.constant 0 : index
      %c0_82 = arith.constant 0 : index
      %267 = vector.load %arg8[%c0_81, %c0_82] : memref<8x128xf32, #tpu.memory_space<vmem>>, vector<8x128xf32>
      tpu.vector_store %arg8[%c0_81, %c0_82], %266 {strides = array<i32>} : memref<8x128xf32, #tpu.memory_space<vmem>>, vector<8x128xf32>,
    } else {
    }
    %c0 = arith.constant 0 : index
    %c0_1 = arith.constant 0 : index
    %3 = vector.load %arg3[%c0, %c0_1] : memref<128x512xf32, #tpu.memory_space<vmem>>, vector<128x512xf32>
    %c0_2 = arith.constant 0 : index
    %c0_3 = arith.constant 0 : index
    %4 = vector.load %arg4[%c0_2, %c0_3] : memref<128x512xf32, #tpu.memory_space<vmem>>, vector<128x512xf32>
    %c0_4 = arith.constant 0 : index
    %c0_5 = arith.constant 0 : index
    %5 = vector.load %arg5[%c0_4, %c0_5] : memref<1x512xf32, #tpu.memory_space<vmem>>, vector<1x512xf32>
    %c0_6 = arith.constant 0 : index
    %c0_7 = arith.constant 0 : index
    %c0_8 = arith.constant 0 : index
    %6 = vector.load %arg2[%c0_6, %c0_7, %c0_8] : memref<8x8x128xf32, #tpu.memory_space<vmem>>, vector<8x8x128xf32>
    %7 = vector.shape_cast %6 : vector<8x8x128xf32> to vector<64x128xf32>
    %cst = arith.constant dense<0.000000e+00> : vector<64x512xf32>
    %8 = tpu.matmul %7, %3, %cst {dimension_numbers = #tpu.dot_dimension_numbers<[1], [0], [0], [1], [0, 0, 1, 1], [], []>} : vector<64x128xf32>, vector<128x512xf32>, vector<64x512xf32> -> vector<64x512xf32>
    %9 = vector.broadcast %5 : vector<1x512xf32> to vector<64x512xf32>
    %10 = arith.addf %8, %9 : vector<64x512xf32>
    %c0_9 = arith.constant 0 : index
    %c0_10 = arith.constant 0 : index
    %11 = vector.load %arg9[%c0_9, %c0_10] : memref<64x512xf32, #tpu.memory_space<vmem>>, vector<64x512xf32>
    tpu.vector_store %arg9[%c0_9, %c0_10], %10 {strides = array<i32>} : memref<64x512xf32, #tpu.memory_space<vmem>>, vector<64x512xf32>,
    %c0_11 = arith.constant 0 : index
    %c0_12 = arith.constant 0 : index
    %12 = vector.load %arg7[%c0_11, %c0_12] : memref<8x128xf32, #tpu.memory_space<vmem>>, vector<8x128xf32>
    %c0_13 = arith.constant 0 : index
    %c0_14 = arith.constant 0 : index
    %13 = vector.load %arg8[%c0_13, %c0_14] : memref<8x128xf32, #tpu.memory_space<vmem>>, vector<8x128xf32>
    %c0_15 = arith.constant 0 : index
    %c0_16 = arith.constant 0 : index
    %14 = vector.load %arg9[%c0_15, %c0_16] : memref<64x512xf32, #tpu.memory_space<vmem>>, vector<8x512xf32>
    %cst_17 = arith.constant dense<0.000000e+00> : vector<8x512xf32>
    %15 = tpu.matmul %12, %4, %cst_17 {dimension_numbers = #tpu.dot_dimension_numbers<[1], [0], [0], [1], [0, 0, 1, 1], [], []>} : vector<8x128xf32>, vector<128x512xf32>, vector<8x512xf32> -> vector<8x512xf32>
    %16 = arith.addf %14, %15 : vector<8x512xf32>
    %17 = vector.extract_strided_slice %16 {offsets = [0, 0], sizes = [8, 128], strides = [1, 1]} : vector<8x512xf32> to vector<8x128xf32>
    %18 = arith.negf %17 : vector<8x128xf32>
    %19 = math.exp %18 : vector<8x128xf32>
    %cst_18 = arith.constant 1.000000e+00 : f32
    %20 = vector.broadcast %cst_18 : f32 to vector<8x128xf32>
    %21 = arith.addf %20, %19 : vector<8x128xf32>
    %22 = arith.divf %20, %21 : vector<8x128xf32>
    %23 = vector.extract_strided_slice %16 {offsets = [0, 128], sizes = [8, 128], strides = [1, 1]} : vector<8x512xf32> to vector<8x128xf32>
    %24 = arith.negf %23 : vector<8x128xf32>
    %25 = math.exp %24 : vector<8x128xf32>
    %cst_19 = arith.constant 1.000000e+00 : f32
    %26 = vector.broadcast %cst_19 : f32 to vector<8x128xf32>
    %27 = arith.addf %26, %25 : vector<8x128xf32>
    %28 = arith.divf %26, %27 : vector<8x128xf32>
    %29 = vector.extract_strided_slice %16 {offsets = [0, 256], sizes = [8, 128], strides = [1, 1]} : vector<8x512xf32> to vector<8x128xf32>
    %30 = math.tanh %29 : vector<8x128xf32>
    %31 = vector.extract_strided_slice %16 {offsets = [0, 384], sizes = [8, 128], strides = [1, 1]} : vector<8x512xf32> to vector<8x128xf32>
    %32 = arith.negf %31 : vector<8x128xf32>
    %33 = math.exp %32 : vector<8x128xf32>
    %cst_20 = arith.constant 1.000000e+00 : f32
    %34 = vector.broadcast %cst_20 : f32 to vector<8x128xf32>
    %35 = arith.addf %34, %33 : vector<8x128xf32>
    %36 = arith.divf %34, %35 : vector<8x128xf32>
    %37 = arith.mulf %28, %13 : vector<8x128xf32>
    %38 = arith.mulf %22, %30 : vector<8x128xf32>
    %39 = arith.addf %37, %38 : vector<8x128xf32>
    %40 = math.tanh %39 : vector<8x128xf32>
    %41 = arith.mulf %36, %40 : vector<8x128xf32>
    %c0_21 = arith.constant 0 : index
    %c0_22 = arith.constant 0 : index
    %c0_23 = arith.constant 0 : index
    %42 = vector.load %arg6[%c0_21, %c0_22, %c0_23] : memref<8x8x128xf32, #tpu.memory_space<vmem>>, vector<1x8x128xf32>
    %43 = vector.shape_cast %42 : vector<1x8x128xf32> to vector<8x128xf32>
    %44 = vector.shape_cast %41 : vector<8x128xf32> to vector<1x8x128xf32>
    tpu.vector_store %arg6[%c0_21, %c0_22, %c0_23], %44 {strides = array<i32>} : memref<8x8x128xf32, #tpu.memory_space<vmem>>, vector<1x8x128xf32>,
    %c8 = arith.constant 8 : index
    %c0_24 = arith.constant 0 : index
    %45 = vector.load %arg9[%c8, %c0_24] : memref<64x512xf32, #tpu.memory_space<vmem>>, vector<8x512xf32>
    %cst_25 = arith.constant dense<0.000000e+00> : vector<8x512xf32>
    %46 = tpu.matmul %41, %4, %cst_25 {dimension_numbers = #tpu.dot_dimension_numbers<[1], [0], [0], [1], [0, 0, 1, 1], [], []>} : vector<8x128xf32>, vector<128x512xf32>, vector<8x512xf32> -> vector<8x512xf32>
    %47 = arith.addf %45, %46 : vector<8x512xf32>
    %48 = vector.extract_strided_slice %47 {offsets = [0, 0], sizes = [8, 128], strides = [1, 1]} : vector<8x512xf32> to vector<8x128xf32>
    %49 = arith.negf %48 : vector<8x128xf32>
    %50 = math.exp %49 : vector<8x128xf32>
    %cst_26 = arith.constant 1.000000e+00 : f32
    %51 = vector.broadcast %cst_26 : f32 to vector<8x128xf32>
    %52 = arith.addf %51, %50 : vector<8x128xf32>
    %53 = arith.divf %51, %52 : vector<8x128xf32>
    %54 = vector.extract_strided_slice %47 {offsets = [0, 128], sizes = [8, 128], strides = [1, 1]} : vector<8x512xf32> to vector<8x128xf32>
    %55 = arith.negf %54 : vector<8x128xf32>
    %56 = math.exp %55 : vector<8x128xf32>
    %cst_27 = arith.constant 1.000000e+00 : f32
    %57 = vector.broadcast %cst_27 : f32 to vector<8x128xf32>
    %58 = arith.addf %57, %56 : vector<8x128xf32>
    %59 = arith.divf %57, %58 : vector<8x128xf32>
    %60 = vector.extract_strided_slice %47 {offsets = [0, 256], sizes = [8, 128], strides = [1, 1]} : vector<8x512xf32> to vector<8x128xf32>
    %61 = math.tanh %60 : vector<8x128xf32>
    %62 = vector.extract_strided_slice %47 {offsets = [0, 384], sizes = [8, 128], strides = [1, 1]} : vector<8x512xf32> to vector<8x128xf32>
    %63 = arith.negf %62 : vector<8x128xf32>
    %64 = math.exp %63 : vector<8x128xf32>
    %cst_28 = arith.constant 1.000000e+00 : f32
    %65 = vector.broadcast %cst_28 : f32 to vector<8x128xf32>
    %66 = arith.addf %65, %64 : vector<8x128xf32>
    %67 = arith.divf %65, %66 : vector<8x128xf32>
    %68 = arith.mulf %59, %39 : vector<8x128xf32>
    %69 = arith.mulf %53, %61 : vector<8x128xf32>
    %70 = arith.addf %68, %69 : vector<8x128xf32>
    %71 = math.tanh %70 : vector<8x128xf32>
    %72 = arith.mulf %67, %71 : vector<8x128xf32>
    %c1 = arith.constant 1 : index
    %c0_29 = arith.constant 0 : index
    %c0_30 = arith.constant 0 : index
    %73 = vector.load %arg6[%c1, %c0_29, %c0_30] : memref<8x8x128xf32, #tpu.memory_space<vmem>>, vector<1x8x128xf32>
    %74 = vector.shape_cast %73 : vector<1x8x128xf32> to vector<8x128xf32>
    %75 = vector.shape_cast %72 : vector<8x128xf32> to vector<1x8x128xf32>
    tpu.vector_store %arg6[%c1, %c0_29, %c0_30], %75 {strides = array<i32>} : memref<8x8x128xf32, #tpu.memory_space<vmem>>, vector<1x8x128xf32>,
    %c16 = arith.constant 16 : index
    %c0_31 = arith.constant 0 : index
    %76 = vector.load %arg9[%c16, %c0_31] : memref<64x512xf32, #tpu.memory_space<vmem>>, vector<8x512xf32>
    %cst_32 = arith.constant dense<0.000000e+00> : vector<8x512xf32>
    %77 = tpu.matmul %72, %4, %cst_32 {dimension_numbers = #tpu.dot_dimension_numbers<[1], [0], [0], [1], [0, 0, 1, 1], [], []>} : vector<8x128xf32>, vector<128x512xf32>, vector<8x512xf32> -> vector<8x512xf32>
    %78 = arith.addf %76, %77 : vector<8x512xf32>
    %79 = vector.extract_strided_slice %78 {offsets = [0, 0], sizes = [8, 128], strides = [1, 1]} : vector<8x512xf32> to vector<8x128xf32>
    %80 = arith.negf %79 : vector<8x128xf32>
    %81 = math.exp %80 : vector<8x128xf32>
    %cst_33 = arith.constant 1.000000e+00 : f32
    %82 = vector.broadcast %cst_33 : f32 to vector<8x128xf32>
    %83 = arith.addf %82, %81 : vector<8x128xf32>
    %84 = arith.divf %82, %83 : vector<8x128xf32>
    %85 = vector.extract_strided_slice %78 {offsets = [0, 128], sizes = [8, 128], strides = [1, 1]} : vector<8x512xf32> to vector<8x128xf32>
    %86 = arith.negf %85 : vector<8x128xf32>
    %87 = math.exp %86 : vector<8x128xf32>
    %cst_34 = arith.constant 1.000000e+00 : f32
    %88 = vector.broadcast %cst_34 : f32 to vector<8x128xf32>
    %89 = arith.addf %88, %87 : vector<8x128xf32>
    %90 = arith.divf %88, %89 : vector<8x128xf32>
    %91 = vector.extract_strided_slice %78 {offsets = [0, 256], sizes = [8, 128], strides = [1, 1]} : vector<8x512xf32> to vector<8x128xf32>
    %92 = math.tanh %91 : vector<8x128xf32>
    %93 = vector.extract_strided_slice %78 {offsets = [0, 384], sizes = [8, 128], strides = [1, 1]} : vector<8x512xf32> to vector<8x128xf32>
    %94 = arith.negf %93 : vector<8x128xf32>
    %95 = math.exp %94 : vector<8x128xf32>
    %cst_35 = arith.constant 1.000000e+00 : f32
    %96 = vector.broadcast %cst_35 : f32 to vector<8x128xf32>
    %97 = arith.addf %96, %95 : vector<8x128xf32>
    %98 = arith.divf %96, %97 : vector<8x128xf32>
    %99 = arith.mulf %90, %70 : vector<8x128xf32>
    %100 = arith.mulf %84, %92 : vector<8x128xf32>
    %101 = arith.addf %99, %100 : vector<8x128xf32>
    %102 = math.tanh %101 : vector<8x128xf32>
    %103 = arith.mulf %98, %102 : vector<8x128xf32>
    %c2 = arith.constant 2 : index
    %c0_36 = arith.constant 0 : index
    %c0_37 = arith.constant 0 : index
    %104 = vector.load %arg6[%c2, %c0_36, %c0_37] : memref<8x8x128xf32, #tpu.memory_space<vmem>>, vector<1x8x128xf32>
    %105 = vector.shape_cast %104 : vector<1x8x128xf32> to vector<8x128xf32>
    %106 = vector.shape_cast %103 : vector<8x128xf32> to vector<1x8x128xf32>
    tpu.vector_store %arg6[%c2, %c0_36, %c0_37], %106 {strides = array<i32>} : memref<8x8x128xf32, #tpu.memory_space<vmem>>, vector<1x8x128xf32>,
    %c24 = arith.constant 24 : index
    %c0_38 = arith.constant 0 : index
    %107 = vector.load %arg9[%c24, %c0_38] : memref<64x512xf32, #tpu.memory_space<vmem>>, vector<8x512xf32>
    %cst_39 = arith.constant dense<0.000000e+00> : vector<8x512xf32>
    %108 = tpu.matmul %103, %4, %cst_39 {dimension_numbers = #tpu.dot_dimension_numbers<[1], [0], [0], [1], [0, 0, 1, 1], [], []>} : vector<8x128xf32>, vector<128x512xf32>, vector<8x512xf32> -> vector<8x512xf32>
    %109 = arith.addf %107, %108 : vector<8x512xf32>
    %110 = vector.extract_strided_slice %109 {offsets = [0, 0], sizes = [8, 128], strides = [1, 1]} : vector<8x512xf32> to vector<8x128xf32>
    %111 = arith.negf %110 : vector<8x128xf32>
    %112 = math.exp %111 : vector<8x128xf32>
    %cst_40 = arith.constant 1.000000e+00 : f32
    %113 = vector.broadcast %cst_40 : f32 to vector<8x128xf32>
    %114 = arith.addf %113, %112 : vector<8x128xf32>
    %115 = arith.divf %113, %114 : vector<8x128xf32>
    %116 = vector.extract_strided_slice %109 {offsets = [0, 128], sizes = [8, 128], strides = [1, 1]} : vector<8x512xf32> to vector<8x128xf32>
    %117 = arith.negf %116 : vector<8x128xf32>
    %118 = math.exp %117 : vector<8x128xf32>
    %cst_41 = arith.constant 1.000000e+00 : f32
    %119 = vector.broadcast %cst_41 : f32 to vector<8x128xf32>
    %120 = arith.addf %119, %118 : vector<8x128xf32>
    %121 = arith.divf %119, %120 : vector<8x128xf32>
    %122 = vector.extract_strided_slice %109 {offsets = [0, 256], sizes = [8, 128], strides = [1, 1]} : vector<8x512xf32> to vector<8x128xf32>
    %123 = math.tanh %122 : vector<8x128xf32>
    %124 = vector.extract_strided_slice %109 {offsets = [0, 384], sizes = [8, 128], strides = [1, 1]} : vector<8x512xf32> to vector<8x128xf32>
    %125 = arith.negf %124 : vector<8x128xf32>
    %126 = math.exp %125 : vector<8x128xf32>
    %cst_42 = arith.constant 1.000000e+00 : f32
    %127 = vector.broadcast %cst_42 : f32 to vector<8x128xf32>
    %128 = arith.addf %127, %126 : vector<8x128xf32>
    %129 = arith.divf %127, %128 : vector<8x128xf32>
    %130 = arith.mulf %121, %101 : vector<8x128xf32>
    %131 = arith.mulf %115, %123 : vector<8x128xf32>
    %132 = arith.addf %130, %131 : vector<8x128xf32>
    %133 = math.tanh %132 : vector<8x128xf32>
    %134 = arith.mulf %129, %133 : vector<8x128xf32>
    %c3 = arith.constant 3 : index
    %c0_43 = arith.constant 0 : index
    %c0_44 = arith.constant 0 : index
    %135 = vector.load %arg6[%c3, %c0_43, %c0_44] : memref<8x8x128xf32, #tpu.memory_space<vmem>>, vector<1x8x128xf32>
    %136 = vector.shape_cast %135 : vector<1x8x128xf32> to vector<8x128xf32>
    %137 = vector.shape_cast %134 : vector<8x128xf32> to vector<1x8x128xf32>
    tpu.vector_store %arg6[%c3, %c0_43, %c0_44], %137 {strides = array<i32>} : memref<8x8x128xf32, #tpu.memory_space<vmem>>, vector<1x8x128xf32>,
    %c32 = arith.constant 32 : index
    %c0_45 = arith.constant 0 : index
    %138 = vector.load %arg9[%c32, %c0_45] : memref<64x512xf32, #tpu.memory_space<vmem>>, vector<8x512xf32>
    %cst_46 = arith.constant dense<0.000000e+00> : vector<8x512xf32>
    %139 = tpu.matmul %134, %4, %cst_46 {dimension_numbers = #tpu.dot_dimension_numbers<[1], [0], [0], [1], [0, 0, 1, 1], [], []>} : vector<8x128xf32>, vector<128x512xf32>, vector<8x512xf32> -> vector<8x512xf32>
    %140 = arith.addf %138, %139 : vector<8x512xf32>
    %141 = vector.extract_strided_slice %140 {offsets = [0, 0], sizes = [8, 128], strides = [1, 1]} : vector<8x512xf32> to vector<8x128xf32>
    %142 = arith.negf %141 : vector<8x128xf32>
    %143 = math.exp %142 : vector<8x128xf32>
    %cst_47 = arith.constant 1.000000e+00 : f32
    %144 = vector.broadcast %cst_47 : f32 to vector<8x128xf32>
    %145 = arith.addf %144, %143 : vector<8x128xf32>
    %146 = arith.divf %144, %145 : vector<8x128xf32>
    %147 = vector.extract_strided_slice %140 {offsets = [0, 128], sizes = [8, 128], strides = [1, 1]} : vector<8x512xf32> to vector<8x128xf32>
    %148 = arith.negf %147 : vector<8x128xf32>
    %149 = math.exp %148 : vector<8x128xf32>
    %cst_48 = arith.constant 1.000000e+00 : f32
    %150 = vector.broadcast %cst_48 : f32 to vector<8x128xf32>
    %151 = arith.addf %150, %149 : vector<8x128xf32>
    %152 = arith.divf %150, %151 : vector<8x128xf32>
    %153 = vector.extract_strided_slice %140 {offsets = [0, 256], sizes = [8, 128], strides = [1, 1]} : vector<8x512xf32> to vector<8x128xf32>
    %154 = math.tanh %153 : vector<8x128xf32>
    %155 = vector.extract_strided_slice %140 {offsets = [0, 384], sizes = [8, 128], strides = [1, 1]} : vector<8x512xf32> to vector<8x128xf32>
    %156 = arith.negf %155 : vector<8x128xf32>
    %157 = math.exp %156 : vector<8x128xf32>
    %cst_49 = arith.constant 1.000000e+00 : f32
    %158 = vector.broadcast %cst_49 : f32 to vector<8x128xf32>
    %159 = arith.addf %158, %157 : vector<8x128xf32>
    %160 = arith.divf %158, %159 : vector<8x128xf32>
    %161 = arith.mulf %152, %132 : vector<8x128xf32>
    %162 = arith.mulf %146, %154 : vector<8x128xf32>
    %163 = arith.addf %161, %162 : vector<8x128xf32>
    %164 = math.tanh %163 : vector<8x128xf32>
    %165 = arith.mulf %160, %164 : vector<8x128xf32>
    %c4 = arith.constant 4 : index
    %c0_50 = arith.constant 0 : index
    %c0_51 = arith.constant 0 : index
    %166 = vector.load %arg6[%c4, %c0_50, %c0_51] : memref<8x8x128xf32, #tpu.memory_space<vmem>>, vector<1x8x128xf32>
    %167 = vector.shape_cast %166 : vector<1x8x128xf32> to vector<8x128xf32>
    %168 = vector.shape_cast %165 : vector<8x128xf32> to vector<1x8x128xf32>
    tpu.vector_store %arg6[%c4, %c0_50, %c0_51], %168 {strides = array<i32>} : memref<8x8x128xf32, #tpu.memory_space<vmem>>, vector<1x8x128xf32>,
    %c40 = arith.constant 40 : index
    %c0_52 = arith.constant 0 : index
    %169 = vector.load %arg9[%c40, %c0_52] : memref<64x512xf32, #tpu.memory_space<vmem>>, vector<8x512xf32>
    %cst_53 = arith.constant dense<0.000000e+00> : vector<8x512xf32>
    %170 = tpu.matmul %165, %4, %cst_53 {dimension_numbers = #tpu.dot_dimension_numbers<[1], [0], [0], [1], [0, 0, 1, 1], [], []>} : vector<8x128xf32>, vector<128x512xf32>, vector<8x512xf32> -> vector<8x512xf32>
    %171 = arith.addf %169, %170 : vector<8x512xf32>
    %172 = vector.extract_strided_slice %171 {offsets = [0, 0], sizes = [8, 128], strides = [1, 1]} : vector<8x512xf32> to vector<8x128xf32>
    %173 = arith.negf %172 : vector<8x128xf32>
    %174 = math.exp %173 : vector<8x128xf32>
    %cst_54 = arith.constant 1.000000e+00 : f32
    %175 = vector.broadcast %cst_54 : f32 to vector<8x128xf32>
    %176 = arith.addf %175, %174 : vector<8x128xf32>
    %177 = arith.divf %175, %176 : vector<8x128xf32>
    %178 = vector.extract_strided_slice %171 {offsets = [0, 128], sizes = [8, 128], strides = [1, 1]} : vector<8x512xf32> to vector<8x128xf32>
    %179 = arith.negf %178 : vector<8x128xf32>
    %180 = math.exp %179 : vector<8x128xf32>
    %cst_55 = arith.constant 1.000000e+00 : f32
    %181 = vector.broadcast %cst_55 : f32 to vector<8x128xf32>
    %182 = arith.addf %181, %180 : vector<8x128xf32>
    %183 = arith.divf %181, %182 : vector<8x128xf32>
    %184 = vector.extract_strided_slice %171 {offsets = [0, 256], sizes = [8, 128], strides = [1, 1]} : vector<8x512xf32> to vector<8x128xf32>
    %185 = math.tanh %184 : vector<8x128xf32>
    %186 = vector.extract_strided_slice %171 {offsets = [0, 384], sizes = [8, 128], strides = [1, 1]} : vector<8x512xf32> to vector<8x128xf32>
    %187 = arith.negf %186 : vector<8x128xf32>
    %188 = math.exp %187 : vector<8x128xf32>
    %cst_56 = arith.constant 1.000000e+00 : f32
    %189 = vector.broadcast %cst_56 : f32 to vector<8x128xf32>
    %190 = arith.addf %189, %188 : vector<8x128xf32>
    %191 = arith.divf %189, %190 : vector<8x128xf32>
    %192 = arith.mulf %183, %163 : vector<8x128xf32>
    %193 = arith.mulf %177, %185 : vector<8x128xf32>
    %194 = arith.addf %192, %193 : vector<8x128xf32>
    %195 = math.tanh %194 : vector<8x128xf32>
    %196 = arith.mulf %191, %195 : vector<8x128xf32>
    %c5 = arith.constant 5 : index
    %c0_57 = arith.constant 0 : index
    %c0_58 = arith.constant 0 : index
    %197 = vector.load %arg6[%c5, %c0_57, %c0_58] : memref<8x8x128xf32, #tpu.memory_space<vmem>>, vector<1x8x128xf32>
    %198 = vector.shape_cast %197 : vector<1x8x128xf32> to vector<8x128xf32>
    %199 = vector.shape_cast %196 : vector<8x128xf32> to vector<1x8x128xf32>
    tpu.vector_store %arg6[%c5, %c0_57, %c0_58], %199 {strides = array<i32>} : memref<8x8x128xf32, #tpu.memory_space<vmem>>, vector<1x8x128xf32>,
    %c48 = arith.constant 48 : index
    %c0_59 = arith.constant 0 : index
    %200 = vector.load %arg9[%c48, %c0_59] : memref<64x512xf32, #tpu.memory_space<vmem>>, vector<8x512xf32>
    %cst_60 = arith.constant dense<0.000000e+00> : vector<8x512xf32>
    %201 = tpu.matmul %196, %4, %cst_60 {dimension_numbers = #tpu.dot_dimension_numbers<[1], [0], [0], [1], [0, 0, 1, 1], [], []>} : vector<8x128xf32>, vector<128x512xf32>, vector<8x512xf32> -> vector<8x512xf32>
    %202 = arith.addf %200, %201 : vector<8x512xf32>
    %203 = vector.extract_strided_slice %202 {offsets = [0, 0], sizes = [8, 128], strides = [1, 1]} : vector<8x512xf32> to vector<8x128xf32>
    %204 = arith.negf %203 : vector<8x128xf32>
    %205 = math.exp %204 : vector<8x128xf32>
    %cst_61 = arith.constant 1.000000e+00 : f32
    %206 = vector.broadcast %cst_61 : f32 to vector<8x128xf32>
    %207 = arith.addf %206, %205 : vector<8x128xf32>
    %208 = arith.divf %206, %207 : vector<8x128xf32>
    %209 = vector.extract_strided_slice %202 {offsets = [0, 128], sizes = [8, 128], strides = [1, 1]} : vector<8x512xf32> to vector<8x128xf32>
    %210 = arith.negf %209 : vector<8x128xf32>
    %211 = math.exp %210 : vector<8x128xf32>
    %cst_62 = arith.constant 1.000000e+00 : f32
    %212 = vector.broadcast %cst_62 : f32 to vector<8x128xf32>
    %213 = arith.addf %212, %211 : vector<8x128xf32>
    %214 = arith.divf %212, %213 : vector<8x128xf32>
    %215 = vector.extract_strided_slice %202 {offsets = [0, 256], sizes = [8, 128], strides = [1, 1]} : vector<8x512xf32> to vector<8x128xf32>
    %216 = math.tanh %215 : vector<8x128xf32>
    %217 = vector.extract_strided_slice %202 {offsets = [0, 384], sizes = [8, 128], strides = [1, 1]} : vector<8x512xf32> to vector<8x128xf32>
    %218 = arith.negf %217 : vector<8x128xf32>
    %219 = math.exp %218 : vector<8x128xf32>
    %cst_63 = arith.constant 1.000000e+00 : f32
    %220 = vector.broadcast %cst_63 : f32 to vector<8x128xf32>
    %221 = arith.addf %220, %219 : vector<8x128xf32>
    %222 = arith.divf %220, %221 : vector<8x128xf32>
    %223 = arith.mulf %214, %194 : vector<8x128xf32>
    %224 = arith.mulf %208, %216 : vector<8x128xf32>
    %225 = arith.addf %223, %224 : vector<8x128xf32>
    %226 = math.tanh %225 : vector<8x128xf32>
    %227 = arith.mulf %222, %226 : vector<8x128xf32>
    %c6 = arith.constant 6 : index
    %c0_64 = arith.constant 0 : index
    %c0_65 = arith.constant 0 : index
    %228 = vector.load %arg6[%c6, %c0_64, %c0_65] : memref<8x8x128xf32, #tpu.memory_space<vmem>>, vector<1x8x128xf32>
    %229 = vector.shape_cast %228 : vector<1x8x128xf32> to vector<8x128xf32>
    %230 = vector.shape_cast %227 : vector<8x128xf32> to vector<1x8x128xf32>
    tpu.vector_store %arg6[%c6, %c0_64, %c0_65], %230 {strides = array<i32>} : memref<8x8x128xf32, #tpu.memory_space<vmem>>, vector<1x8x128xf32>,
    %c56 = arith.constant 56 : index
    %c0_66 = arith.constant 0 : index
    %231 = vector.load %arg9[%c56, %c0_66] : memref<64x512xf32, #tpu.memory_space<vmem>>, vector<8x512xf32>
    %cst_67 = arith.constant dense<0.000000e+00> : vector<8x512xf32>
    %232 = tpu.matmul %227, %4, %cst_67 {dimension_numbers = #tpu.dot_dimension_numbers<[1], [0], [0], [1], [0, 0, 1, 1], [], []>} : vector<8x128xf32>, vector<128x512xf32>, vector<8x512xf32> -> vector<8x512xf32>
    %233 = arith.addf %231, %232 : vector<8x512xf32>
    %234 = vector.extract_strided_slice %233 {offsets = [0, 0], sizes = [8, 128], strides = [1, 1]} : vector<8x512xf32> to vector<8x128xf32>
    %235 = arith.negf %234 : vector<8x128xf32>
    %236 = math.exp %235 : vector<8x128xf32>
    %cst_68 = arith.constant 1.000000e+00 : f32
    %237 = vector.broadcast %cst_68 : f32 to vector<8x128xf32>
    %238 = arith.addf %237, %236 : vector<8x128xf32>
    %239 = arith.divf %237, %238 : vector<8x128xf32>
    %240 = vector.extract_strided_slice %233 {offsets = [0, 128], sizes = [8, 128], strides = [1, 1]} : vector<8x512xf32> to vector<8x128xf32>
    %241 = arith.negf %240 : vector<8x128xf32>
    %242 = math.exp %241 : vector<8x128xf32>
    %cst_69 = arith.constant 1.000000e+00 : f32
    %243 = vector.broadcast %cst_69 : f32 to vector<8x128xf32>
    %244 = arith.addf %243, %242 : vector<8x128xf32>
    %245 = arith.divf %243, %244 : vector<8x128xf32>
    %246 = vector.extract_strided_slice %233 {offsets = [0, 256], sizes = [8, 128], strides = [1, 1]} : vector<8x512xf32> to vector<8x128xf32>
    %247 = math.tanh %246 : vector<8x128xf32>
    %248 = vector.extract_strided_slice %233 {offsets = [0, 384], sizes = [8, 128], strides = [1, 1]} : vector<8x512xf32> to vector<8x128xf32>
    %249 = arith.negf %248 : vector<8x128xf32>
    %250 = math.exp %249 : vector<8x128xf32>
    %cst_70 = arith.constant 1.000000e+00 : f32
    %251 = vector.broadcast %cst_70 : f32 to vector<8x128xf32>
    %252 = arith.addf %251, %250 : vector<8x128xf32>
    %253 = arith.divf %251, %252 : vector<8x128xf32>
    %254 = arith.mulf %245, %225 : vector<8x128xf32>
    %255 = arith.mulf %239, %247 : vector<8x128xf32>
    %256 = arith.addf %254, %255 : vector<8x128xf32>
    %257 = math.tanh %256 : vector<8x128xf32>
    %258 = arith.mulf %253, %257 : vector<8x128xf32>
    %c7 = arith.constant 7 : index
    %c0_71 = arith.constant 0 : index
    %c0_72 = arith.constant 0 : index
    %259 = vector.load %arg6[%c7, %c0_71, %c0_72] : memref<8x8x128xf32, #tpu.memory_space<vmem>>, vector<1x8x128xf32>
    %260 = vector.shape_cast %259 : vector<1x8x128xf32> to vector<8x128xf32>
    %261 = vector.shape_cast %258 : vector<8x128xf32> to vector<1x8x128xf32>
    tpu.vector_store %arg6[%c7, %c0_71, %c0_72], %261 {strides = array<i32>} : memref<8x8x128xf32, #tpu.memory_space<vmem>>, vector<1x8x128xf32>,
    %c0_73 = arith.constant 0 : index
    %c0_74 = arith.constant 0 : index
    %262 = vector.load %arg7[%c0_73, %c0_74] : memref<8x128xf32, #tpu.memory_space<vmem>>, vector<8x128xf32>
    tpu.vector_store %arg7[%c0_73, %c0_74], %258 {strides = array<i32>} : memref<8x128xf32, #tpu.memory_space<vmem>>, vector<8x128xf32>,
    %c0_75 = arith.constant 0 : index
    %c0_76 = arith.constant 0 : index
    %263 = vector.load %arg8[%c0_75, %c0_76] : memref<8x128xf32, #tpu.memory_space<vmem>>, vector<8x128xf32>
    tpu.vector_store %arg8[%c0_75, %c0_76], %256 {strides = array<i32>} : memref<8x128xf32, #tpu.memory_space<vmem>>, vector<8x128xf32>,
    return
  }
  func.func @transform_0(%arg0: i32, %arg1: i32) -> (i32, i32, i32) {
    %c0_i32 = arith.constant 0 : i32
    %c0_i32_0 = arith.constant 0 : i32
    return %arg1, %arg0, %c0_i32 : i32, i32, i32
  }
  func.func @transform_1(%arg0: i32, %arg1: i32) -> (i32, i32) {
    %c0_i32 = arith.constant 0 : i32
    %c0_i32_0 = arith.constant 0 : i32
    %c0_i32_1 = arith.constant 0 : i32
    return %c0_i32, %c0_i32_0 : i32, i32
  }
  func.func @transform_2(%arg0: i32, %arg1: i32) -> (i32, i32) {
    %c0_i32 = arith.constant 0 : i32
    %c0_i32_0 = arith.constant 0 : i32
    %c0_i32_1 = arith.constant 0 : i32
    return %c0_i32, %c0_i32_0 : i32, i32
  }
  func.func @transform_3(%arg0: i32, %arg1: i32) -> (i32, i32) {
    %c0_i32 = arith.constant 0 : i32
    %c0_i32_0 = arith.constant 0 : i32
    %c0_i32_1 = arith.constant 0 : i32
    return %c0_i32, %c0_i32_0 : i32, i32
  }
  func.func @transform_4(%arg0: i32, %arg1: i32) -> (i32, i32, i32) {
    %c0_i32 = arith.constant 0 : i32
    %c0_i32_0 = arith.constant 0 : i32
    return %arg1, %arg0, %c0_i32 : i32, i32, i32
  }
}

module attributes {stable_mosaic.version = 11 : i64} {
  func.func @_fc_kernel(%arg0: memref<4x128xf32, #tpu.memory_space<vmem>>, %arg1: memref<128x128xf32, #tpu.memory_space<vmem>>, %arg2: memref<1x128xf32, #tpu.memory_space<vmem>>, %arg3: memref<4x128xf32, #tpu.memory_space<vmem>>) attributes {dimension_semantics = [], scalar_prefetch = 0 : i64, scratch_operands = 0 : i64, tpu.core_type = #tpu.core_type<tc>} {
    %c0 = arith.constant 0 : index
    %c0_0 = arith.constant 0 : index
    %0 = vector.load %arg0[%c0, %c0_0] : memref<4x128xf32, #tpu.memory_space<vmem>>, vector<4x128xf32>
    %c0_1 = arith.constant 0 : index
    %c0_2 = arith.constant 0 : index
    %1 = vector.load %arg1[%c0_1, %c0_2] : memref<128x128xf32, #tpu.memory_space<vmem>>, vector<128x128xf32>
    %cst = arith.constant dense<0.000000e+00> : vector<4x128xf32>
    %2 = tpu.matmul %0, %1, %cst {dimension_numbers = #tpu.dot_dimension_numbers<[1], [0], [0], [1], [0, 0, 1, 1], [], []>} : vector<4x128xf32>, vector<128x128xf32>, vector<4x128xf32> -> vector<4x128xf32>
    %c0_3 = arith.constant 0 : index
    %c0_4 = arith.constant 0 : index
    %3 = vector.load %arg2[%c0_3, %c0_4] : memref<1x128xf32, #tpu.memory_space<vmem>>, vector<1x128xf32>
    %4 = vector.broadcast %3 : vector<1x128xf32> to vector<4x128xf32>
    %5 = arith.addf %2, %4 : vector<4x128xf32>
    %c0_5 = arith.constant 0 : index
    %c0_6 = arith.constant 0 : index
    %6 = vector.load %arg3[%c0_5, %c0_6] : memref<4x128xf32, #tpu.memory_space<vmem>>, vector<4x128xf32>
    tpu.vector_store %arg3[%c0_5, %c0_6], %5 {strides = array<i32>} : memref<4x128xf32, #tpu.memory_space<vmem>>, vector<4x128xf32>,
    return
  }
}

</mosaic_0001>

<bundles_post_ra>
// kernel: tpu_custom_call.1
= control target key start
LH: loop header
LB: loop body
LE: loop exit
PB: predicated region body
PF: predicated region fallthrough
CT: control target
= control target key end

     0   :  { %6 = vsyncpa [#allocation3], 0  ;;  %s341_s0 = inlined_call_operand.hbm [shape: f32[8,128], index: 0, kind: input, shape index: {}]   ;;  %s342_s1 = inlined_call_operand.hbm [shape: f32[8,128], index: 1, kind: output, shape index: {}]  }
   0x1   :  { %7 = vsyncpa [#allocation4], 0  ;;  %s262_s6 = smov 0  }
   0x2 LB: > { %s145_s7 = sadd.s32 4294967295, %s248_s6   ;;  %p146_p0 = scmp.ge.s32.totalorder %s248_s6, 1  ;;  %s248_s6 = sphi %s262_s6, %s13_s6  }
   0x3   : > { %p60_p1 = scmp.lt.s32.totalorder %s248_s6, 3  ;;  %p276_p3 = scmp.eq.s32.totalorder %s145_s7, 0 }
   0x4   : > { %s250_s10 = smov [#allocation2]   ;;  %s180_s15 = scalar_lea.hbm %s341_s0, 128 }
   0x5   : > { %p270_p2 = pnand %p146_p0, %p60_p1  ;;  %s73_s11 = sshll.u32 %s250_s10, 4  ;;  %s74_s11 = int_to_ptr.vmem [resolvable:$true] %s73_s11 }
   0x6   : > { %s347_s9 = scalar_select %p276_p3, 1, 0 }
   0x7   : > { %s346_s8 = scalar_select %p270_p2, 1, 0 }
   0x8   : > { %p162_p4 = pneg %p270_p2  ;;  %p181_p6 = scmp.ne.s32.totalorder %s341_s0, %s180_s15 }
   0x9   : > { %p187_p10 = scmp.lt.u32.totalorder %s180_s15, %s341_s0 }
   0xa   : > { %p284_p5 = pnand %p276_p3, %p162_p4 }
   0xc   : > { %p182_p7 = pneg %p284_p5 }
   0xe   : > { %p183_p8 = pnand %p182_p7, %p181_p6 }
  0x10   : > { %p184_p9 = pneg %p183_p8 }
  0x12   : > { %p189_p11 = pnand %p187_p10, %p184_p9 }
  0x14   : > { %192 = shalt.err (!%p189_p11)
}
  0x15   : > { %s193_s20 = scalar_lea.vmem %s74_s11, 128  ;;  %p201_p1 = scmp.lt.s32.totalorder %s74_s11, %s74_s11 }
  0x16   : > { %p194_p12 = scmp.ne.s32.totalorder %s74_s11, %s193_s20  ;;  %p202_p4 = scmp.lt.s32.totalorder %s193_s20, %s193_s20 }
  0x18   : > { %p196_p13 = pnand %p194_p12, %p182_p7  ;;  %p203_p3 = por %p202_p4, %p201_p1 }
  0x1a   : > { %p197_p0 = pneg %p196_p13 }
  0x1c   : > { %p204_p2 = pnand %p203_p3, %p197_p0 }
  0x1e   : > { %207 = shalt.err (!%p204_p2)
}
  0x1f   : > { %165 = dma.hbm_to_vmem [thread:$0]  (!%p284_p5), %s341_s0, 128, %s74_s11, [#allocation3]  }
  0x20   : > { %p349_p6 = scmp.ne.s32.totalorder %s346_s8, 0 }
  0x21   : > { %p350_p8 = scmp.ne.s32.totalorder (!%p349_p6), %s347_s9, 0 }
  0x22   : > { %86 = sbr.rel (%p349_p6) target bundleno = 67 (0x43), region = 24 }
  0x29   : > { %239 = dma.done.wait (%p350_p8), [#allocation3], 128  }
  0x2a   : > { %241 = vsyncadd (%p350_p8), [#allocation3], 4294967168  ;;  %s251_s23 = smov [#allocation5]   ;;  %v96_v0 = vld [vmem:[#allocation2] sm:$0xff]  ;;  %p312_p2 = scmp.eq.s32.totalorder %s145_s7, 1 }
  0x2b   : > { %s106_s24 = sshll.u32 %s251_s23, 4  ;;  %v97_v1 = vadd.f32 1.0, %v96_v0  ;;  %s107_s24 = int_to_ptr.vmem [resolvable:$true] %s106_s24 }
  0x2c   : > { %s208_s26 = scalar_lea.vmem %s107_s24, 128  ;;  %p215_p9 = scmp.lt.s32.totalorder %s107_s24, %s107_s24 }
  0x2d   : > { %98 = vst [vmem:[#allocation5] sm:$0xff] %v97_v1  ;;  %p209_p3 = scmp.ne.s32.totalorder %s107_s24, %s208_s26  ;;  %p216_p10 = scmp.lt.s32.totalorder %s208_s26, %s208_s26 }
  0x2f   : > { %p210_p5 = pnand %p209_p3, %p312_p2  ;;  %p217_p11 = por %p216_p10, %p215_p9 }
  0x31   : > { %p211_p7 = pneg %p210_p5 }
  0x33   : > { %p218_p12 = pnand %p217_p11, %p211_p7 }
  0x35   : > { %221 = shalt.err (!%p218_p12)
}
  0x36   : > { %s222_s29 = scalar_lea.hbm %s342_s1, 128 }
  0x37   : > { %p223_p13 = scmp.ne.s32.totalorder %s342_s1, %s222_s29  ;;  %p228_p4 = scmp.lt.u32.totalorder %s222_s29, %s342_s1 }
  0x39   : > { %p224_p0 = pnand %p223_p13, %p312_p2 }
  0x3b   : > { %p225_p1 = pneg %p224_p0 }
  0x3d   : > { %p230_p6 = pnand %p228_p4, %p225_p1 }
  0x3f   : > { %233 = shalt.err (!%p230_p6)
}
  0x40   : > { %159 = dma.vmem_to_hbm [thread:$0]  (%p312_p2), %s107_s24, 128, %s342_s1, [#allocation4]  }
  0x41   : > { %243 = dma.done.wait (%p312_p2), [#allocation4], 128  }
  0x42   : > { %245 = vsyncadd (%p312_p2), [#allocation4], 4294967168 }
  0x43 PF: > { %s13_s6 = sadd.s32 1, %s248_s6  }
  0x44   : > { %p10_p8 = scmp.ge.s32.totalorder %s13_s6, 4  }
  0x46   :  { %12 = sbr.rel (!%p10_p8) target bundleno = 2 (0x2), region = 53 }
  0x4d   :  { %119 = vsyncpa [#allocation3], 1 }
  0x4e   :  { %121 = vsyncpa [#allocation3 + $0x1], 1 }
  0x4f   :  { %122 = vsyncpa [#allocation4], 1 }
  0x50   :  { %124 = vsyncpa [#allocation4 + $0x1], 1 }

// kernel: _lstm_model_impl.5
= control target key start
LH: loop header
LB: loop body
LE: loop exit
PB: predicated region body
PF: predicated region fallthrough
CT: control target
= control target key end

     0   :  { %v229_v3 = vmov 0.0|0.0   ;;  %vm230_vm0 = vmmov 0   ;;  %v231_v6 = vmov 0.0   ;;  %s319_s0 = inlined_call_operand.vmem [shape: f32[4,128], index: 0, kind: input, shape index: {}]   ;;  %s320_s1 = inlined_call_operand.vmem [shape: f32[128,128], index: 1, kind: input, shape index: {}]   ;;  %s321_s2 = inlined_call_operand.vmem [shape: f32[1,128], index: 2, kind: input, shape index: {}]   ;;  %s322_s3 = inlined_call_operand.hbm [shape: f32[4,128], index: 3, kind: output, shape index: {}]  }
   0x1   :  { %v16_v0 = vld [vmem:[%s320_s1] sm:$0xff]  ;;  %v17_v1 = vld [vmem:[%s320_s1 + $0x8] sm:$0xff]  ;;  %v18_v2 = vld [vmem:[%s320_s1 + $0x10] sm:$0xff]  ;;  %177 = vmatprep.subr.bf16.mxu0 %v229_v3  ;;  %174 = vmatprep.mubr.msk.f32.mxu0 %vm230_vm0, %v231_v6 }
   0x2   :  { %v178_v4 = vpack.c.bf16 %v17_v1, %v16_v0  ;;  %v19_v5 = vld [vmem:[%s320_s1 + $0x18] sm:$0xff]  ;;  %v20_v8 = vld [vmem:[%s320_s1 + $0x20] sm:$0xff]  ;;  %v21_v9 = vld [vmem:[%s320_s1 + $0x28] sm:$0xff] }
   0x3   :  { %v181_v7 = vpack.c.bf16 %v19_v5, %v18_v2 }
   0x4   :  { %179 = vmatpush3.bf16.msra.mxu0 %v178_v4 }
   0x5   :  { %180 = vmatprep.subr.bf16.mxu0 %v229_v3 }
   0x6   :  { %8 = vsyncpa [#allocation3], 0  ;;  %v184_v10 = vpack.c.bf16 %v21_v9, %v20_v8  ;;  %v22_v11 = vld [vmem:[%s320_s1 + $0x30] sm:$0xff]  ;;  %v23_v12 = vld [vmem:[%s320_s1 + $0x38] sm:$0xff]  ;;  %s232_s21 = smov [#allocation2]  }
   0x7   :  { %v187_v13 = vpack.c.bf16 %v23_v12, %v22_v11  ;;  %v24_v14 = vld [vmem:[%s320_s1 + $0x40] sm:$0xff]  ;;  %v25_v15 = vld [vmem:[%s320_s1 + $0x48] sm:$0xff]  ;;  %v26_v17 = vld [vmem:[%s320_s1 + $0x50] sm:$0xff]  ;;  %s116_s22 = sshll.u32 %s232_s21, 4  ;;  %s117_s22 = int_to_ptr.vmem [resolvable:$true] %s116_s22 }
   0x8   :  { %182 = vmatpush3.bf16.msra.mxu0 %v181_v7  ;;  %v190_v16 = vpack.c.bf16 %v25_v15, %v24_v14  ;;  %v27_v18 = vld [vmem:[%s320_s1 + $0x58] sm:$0xff]  ;;  %v28_v20 = vld [vmem:[%s320_s1 + $0x60] sm:$0xff]  ;;  %v29_v21 = vld [vmem:[%s320_s1 + $0x68] sm:$0xff]  ;;  %p210_p1 = scmp.lt.s32.totalorder %s117_s22, %s117_s22 }
   0x9   :  { %183 = vmatprep.subr.bf16.mxu0 %v229_v3  ;;  %v193_v19 = vpack.c.bf16 %v27_v18, %v26_v17  ;;  %v196_v22 = vpack.c.bf16 %v29_v21, %v28_v20  ;;  %v30_v23 = vld [vmem:[%s320_s1 + $0x70] sm:$0xff]  ;;  %v31_v24 = vld [vmem:[%s320_s1 + $0x78] sm:$0xff]  ;;  %v15_v26 = vld [vmem:[%s319_s0] sm:$0xf]  ;;  %s205_s1 = scalar_lea.vmem %s117_s22, 64 }
   0xa   :  { %v199_v25 = vpack.c.bf16 %v31_v24, %v30_v23  ;;  %v124_v27 = vld [vmem:[%s321_s2] ss:$0 sm:$0xff]  ;;  %p206_p0 = scmp.ne.s32.totalorder %s117_s22, %s205_s1  ;;  %p211_p2 = scmp.lt.s32.totalorder %s205_s1, %s205_s1 }
   0xc   :  { %185 = vmatpush3.bf16.msra.mxu0 %v184_v10  ;;  %p212_p3 = por %p211_p2, %p210_p1 }
   0xd   :  { %186 = vmatprep.subr.bf16.mxu0 %v229_v3 }
   0xe   :  { %p213_p4 = pnand %p212_p3, %p206_p0 }
  0x10   :  { %188 = vmatpush3.bf16.msra.mxu0 %v187_v13 }
  0x11   :  { %189 = vmatprep.subr.bf16.mxu0 %v229_v3 }
  0x14   :  { %191 = vmatpush3.bf16.msra.mxu0 %v190_v16 }
  0x15   :  { %192 = vmatprep.subr.bf16.mxu0 %v229_v3 }
  0x18   :  { %194 = vmatpush3.bf16.msra.mxu0 %v193_v19 }
  0x19   :  { %195 = vmatprep.subr.bf16.mxu0 %v229_v3 }
  0x1c   :  { %197 = vmatpush3.bf16.msra.mxu0 %v196_v22 }
  0x1d   :  { %198 = vmatprep.subr.bf16.mxu0 %v229_v3 }
  0x20   :  { %200 = vmatpush3.bf16.msra.mxu0 %v199_v25 }
  0x23   :  { %175 = vmatmul.mubr.f32.vlgmr.msra.gmra.mrb[0].mxu0 %v15_v26 }
  0xf6   :  { %v105_v28 = vpop.f32.mrb[0].mxu0 }
  0xf7   :  { %v106_v29 = vadd.f32 %v124_v27, %v105_v28  ;;  %v176_v30 = vpop.f32.mrb[1].mxu0 }
  0xf9   :  { %109 = vst [vmem:[#allocation2] sm:$0xf] %v106_v29 }
  0xfa   :  { %216 = shalt.err (!%p213_p4)
}
  0xfb   :  { %s217_s24 = scalar_lea.hbm %s322_s3, 64 }
  0xfc   :  { %p218_p5 = scmp.ne.s32.totalorder %s322_s3, %s217_s24  ;;  %p221_p6 = scmp.lt.u32.totalorder %s217_s24, %s322_s3 }
  0xfe   :  { %p223_p7 = pnand %p221_p6, %p218_p5 }
 0x100   :  { %226 = shalt.err (!%p223_p7)
}
 0x101   :  { %119 = dma.vmem_to_hbm [thread:$0]  %s117_s22, 64, %s322_s3, [#allocation3]  }
 0x102   :  { %227 = dma.done.wait [#allocation3], 64  }
 0x103   :  { %228 = vsyncadd [#allocation3], 4294967232 }
 0x104   :  { %123 = vsyncpa [#allocation3], 1 }

// kernel: _lstm_model_impl.3
= control target key start
LH: loop header
LB: loop body
LE: loop exit
PB: predicated region body
PF: predicated region fallthrough
CT: control target
= control target key end

     0   :  { %9 = vsyncpa [#allocation6], 0  ;;  %s3259_s0 = inlined_call_operand.vmem [shape: f32[8,8,128], index: 0, kind: input, shape index: {}]   ;;  %s3260_s1 = inlined_call_operand.hbm [shape: f32[128,512], index: 1, kind: input, shape index: {}]   ;;  %s3261_s2 = inlined_call_operand.hbm [shape: f32[128,512], index: 2, kind: input, shape index: {}]   ;;  %s3262_s3 = inlined_call_operand.vmem [shape: f32[1,512], index: 3, kind: input, shape index: {}]   ;;  %s3263_s4 = inlined_call_operand.vmem [shape: f32[8,8,128], index: 4, kind: output, shape index: {}]  }
   0x1   :  { %10 = vsyncpa [#allocation8], 0  ;;  %s2736_s15 = smov [#allocation5]   ;;  %s2688_s19 = scalar_lea.hbm %s3260_s1, 8192 }
   0x2   :  { %s18_s16 = sshll.u32 %s2736_s15, 4  ;;  %p2689_p0 = scmp.ne.s32.totalorder %s3260_s1, %s2688_s19  ;;  %s19_s16 = int_to_ptr.vmem [resolvable:$true] %s18_s16 }
   0x3   :  { %p2692_p1 = scmp.lt.u32.totalorder %s2688_s19, %s3260_s1 }
   0x5   :  { %p2694_p2 = pnand %p2692_p1, %p2689_p0 }
   0x7   :  { %2697 = shalt.err (!%p2694_p2)
}
   0x8   :  { %s2698_s24 = scalar_lea.vmem %s19_s16, 8192  ;;  %p2703_p4 = scmp.lt.s32.totalorder %s19_s16, %s19_s16 }
   0x9   :  { %p2699_p3 = scmp.ne.s32.totalorder %s19_s16, %s2698_s24  ;;  %p2704_p5 = scmp.lt.s32.totalorder %s2698_s24, %s2698_s24 }
   0xb   :  { %p2705_p6 = por %p2704_p5, %p2703_p4 }
   0xd   :  { %p2706_p7 = pnand %p2705_p6, %p2699_p3 }
   0xf   :  { %2709 = shalt.err (!%p2706_p7)
}
  0x10   :  { %s2737_s25 = smov 512   ;;  %s2738_s26 = smov 32  }
  0x11   :  { %24 = dma.hbm_to_vmem [thread:$0]  %s3260_s1, 8192, %s19_s16, [#allocation6], %s2737_s25, %s2737_s25, %s2738_s26  }
  0x12   :  { %s2739_s29 = smov [#allocation7]   ;;  %s2710_s7 = scalar_lea.hbm %s3261_s2, 8192 }
  0x13   :  { %s30_s30 = sshll.u32 %s2739_s29, 4  ;;  %p2711_p8 = scmp.ne.s32.totalorder %s3261_s2, %s2710_s7  ;;  %s31_s30 = int_to_ptr.vmem [resolvable:$true] %s30_s30 }
  0x14   :  { %p2714_p9 = scmp.lt.u32.totalorder %s2710_s7, %s3261_s2 }
  0x16   :  { %p2716_p10 = pnand %p2714_p9, %p2711_p8 }
  0x18   :  { %2719 = shalt.err (!%p2716_p10)
}
  0x19   :  { %s2720_s12 = scalar_lea.vmem %s31_s30, 8192  ;;  %p2725_p12 = scmp.lt.s32.totalorder %s31_s30, %s31_s30 }
  0x1a   :  { %p2721_p11 = scmp.ne.s32.totalorder %s31_s30, %s2720_s12  ;;  %p2726_p13 = scmp.lt.s32.totalorder %s2720_s12, %s2720_s12 }
  0x1c   :  { %p2727_p0 = por %p2726_p13, %p2725_p12 }
  0x1e   :  { %p2728_p1 = pnand %p2727_p0, %p2721_p11 }
  0x20   :  { %2731 = shalt.err (!%p2728_p1)
}
  0x21   :  { %36 = dma.hbm_to_vmem [thread:$0]  %s3261_s2, 8192, %s31_s30, [#allocation8], %s2737_s25, %s2737_s25, %s2738_s26  }
  0x22   :  { %2732 = dma.done.wait [#allocation6], 8192  }
  0x23   :  { %2733 = vsyncadd [#allocation6], 4294959104 }
  0x24   :  { %2734 = dma.done.wait [#allocation8], 8192  }
  0x25   :  { %2735 = vsyncadd [#allocation8], 4294959104  ;;  %v2740_v0 = vmov 0.0   ;;  %v52_v1 = vld [vmem:[#allocation5 + $0x8] sm:$0xff]  ;;  %v54_v3 = vld [vmem:[#allocation5 + $0x18] sm:$0xff] }
  0x26   :  { %273 = vmatprep.mubr.f32.mxu0 %v2740_v0  ;;  %386 = vmatprep.mubr.f32.mxu1 %v2740_v0  ;;  %v56_v2 = vld [vmem:[#allocation5 + $0x28] sm:$0xff]  ;;  %v58_v5 = vld [vmem:[#allocation5 + $0x38] sm:$0xff]  ;;  %v51_v6 = vld [vmem:[#allocation5] sm:$0xff] }
  0x27   :  { %v1915_v4 = vpack.c.bf16 %v56_v2, %v52_v1  ;;  %v55_v7 = vld [vmem:[#allocation5 + $0x20] sm:$0xff]  ;;  %v1947_v8 = vpack.c.bf16 %v58_v5, %v54_v3  ;;  %v53_v10 = vld [vmem:[#allocation5 + $0x10] sm:$0xff]  ;;  %v60_v12 = vld [vmem:[#allocation5 + $0x48] sm:$0xff] }
  0x28   :  { %v1917_v9 = vpack.c.bf16 %v55_v7, %v51_v6  ;;  %v57_v11 = vld [vmem:[#allocation5 + $0x30] sm:$0xff]  ;;  %v64_v14 = vld [vmem:[#allocation5 + $0x68] sm:$0xff]  ;;  %v62_v15 = vld [vmem:[#allocation5 + $0x58] sm:$0xff] }
  0x29   :  { %1916 = vmatprep.subr.bf16.mxu0 %v1915_v4  ;;  %v1949_v13 = vpack.c.bf16 %v57_v11, %v53_v10  ;;  %v66_v16 = vld [vmem:[#allocation5 + $0x78] sm:$0xff]  ;;  %1948 = vmatprep.subr.bf16.mxu1 %v1947_v8  ;;  %v1919_v17 = vpack.c.bf16 %v64_v14, %v60_v12  ;;  %v59_v19 = vld [vmem:[#allocation5 + $0x40] sm:$0xff]  ;;  %v61_v21 = vld [vmem:[#allocation5 + $0x50] sm:$0xff] }
  0x2a   :  { %1918 = vmatpush1.bf16.msra.mxu0 %v1917_v9  ;;  %v1951_v18 = vpack.c.bf16 %v66_v16, %v62_v15  ;;  %v63_v20 = vld [vmem:[#allocation5 + $0x60] sm:$0xff]  ;;  %v65_v23 = vld [vmem:[#allocation5 + $0x70] sm:$0xff]  ;;  %v68_v24 = vld [vmem:[#allocation5 + $0x88] sm:$0xff] }
  0x2b   :  { %1950 = vmatpush1.bf16.msra.mxu1 %v1949_v13  ;;  %v1921_v22 = vpack.c.bf16 %v63_v20, %v59_v19  ;;  %v72_v25 = vld [vmem:[#allocation5 + $0xa8] sm:$0xff]  ;;  %1920 = vmatprep.subr.bf16.mxu0 %v1919_v17  ;;  %v1953_v26 = vpack.c.bf16 %v65_v23, %v61_v21  ;;  %v70_v28 = vld [vmem:[#allocation5 + $0x98] sm:$0xff]  ;;  %v67_v30 = vld [vmem:[#allocation5 + $0x80] sm:$0xff] }
  0x2c   :  { %1952 = vmatprep.subr.bf16.mxu1 %v1951_v18  ;;  %v1923_v27 = vpack.c.bf16 %v72_v25, %v68_v24  ;;  %v74_v29 = vld [vmem:[#allocation5 + $0xb8] sm:$0xff]  ;;  %v71_v32 = vld [vmem:[#allocation5 + $0xa0] sm:$0xff]  ;;  %v69_v33 = vld [vmem:[#allocation5 + $0x90] sm:$0xff] }
  0x2d   :  { %v1955_v31 = vpack.c.bf16 %v74_v29, %v70_v28  ;;  %v73_v34 = vld [vmem:[#allocation5 + $0xb0] sm:$0xff]  ;;  %v1925_v35 = vpack.c.bf16 %v71_v32, %v67_v30  ;;  %v76_v36 = vld [vmem:[#allocation5 + $0xc8] sm:$0xff]  ;;  %v78_v38 = vld [vmem:[#allocation5 + $0xd8] sm:$0xff] }
  0x2e   :  { %1922 = vmatpush1.bf16.msra.mxu0 %v1921_v22  ;;  %v80_v37 = vld [vmem:[#allocation5 + $0xe8] sm:$0xff]  ;;  %v1957_v39 = vpack.c.bf16 %v73_v34, %v69_v33  ;;  %v82_v41 = vld [vmem:[#allocation5 + $0xf8] sm:$0xff]  ;;  %v75_v42 = vld [vmem:[#allocation5 + $0xc0] sm:$0xff] }
  0x2f   :  { %1954 = vmatpush1.bf16.msra.mxu1 %v1953_v26  ;;  %1924 = vmatprep.subr.bf16.mxu0 %v1923_v27  ;;  %v1927_v40 = vpack.c.bf16 %v80_v37, %v76_v36  ;;  %v79_v43 = vld [vmem:[#allocation5 + $0xe0] sm:$0xff]  ;;  %v1959_v44 = vpack.c.bf16 %v82_v41, %v78_v38  ;;  %v77_v45 = vld [vmem:[#allocation5 + $0xd0] sm:$0xff]  ;;  %v84_v47 = vld [vmem:[#allocation5 + $0x108] sm:$0xff] }
  0x30   :  { %1956 = vmatprep.subr.bf16.mxu1 %v1955_v31  ;;  %v81_v46 = vld [vmem:[#allocation5 + $0xf0] sm:$0xff]  ;;  %v88_v48 = vld [vmem:[#allocation5 + $0x128] sm:$0xff]  ;;  %v86_v49 = vld [vmem:[#allocation5 + $0x118] sm:$0xff]  ;;  %v1929_v51 = vpack.c.bf16 %v79_v43, %v75_v42 }
  0x31   :  { %v90_v50 = vld [vmem:[#allocation5 + $0x138] sm:$0xff]  ;;  %v1961_v52 = vpack.c.bf16 %v81_v46, %v77_v45  ;;  %v1931_v53 = vpack.c.bf16 %v88_v48, %v84_v47  ;;  %v83_v54 = vld [vmem:[#allocation5 + $0x100] sm:$0xff]  ;;  %v85_v56 = vld [vmem:[#allocation5 + $0x110] sm:$0xff] }
  0x32   :  { %1926 = vmatpush1.bf16.msra.mxu0 %v1925_v35  ;;  %v87_v55 = vld [vmem:[#allocation5 + $0x120] sm:$0xff]  ;;  %v1963_v57 = vpack.c.bf16 %v90_v50, %v86_v49  ;;  %v89_v58 = vld [vmem:[#allocation5 + $0x130] sm:$0xff]  ;;  %v92_v59 = vld [vmem:[#allocation5 + $0x148] sm:$0xff] }
  0x33   :  { %1958 = vmatpush1.bf16.msra.mxu1 %v1957_v39  ;;  %1928 = vmatprep.subr.bf16.mxu0 %v1927_v40  ;;  %v96_v60 = vld [vmem:[#allocation5 + $0x168] sm:$0xff]  ;;  %v94_v61 = vld [vmem:[#allocation5 + $0x158] sm:$0xff]  ;;  %v1933_v63 = vpack.c.bf16 %v87_v55, %v83_v54  ;;  %v1965_v1 = vpack.c.bf16 %v89_v58, %v85_v56  ;;  %v91_v3 = vld [vmem:[#allocation5 + $0x140] sm:$0xff] }
  0x34   :  { %1960 = vmatprep.subr.bf16.mxu1 %v1959_v44  ;;  %v98_v62 = vld [vmem:[#allocation5 + $0x178] sm:$0xff]  ;;  %v1935_v2 = vpack.c.bf16 %v96_v60, %v92_v59  ;;  %v95_v4 = vld [vmem:[#allocation5 + $0x160] sm:$0xff]  ;;  %v93_v5 = vld [vmem:[#allocation5 + $0x150] sm:$0xff] }
  0x35   :  { %v1967_v6 = vpack.c.bf16 %v98_v62, %v94_v61  ;;  %v97_v7 = vld [vmem:[#allocation5 + $0x170] sm:$0xff]  ;;  %v100_v8 = vld [vmem:[#allocation5 + $0x188] sm:$0xff]  ;;  %v102_v10 = vld [vmem:[#allocation5 + $0x198] sm:$0xff]  ;;  %v1937_v12 = vpack.c.bf16 %v95_v4, %v91_v3 }
  0x36   :  { %1930 = vmatpush1.bf16.msra.mxu0 %v1929_v51  ;;  %v104_v9 = vld [vmem:[#allocation5 + $0x1a8] sm:$0xff]  ;;  %v106_v11 = vld [vmem:[#allocation5 + $0x1b8] sm:$0xff]  ;;  %v1969_v13 = vpack.c.bf16 %v97_v7, %v93_v5  ;;  %v99_v15 = vld [vmem:[#allocation5 + $0x180] sm:$0xff] }
  0x37   :  { %1962 = vmatpush1.bf16.msra.mxu1 %v1961_v52  ;;  %1932 = vmatprep.subr.bf16.mxu0 %v1931_v53  ;;  %v1939_v14 = vpack.c.bf16 %v104_v9, %v100_v8  ;;  %v103_v16 = vld [vmem:[#allocation5 + $0x1a0] sm:$0xff]  ;;  %v101_v17 = vld [vmem:[#allocation5 + $0x190] sm:$0xff]  ;;  %v1971_v18 = vpack.c.bf16 %v106_v11, %v102_v10  ;;  %v108_v20 = vld [vmem:[#allocation5 + $0x1c8] sm:$0xff] }
  0x38   :  { %1964 = vmatprep.subr.bf16.mxu1 %v1963_v57  ;;  %v105_v19 = vld [vmem:[#allocation5 + $0x1b0] sm:$0xff]  ;;  %v112_v21 = vld [vmem:[#allocation5 + $0x1e8] sm:$0xff]  ;;  %v110_v22 = vld [vmem:[#allocation5 + $0x1d8] sm:$0xff]  ;;  %v1941_v24 = vpack.c.bf16 %v103_v16, %v99_v15 }
  0x39   :  { %v114_v23 = vld [vmem:[#allocation5 + $0x1f8] sm:$0xff]  ;;  %v1973_v25 = vpack.c.bf16 %v105_v19, %v101_v17  ;;  %v1943_v26 = vpack.c.bf16 %v112_v21, %v108_v20  ;;  %v107_v27 = vld [vmem:[#allocation5 + $0x1c0] sm:$0xff]  ;;  %v109_v29 = vld [vmem:[#allocation5 + $0x1d0] sm:$0xff] }
  0x3a   :  { %1934 = vmatpush1.bf16.msra.mxu0 %v1933_v63  ;;  %v111_v28 = vld [vmem:[#allocation5 + $0x1e0] sm:$0xff]  ;;  %v1975_v30 = vpack.c.bf16 %v114_v23, %v110_v22  ;;  %v113_v31 = vld [vmem:[#allocation5 + $0x1f0] sm:$0xff]  ;;  %v116_v32 = vld [vmem:[#allocation7 + $0x8] sm:$0xff] }
  0x3b   :  { %1966 = vmatpush1.bf16.msra.mxu1 %v1965_v1  ;;  %1936 = vmatprep.subr.bf16.mxu0 %v1935_v2  ;;  %v120_v33 = vld [vmem:[#allocation7 + $0x28] sm:$0xff]  ;;  %v118_v34 = vld [vmem:[#allocation7 + $0x18] sm:$0xff]  ;;  %v1945_v36 = vpack.c.bf16 %v111_v28, %v107_v27  ;;  %v1977_v37 = vpack.c.bf16 %v113_v31, %v109_v29  ;;  %v115_v39 = vld [vmem:[#allocation7] sm:$0xff] }
  0x3c   :  { %1968 = vmatprep.subr.bf16.mxu1 %v1967_v6  ;;  %v122_v35 = vld [vmem:[#allocation7 + $0x38] sm:$0xff]  ;;  %v2792_v38 = vpack.c.bf16 %v120_v33, %v116_v32  ;;  %v119_v40 = vld [vmem:[#allocation7 + $0x20] sm:$0xff]  ;;  %v117_v42 = vld [vmem:[#allocation7 + $0x10] sm:$0xff] }
  0x3d   :  { %v2794_v41 = vpack.c.bf16 %v122_v35, %v118_v34  ;;  %v121_v43 = vld [vmem:[#allocation7 + $0x30] sm:$0xff]  ;;  %v124_v44 = vld [vmem:[#allocation7 + $0x48] sm:$0xff]  ;;  %v180_v46 = vld [vmem:[%s3259_s0] sm:$0xff]  ;;  %v2799_v47 = vpack.c.bf16 %v119_v40, %v115_v39 }
  0x3e   :  { %1938 = vmatpush1.bf16.msra.mxu0 %v1937_v12  ;;  %v128_v45 = vld [vmem:[#allocation7 + $0x68] sm:$0xff]  ;;  %v126_v48 = vld [vmem:[#allocation7 + $0x58] sm:$0xff]  ;;  %v2802_v50 = vpack.c.bf16 %v121_v43, %v117_v42  ;;  %v123_v51 = vld [vmem:[#allocation7 + $0x40] sm:$0xff] }
  0x3f   :  { %1970 = vmatpush1.bf16.msra.mxu1 %v1969_v13  ;;  %1940 = vmatprep.subr.bf16.mxu0 %v1939_v14  ;;  %v130_v49 = vld [vmem:[#allocation7 + $0x78] sm:$0xff]  ;;  %v127_v52 = vld [vmem:[#allocation7 + $0x60] sm:$0xff]  ;;  %v2805_v53 = vpack.c.bf16 %v128_v45, %v124_v44  ;;  %v125_v54 = vld [vmem:[#allocation7 + $0x50] sm:$0xff] }
  0x40   :  { %1972 = vmatprep.subr.bf16.mxu1 %v1971_v18  ;;  %v129_v55 = vld [vmem:[#allocation7 + $0x70] sm:$0xff]  ;;  %v2807_v56 = vpack.c.bf16 %v130_v49, %v126_v48  ;;  %v132_v57 = vld [vmem:[#allocation7 + $0x88] sm:$0xff]  ;;  %v2813_v60 = vpack.c.bf16 %v127_v52, %v123_v51  ;;  %v134_v61 = vld [vmem:[#allocation7 + $0x98] sm:$0xff] }
  0x41   :  { %v136_v58 = vld [vmem:[#allocation7 + $0xa8] sm:$0xff]  ;;  %v138_v62 = vld [vmem:[#allocation7 + $0xb8] sm:$0xff]  ;;  %v2817_v63 = vpack.c.bf16 %v129_v55, %v125_v54  ;;  %v131_v1 = vld [vmem:[#allocation7 + $0x80] sm:$0xff] }
  0x42   :  { %1942 = vmatpush1.bf16.msra.mxu0 %v1941_v24  ;;  %v181_v59 = vld [vmem:[%s3259_s0 + $0x8] sm:$0xff]  ;;  %v135_v2 = vld [vmem:[#allocation7 + $0xa0] sm:$0xff]  ;;  %v2821_v3 = vpack.c.bf16 %v136_v58, %v132_v57  ;;  %v133_v4 = vld [vmem:[#allocation7 + $0x90] sm:$0xff]  ;;  %v2824_v6 = vpack.c.bf16 %v138_v62, %v134_v61 }
  0x43   :  { %1974 = vmatpush1.bf16.msra.mxu1 %v1973_v25  ;;  %1944 = vmatprep.subr.bf16.mxu0 %v1943_v26  ;;  %v137_v5 = vld [vmem:[#allocation7 + $0xb0] sm:$0xff]  ;;  %v140_v7 = vld [vmem:[#allocation7 + $0xc8] sm:$0xff]  ;;  %v2830_v10 = vpack.c.bf16 %v135_v2, %v131_v1  ;;  %v142_v11 = vld [vmem:[#allocation7 + $0xd8] sm:$0xff] }
  0x44   :  { %1976 = vmatprep.subr.bf16.mxu1 %v1975_v30  ;;  %v144_v8 = vld [vmem:[#allocation7 + $0xe8] sm:$0xff]  ;;  %v182_v9 = vld [vmem:[%s3259_s0 + $0x10] sm:$0xff]  ;;  %v146_v12 = vld [vmem:[#allocation7 + $0xf8] sm:$0xff]  ;;  %v2834_v13 = vpack.c.bf16 %v137_v5, %v133_v4 }
  0x45   :  { %v139_v14 = vld [vmem:[#allocation7 + $0xc0] sm:$0xff]  ;;  %v2838_v16 = vpack.c.bf16 %v144_v8, %v140_v7  ;;  %v141_v17 = vld [vmem:[#allocation7 + $0xd0] sm:$0xff]  ;;  %v2841_v19 = vpack.c.bf16 %v146_v12, %v142_v11  ;;  %v148_v20 = vld [vmem:[#allocation7 + $0x108] sm:$0xff] }
  0x46   :  { %1946 = vmatpush1.bf16.msra.mxu0 %v1945_v36  ;;  %v143_v15 = vld [vmem:[#allocation7 + $0xe0] sm:$0xff]  ;;  %v145_v18 = vld [vmem:[#allocation7 + $0xf0] sm:$0xff]  ;;  %v152_v21 = vld [vmem:[#allocation7 + $0x128] sm:$0xff] }
  0x47   :  { %1978 = vmatpush1.bf16.msra.mxu1 %v1977_v37  ;;  %1980 = vmatprep.subr.bf16.mxu0 %v2792_v38  ;;  %v183_v22 = vld [vmem:[%s3259_s0 + $0x18] sm:$0xff]  ;;  %v2847_v23 = vpack.c.bf16 %v143_v15, %v139_v14  ;;  %v2851_v26 = vpack.c.bf16 %v145_v18, %v141_v17  ;;  %v147_v27 = vld [vmem:[#allocation7 + $0x100] sm:$0xff]  ;;  %v2855_v29 = vpack.c.bf16 %v152_v21, %v148_v20  ;;  %v149_v30 = vld [vmem:[#allocation7 + $0x110] sm:$0xff] }
  0x48   :  { %2012 = vmatprep.subr.bf16.mxu1 %v2794_v41  ;;  %v150_v24 = vld [vmem:[#allocation7 + $0x118] sm:$0xff]  ;;  %v151_v28 = vld [vmem:[#allocation7 + $0x120] sm:$0xff]  ;;  %v153_v31 = vld [vmem:[#allocation7 + $0x130] sm:$0xff] }
  0x49   :  { %274 = vmatmul.mubr.f32.vlgmr.msra.gmra.mrb[0].mxu0 %v180_v46  ;;  %v154_v25 = vld [vmem:[#allocation7 + $0x138] sm:$0xff]  ;;  %v156_v33 = vld [vmem:[#allocation7 + $0x148] sm:$0xff]  ;;  %v184_v35 = vld [vmem:[%s3259_s0 + $0x20] sm:$0xff]  ;;  %v2864_v36 = vpack.c.bf16 %v151_v28, %v147_v27  ;;  %v2868_v40 = vpack.c.bf16 %v153_v31, %v149_v30  ;;  %v189_v28 = vlaneseq }
  0x4a   :  { %387 = vmatmul.mubr.f32.vlgmr.msra.gmra.mrb[0].mxu1 %v180_v46  ;;  %1982 = vmatpush1.bf16.msra.mxu0 %v2799_v47  ;;  %v2858_v32 = vpack.c.bf16 %v154_v25, %v150_v24  ;;  %v160_v34 = vld [vmem:[#allocation7 + $0x168] sm:$0xff]  ;;  %v158_v37 = vld [vmem:[#allocation7 + $0x158] sm:$0xff]  ;;  %v155_v42 = vld [vmem:[#allocation7 + $0x140] sm:$0xff] }
  0x4b   :  { %2014 = vmatpush1.bf16.msra.mxu1 %v2802_v50  ;;  %279 = vmatprep.mubr.f32.mxu0 %v2740_v0  ;;  %v162_v39 = vld [vmem:[#allocation7 + $0x178] sm:$0xff]  ;;  %v159_v43 = vld [vmem:[#allocation7 + $0x160] sm:$0xff]  ;;  %v2872_v44 = vpack.c.bf16 %v160_v34, %v156_v33  ;;  %v157_v45 = vld [vmem:[#allocation7 + $0x150] sm:$0xff]  ;;  %v190_v30 = vshrl.u32 %v189_v28, 7 }
  0x4c   :  { %392 = vmatprep.mubr.f32.mxu1 %v2740_v0  ;;  %1984 = vmatprep.subr.bf16.mxu0 %v2805_v53  ;;  %v161_v46 = vld [vmem:[#allocation7 + $0x170] sm:$0xff]  ;;  %v2875_v48 = vpack.c.bf16 %v162_v39, %v158_v37  ;;  %v164_v49 = vld [vmem:[#allocation7 + $0x188] sm:$0xff]  ;;  %v2881_v54 = vpack.c.bf16 %v159_v43, %v155_v42  ;;  %v166_v55 = vld [vmem:[#allocation7 + $0x198] sm:$0xff] }
  0x4d   :  { %280 = vmatmul.mubr.f32.gmra.mrb[2].mxu0 %v181_v59  ;;  %2016 = vmatprep.subr.bf16.mxu1 %v2807_v56  ;;  %v168_v51 = vld [vmem:[#allocation7 + $0x1a8] sm:$0xff]  ;;  %v170_v57 = vld [vmem:[#allocation7 + $0x1b8] sm:$0xff]  ;;  %v2885_v58 = vpack.c.bf16 %v161_v46, %v157_v45  ;;  %v167_v61 = vld [vmem:[#allocation7 + $0x1a0] sm:$0xff]  ;;  %v191_v31 = vsub.s32 0, %v190_v30  ;;  %v195_v34 = vsub.s32 1, %v190_v30  ;;  %v203_v42 = vsub.s32 3, %v190_v30 }
  0x4e   :  { %393 = vmatmul.mubr.f32.gmra.mrb[2].mxu1 %v181_v59  ;;  %1986 = vmatpush1.bf16.msra.mxu0 %v2813_v60  ;;  %v185_v52 = vld [vmem:[%s3259_s0 + $0x28] sm:$0xff]  ;;  %v163_v59 = vld [vmem:[#allocation7 + $0x180] sm:$0xff]  ;;  %v2889_v62 = vpack.c.bf16 %v168_v51, %v164_v49  ;;  %v165_v1 = vld [vmem:[#allocation7 + $0x190] sm:$0xff]  ;;  %v2892_v4 = vpack.c.bf16 %v170_v57, %v166_v55 }
  0x4f   :  { %2018 = vmatpush1.bf16.msra.mxu1 %v2817_v63  ;;  %285 = vmatprep.mubr.f32.mxu0 %v2740_v0  ;;  %v169_v2 = vld [vmem:[#allocation7 + $0x1b0] sm:$0xff]  ;;  %v172_v5 = vld [vmem:[#allocation7 + $0x1c8] sm:$0xff]  ;;  %v174_v11 = vld [vmem:[#allocation7 + $0x1d8] sm:$0xff] }
  0x50   :  { %398 = vmatprep.mubr.f32.mxu1 %v2740_v0  ;;  %1988 = vmatprep.subr.bf16.mxu0 %v2821_v3  ;;  %v176_v7 = vld [vmem:[#allocation7 + $0x1e8] sm:$0xff]  ;;  %v186_v8 = vld [vmem:[%s3259_s0 + $0x30] sm:$0xff]  ;;  %v178_v12 = vld [vmem:[#allocation7 + $0x1f8] sm:$0xff]  ;;  %v2902_v14 = vpack.c.bf16 %v169_v2, %v165_v1 }
  0x51   :  { %286 = vmatmul.mubr.f32.gmra.mrb[4].mxu0 %v182_v9  ;;  %2020 = vmatprep.subr.bf16.mxu1 %v2824_v6  ;;  %v171_v15 = vld [vmem:[#allocation7 + $0x1c0] sm:$0xff]  ;;  %v2906_v18 = vpack.c.bf16 %v176_v7, %v172_v5  ;;  %v173_v20 = vld [vmem:[#allocation7 + $0x1d0] sm:$0xff]  ;;  %v187_v24 = vld [vmem:[%s3259_s0 + $0x38] sm:$0xff] }
  0x52   :  { %399 = vmatmul.mubr.f32.gmra.mrb[4].mxu1 %v182_v9  ;;  %1990 = vmatpush1.bf16.msra.mxu0 %v2830_v10  ;;  %v2898_v9 = vpack.c.bf16 %v167_v61, %v163_v59  ;;  %v175_v17 = vld [vmem:[#allocation7 + $0x1e0] sm:$0xff]  ;;  %v177_v21 = vld [vmem:[#allocation7 + $0x1f0] sm:$0xff]  ;;  %v199_v59 = vsub.s32 2, %v190_v30 }
  0x53   :  { %2022 = vmatpush1.bf16.msra.mxu1 %v2834_v13  ;;  %291 = vmatprep.mubr.f32.mxu0 %v2740_v0  ;;  %v2915_v25 = vpack.c.bf16 %v175_v17, %v171_v15  ;;  %v2919_v27 = vpack.c.bf16 %v177_v21, %v173_v20  ;;  %v179_v33 = vld [vmem:[%s3262_s3] sm:$0xf] }
  0x54   :  { %404 = vmatprep.mubr.f32.mxu1 %v2740_v0  ;;  %1992 = vmatprep.subr.bf16.mxu0 %v2838_v16  ;;  %v2971_v37 = vrot.slane %v179_v33, %v195_v34  ;;  %v2975_v57 = vrot.slane %v179_v33, %v203_v42  ;;  %v2978_v1 = vrot.slane %v179_v33, %v199_v59 }
  0x55   :  { %292 = vmatmul.mubr.f32.gmra.mrb[6].mxu0 %v183_v22  ;;  %2024 = vmatprep.subr.bf16.mxu1 %v2841_v19 }
  0x56   :  { %405 = vmatmul.mubr.f32.gmra.mrb[6].mxu1 %v183_v22  ;;  %1994 = vmatpush1.bf16.msra.mxu0 %v2847_v23  ;;  %v2909_v22 = vpack.c.bf16 %v178_v12, %v174_v11 }
  0x57   :  { %2026 = vmatpush1.bf16.msra.mxu1 %v2851_v26  ;;  %297 = vmatprep.mubr.f32.mxu0 %v2740_v0 }
  0x58   :  { %410 = vmatprep.mubr.f32.mxu1 %v2740_v0  ;;  %1996 = vmatprep.subr.bf16.mxu0 %v2855_v29 }
  0x59   :  { %298 = vmatmul.mubr.f32.gmra.mrb[8].mxu0 %v184_v35  ;;  %2028 = vmatprep.subr.bf16.mxu1 %v2858_v32 }
  0x5a   :  { %411 = vmatmul.mubr.f32.gmra.mrb[8].mxu1 %v184_v35  ;;  %1998 = vmatpush1.bf16.msra.mxu0 %v2864_v36  ;;  %v2969_v35 = vrot.slane %v179_v33, %v191_v31 }
  0x5b   :  { %2030 = vmatpush1.bf16.msra.mxu1 %v2868_v40  ;;  %303 = vmatprep.mubr.f32.mxu0 %v2740_v0 }
  0x5c   :  { %416 = vmatprep.mubr.f32.mxu1 %v2740_v0  ;;  %2000 = vmatprep.subr.bf16.mxu0 %v2872_v44 }
  0x5d   :  { %304 = vmatmul.mubr.f32.gmra.mrb[10].mxu0 %v185_v52  ;;  %2032 = vmatprep.subr.bf16.mxu1 %v2875_v48 }
  0x5e   :  { %417 = vmatmul.mubr.f32.gmra.mrb[10].mxu1 %v185_v52  ;;  %2002 = vmatpush1.bf16.msra.mxu0 %v2881_v54 }
  0x5f   :  { %2034 = vmatpush1.bf16.msra.mxu1 %v2885_v58  ;;  %309 = vmatprep.mubr.f32.mxu0 %v2740_v0 }
  0x60   :  { %422 = vmatprep.mubr.f32.mxu1 %v2740_v0  ;;  %2004 = vmatprep.subr.bf16.mxu0 %v2889_v62 }
  0x61   :  { %310 = vmatmul.mubr.f32.gmra.mrb[12].mxu0 %v186_v8  ;;  %2036 = vmatprep.subr.bf16.mxu1 %v2892_v4 }
  0x62   :  { %423 = vmatmul.mubr.f32.gmra.mrb[12].mxu1 %v186_v8  ;;  %2006 = vmatpush1.bf16.msra.mxu0 %v2898_v9 }
  0x63   :  { %2038 = vmatpush1.bf16.msra.mxu1 %v2902_v14  ;;  %315 = vmatprep.mubr.f32.mxu0 %v2740_v0 }
  0x64   :  { %428 = vmatprep.mubr.f32.mxu1 %v2740_v0  ;;  %2008 = vmatprep.subr.bf16.mxu0 %v2906_v18 }
  0x65   :  { %316 = vmatmul.mubr.f32.gmra.mrb[14].mxu0 %v187_v24  ;;  %2040 = vmatprep.subr.bf16.mxu1 %v2909_v22 }
  0x66   :  { %429 = vmatmul.mubr.f32.gmra.mrb[14].mxu1 %v187_v24  ;;  %2010 = vmatpush1.bf16.msra.mxu0 %v2915_v25 }
  0x67   :  { %2042 = vmatpush1.bf16.msra.mxu1 %v2919_v27  ;;  %537 = vmatprep.mubr.f32.mxu0 %v2740_v0 }
  0x68   :  { %608 = vmatprep.mubr.f32.mxu1 %v2740_v0  ;;  %2044 = vmatprep.subr.bf16.mxu0 %v2792_v38 }
  0x69   :  { %538 = vmatmul.mubr.f32.vlgmr.msra.gmra.mrb[0].mxu0 %v2740_v0  ;;  %2076 = vmatprep.subr.bf16.mxu1 %v2794_v41 }
  0x6a   :  { %609 = vmatmul.mubr.f32.vlgmr.msra.gmra.mrb[0].mxu1 %v2740_v0  ;;  %2046 = vmatpush1.bf16.msra.mxu0 %v2799_v47 }
  0x6b   :  { %2078 = vmatpush1.bf16.msra.mxu1 %v2802_v50  ;;  %2048 = vmatprep.subr.bf16.mxu0 %v2805_v53 }
  0x6c   :  { %2080 = vmatprep.subr.bf16.mxu1 %v2807_v56  ;;  %712 = vmatprep.mubr.f32.mxu0 %v2740_v0 }
  0x6d   :  { %783 = vmatprep.mubr.f32.mxu1 %v2740_v0 }
  0x6e   :  { %2050 = vmatpush1.bf16.msra.mxu0 %v2813_v60 }
  0x6f   :  { %2082 = vmatpush1.bf16.msra.mxu1 %v2817_v63  ;;  %2052 = vmatprep.subr.bf16.mxu0 %v2821_v3 }
  0x70   :  { %2084 = vmatprep.subr.bf16.mxu1 %v2824_v6 }
  0x72   :  { %2054 = vmatpush1.bf16.msra.mxu0 %v2830_v10 }
  0x73   :  { %2086 = vmatpush1.bf16.msra.mxu1 %v2834_v13  ;;  %2056 = vmatprep.subr.bf16.mxu0 %v2838_v16 }
  0x74   :  { %2088 = vmatprep.subr.bf16.mxu1 %v2841_v19 }
  0x76   :  { %2058 = vmatpush1.bf16.msra.mxu0 %v2847_v23 }
  0x77   :  { %2090 = vmatpush1.bf16.msra.mxu1 %v2851_v26  ;;  %2060 = vmatprep.subr.bf16.mxu0 %v2855_v29 }
  0x78   :  { %2092 = vmatprep.subr.bf16.mxu1 %v2858_v32 }
  0x7a   :  { %2062 = vmatpush1.bf16.msra.mxu0 %v2864_v36 }
  0x7b   :  { %2094 = vmatpush1.bf16.msra.mxu1 %v2868_v40  ;;  %2064 = vmatprep.subr.bf16.mxu0 %v2872_v44 }
  0x7c   :  { %2096 = vmatprep.subr.bf16.mxu1 %v2875_v48 }
  0x7e   :  { %2066 = vmatpush1.bf16.msra.mxu0 %v2881_v54 }
  0x7f   :  { %2098 = vmatpush1.bf16.msra.mxu1 %v2885_v58  ;;  %2068 = vmatprep.subr.bf16.mxu0 %v2889_v62 }
  0x80   :  { %2100 = vmatprep.subr.bf16.mxu1 %v2892_v4 }
  0x82   :  { %2070 = vmatpush1.bf16.msra.mxu0 %v2898_v9 }
  0x83   :  { %2102 = vmatpush1.bf16.msra.mxu1 %v2902_v14  ;;  %2072 = vmatprep.subr.bf16.mxu0 %v2906_v18 }
  0x84   :  { %2104 = vmatprep.subr.bf16.mxu1 %v2909_v22 }
  0x86   :  { %2074 = vmatpush1.bf16.msra.mxu0 %v2915_v25 }
  0x87   :  { %2106 = vmatpush1.bf16.msra.mxu1 %v2919_v27  ;;  %2108 = vmatprep.subr.bf16.mxu0 %v2792_v38 }
  0x88   :  { %2140 = vmatprep.subr.bf16.mxu1 %v2794_v41 }
 0x13c   :  { %v539_v39 = vpop.f32.mrb[0].mxu0 }
 0x13d   :  { %v2491_v43 = vadd.f32 %v539_v39, %v2969_v35  ;;  %v610_v45 = vpop.f32.mrb[0].mxu1  ;;  %v541_v46 = vpop.f32.mrb[1].mxu0 }
 0x13e   :  { %v2492_v49 = vadd.f32 %v541_v46, %v2971_v37  ;;  %v612_v51 = vpop.f32.mrb[1].mxu1  ;;  %v2507_v5 = vadd.f32 %v610_v45, %v2978_v1 }
 0x13f   :  { %v1884_v52 = vmul.f32 -1.442695, %v2491_v43  ;;  %v2508_v61 = vadd.f32 %v612_v51, %v2975_v57 }
 0x140   :  { %v1885_v55 = vmul.f32 -1.442695, %v2492_v49 }
 0x141   :  { %2560 = vpow2.f32 %v1884_v52  ;;  %v1886_v2 = vmul.f32 -1.442695, %v2508_v61 }
 0x142   :  { %2562 = vpow2.f32 %v1885_v55 }
 0x143   :  { %2564 = vpow2.f32 %v1886_v2 }
 0x144   :  { %2566 = vtanh.f32 %v2507_v5 }
 0x14b   :  { %v2561_v7 = vpop.eup %2560 }
 0x14c   :  { %v2563_v8 = vpop.eup %2562  ;;  %v622_v11 = vadd.f32 1.0, %v2561_v7 }
 0x14d   :  { %v628_v12 = vadd.f32 1.0, %v2563_v8  ;;  %v2565_v15 = vpop.eup %2564 }
 0x14e   :  { %2568 = vrcp.f32 %v622_v11  ;;  %v2567_v17 = vpop.eup %2566  ;;  %v635_v28 = vadd.f32 1.0, %v2565_v15 }
 0x14f   :  { %2570 = vrcp.f32 %v628_v12 }
 0x150   :  { %2572 = vrcp.f32 %v635_v28 }
 0x158   :  { %v2569_v20 = vpop.eup %2568 }
 0x159   :  { %v2571_v21 = vpop.eup %2570  ;;  %v639_v24 = vmul.f32 %v2569_v20, %v2567_v17 }
 0x15a   :  { %v638_v30 = vmul.f32 0.0, %v2571_v21  ;;  %v2573_v33 = vpop.eup %2572 }
 0x15c   :  { %v2981_v31 = vadd.f32 %v639_v24, %v638_v30 }
 0x15e   :  { %2574 = vtanh.f32 %v2981_v31 }
 0x168   :  { %v2575_v34 = vpop.eup %2574 }
 0x169   :  { %v642_v39 = vmul.f32 %v2575_v34, %v2573_v33 }
 0x16b   :  { %643 = vst [vmem:[%s3263_s4] sm:$0xff] %v642_v39  ;;  %713 = vmatmul.mubr.f32.vlgmr.msra.gmra.mrb[2].mxu0 %v642_v39  ;;  %784 = vmatmul.mubr.f32.vlgmr.msra.gmra.mrb[2].mxu1 %v642_v39 }
 0x16c   :  { %2110 = vmatpush1.bf16.msra.mxu0 %v2799_v47  ;;  %2142 = vmatpush1.bf16.msra.mxu1 %v2802_v50 }
 0x16d   :  { %2112 = vmatprep.subr.bf16.mxu0 %v2805_v53  ;;  %2144 = vmatprep.subr.bf16.mxu1 %v2807_v56 }
 0x16e   :  { %888 = vmatprep.mubr.f32.mxu0 %v2740_v0  ;;  %959 = vmatprep.mubr.f32.mxu1 %v2740_v0 }
 0x170   :  { %2114 = vmatpush1.bf16.msra.mxu0 %v2813_v60  ;;  %2146 = vmatpush1.bf16.msra.mxu1 %v2817_v63 }
 0x171   :  { %2116 = vmatprep.subr.bf16.mxu0 %v2821_v3  ;;  %2148 = vmatprep.subr.bf16.mxu1 %v2824_v6 }
 0x174   :  { %2118 = vmatpush1.bf16.msra.mxu0 %v2830_v10  ;;  %2150 = vmatpush1.bf16.msra.mxu1 %v2834_v13 }
 0x175   :  { %2120 = vmatprep.subr.bf16.mxu0 %v2838_v16  ;;  %2152 = vmatprep.subr.bf16.mxu1 %v2841_v19 }
 0x178   :  { %2122 = vmatpush1.bf16.msra.mxu0 %v2847_v23  ;;  %2154 = vmatpush1.bf16.msra.mxu1 %v2851_v26 }
 0x179   :  { %2124 = vmatprep.subr.bf16.mxu0 %v2855_v29  ;;  %2156 = vmatprep.subr.bf16.mxu1 %v2858_v32 }
 0x17c   :  { %2126 = vmatpush1.bf16.msra.mxu0 %v2864_v36  ;;  %2158 = vmatpush1.bf16.msra.mxu1 %v2868_v40 }
 0x17d   :  { %2128 = vmatprep.subr.bf16.mxu0 %v2872_v44  ;;  %2160 = vmatprep.subr.bf16.mxu1 %v2875_v48 }
 0x180   :  { %2130 = vmatpush1.bf16.msra.mxu0 %v2881_v54  ;;  %2162 = vmatpush1.bf16.msra.mxu1 %v2885_v58 }
 0x181   :  { %2132 = vmatprep.subr.bf16.mxu0 %v2889_v62  ;;  %2164 = vmatprep.subr.bf16.mxu1 %v2892_v4 }
 0x184   :  { %2134 = vmatpush1.bf16.msra.mxu0 %v2898_v9  ;;  %2166 = vmatpush1.bf16.msra.mxu1 %v2902_v14 }
 0x185   :  { %2136 = vmatprep.subr.bf16.mxu0 %v2906_v18  ;;  %2168 = vmatprep.subr.bf16.mxu1 %v2909_v22 }
 0x188   :  { %2138 = vmatpush1.bf16.msra.mxu0 %v2915_v25  ;;  %2170 = vmatpush1.bf16.msra.mxu1 %v2919_v27 }
 0x189   :  { %2172 = vmatprep.subr.bf16.mxu0 %v2792_v38  ;;  %2204 = vmatprep.subr.bf16.mxu1 %v2794_v41 }
 0x23e   :  { %v714_v42 = vpop.f32.mrb[2].mxu0  ;;  %v785_v43 = vpop.f32.mrb[2].mxu1 }
 0x23f   :  { %v2493_v45 = vadd.f32 %v714_v42, %v2969_v35  ;;  %v716_v46 = vpop.f32.mrb[3].mxu0  ;;  %v787_v49 = vpop.f32.mrb[3].mxu1  ;;  %v2509_v2 = vadd.f32 %v785_v43, %v2978_v1 }
 0x240   :  { %v2494_v51 = vadd.f32 %v716_v46, %v2971_v37  ;;  %v2510_v59 = vadd.f32 %v787_v49, %v2975_v57 }
 0x241   :  { %v1887_v52 = vmul.f32 -1.442695, %v2493_v45 }
 0x242   :  { %v1888_v55 = vmul.f32 -1.442695, %v2494_v51  ;;  %v1889_v61 = vmul.f32 -1.442695, %v2510_v59 }
 0x243   :  { %2576 = vpow2.f32 %v1887_v52 }
 0x244   :  { %2578 = vpow2.f32 %v1888_v55 }
 0x245   :  { %2580 = vpow2.f32 %v1889_v61 }
 0x246   :  { %2582 = vtanh.f32 %v2509_v2 }
 0x24d   :  { %v2577_v5 = vpop.eup %2576 }
 0x24e   :  { %v2579_v7 = vpop.eup %2578  ;;  %v797_v8 = vadd.f32 1.0, %v2577_v5 }
 0x24f   :  { %v803_v11 = vadd.f32 1.0, %v2579_v7  ;;  %v2581_v12 = vpop.eup %2580 }
 0x250   :  { %2584 = vrcp.f32 %v797_v8  ;;  %v2583_v15 = vpop.eup %2582  ;;  %v810_v24 = vadd.f32 1.0, %v2581_v12 }
 0x251   :  { %2586 = vrcp.f32 %v803_v11 }
 0x252   :  { %2588 = vrcp.f32 %v810_v24 }
 0x25a   :  { %v2585_v17 = vpop.eup %2584 }
 0x25b   :  { %v2587_v20 = vpop.eup %2586  ;;  %v814_v21 = vmul.f32 %v2585_v17, %v2583_v15 }
 0x25c   :  { %v813_v28 = vmul.f32 %v2587_v20, %v2981_v31  ;;  %v2589_v33 = vpop.eup %2588 }
 0x25e   :  { %v3026_v30 = vadd.f32 %v814_v21, %v813_v28 }
 0x260   :  { %2590 = vtanh.f32 %v3026_v30 }
 0x26a   :  { %v2591_v34 = vpop.eup %2590 }
 0x26b   :  { %v817_v39 = vmul.f32 %v2591_v34, %v2589_v33 }
 0x26d   :  { %1890 = vst [vmem:[%s3263_s4 + $0x8] sm:$0xff] %v817_v39  ;;  %889 = vmatmul.mubr.f32.vlgmr.msra.gmra.mrb[4].mxu0 %v817_v39  ;;  %960 = vmatmul.mubr.f32.vlgmr.msra.gmra.mrb[4].mxu1 %v817_v39 }
 0x26e   :  { %2174 = vmatpush1.bf16.msra.mxu0 %v2799_v47  ;;  %2206 = vmatpush1.bf16.msra.mxu1 %v2802_v50 }
 0x26f   :  { %2176 = vmatprep.subr.bf16.mxu0 %v2805_v53  ;;  %2208 = vmatprep.subr.bf16.mxu1 %v2807_v56 }
 0x270   :  { %1064 = vmatprep.mubr.f32.mxu0 %v2740_v0  ;;  %1135 = vmatprep.mubr.f32.mxu1 %v2740_v0 }
 0x272   :  { %2178 = vmatpush1.bf16.msra.mxu0 %v2813_v60  ;;  %2210 = vmatpush1.bf16.msra.mxu1 %v2817_v63 }
 0x273   :  { %2180 = vmatprep.subr.bf16.mxu0 %v2821_v3  ;;  %2212 = vmatprep.subr.bf16.mxu1 %v2824_v6 }
 0x276   :  { %2182 = vmatpush1.bf16.msra.mxu0 %v2830_v10  ;;  %2214 = vmatpush1.bf16.msra.mxu1 %v2834_v13 }
 0x277   :  { %2184 = vmatprep.subr.bf16.mxu0 %v2838_v16  ;;  %2216 = vmatprep.subr.bf16.mxu1 %v2841_v19 }
 0x27a   :  { %2186 = vmatpush1.bf16.msra.mxu0 %v2847_v23  ;;  %2218 = vmatpush1.bf16.msra.mxu1 %v2851_v26 }
 0x27b   :  { %2188 = vmatprep.subr.bf16.mxu0 %v2855_v29  ;;  %2220 = vmatprep.subr.bf16.mxu1 %v2858_v32 }
 0x27e   :  { %2190 = vmatpush1.bf16.msra.mxu0 %v2864_v36  ;;  %2222 = vmatpush1.bf16.msra.mxu1 %v2868_v40 }
 0x27f   :  { %2192 = vmatprep.subr.bf16.mxu0 %v2872_v44  ;;  %2224 = vmatprep.subr.bf16.mxu1 %v2875_v48 }
 0x282   :  { %2194 = vmatpush1.bf16.msra.mxu0 %v2881_v54  ;;  %2226 = vmatpush1.bf16.msra.mxu1 %v2885_v58 }
 0x283   :  { %2196 = vmatprep.subr.bf16.mxu0 %v2889_v62  ;;  %2228 = vmatprep.subr.bf16.mxu1 %v2892_v4 }
 0x286   :  { %2198 = vmatpush1.bf16.msra.mxu0 %v2898_v9  ;;  %2230 = vmatpush1.bf16.msra.mxu1 %v2902_v14 }
 0x287   :  { %2200 = vmatprep.subr.bf16.mxu0 %v2906_v18  ;;  %2232 = vmatprep.subr.bf16.mxu1 %v2909_v22 }
 0x28a   :  { %2202 = vmatpush1.bf16.msra.mxu0 %v2915_v25  ;;  %2234 = vmatpush1.bf16.msra.mxu1 %v2919_v27 }
 0x28b   :  { %2236 = vmatprep.subr.bf16.mxu0 %v2792_v38  ;;  %2268 = vmatprep.subr.bf16.mxu1 %v2794_v41 }
 0x340   :  { %v890_v31 = vpop.f32.mrb[4].mxu0  ;;  %v961_v42 = vpop.f32.mrb[4].mxu1 }
 0x341   :  { %v2495_v43 = vadd.f32 %v890_v31, %v2969_v35  ;;  %v892_v45 = vpop.f32.mrb[5].mxu0  ;;  %v963_v46 = vpop.f32.mrb[5].mxu1  ;;  %v2511_v61 = vadd.f32 %v961_v42, %v2978_v1 }
 0x342   :  { %v2496_v49 = vadd.f32 %v892_v45, %v2971_v37  ;;  %v2512_v55 = vadd.f32 %v963_v46, %v2975_v57 }
 0x343   :  { %v1891_v51 = vmul.f32 -1.442695, %v2495_v43 }
 0x344   :  { %v1892_v52 = vmul.f32 -1.442695, %v2496_v49  ;;  %v1893_v59 = vmul.f32 -1.442695, %v2512_v55 }
 0x345   :  { %2592 = vpow2.f32 %v1891_v51 }
 0x346   :  { %2594 = vpow2.f32 %v1892_v52 }
 0x347   :  { %2596 = vpow2.f32 %v1893_v59 }
 0x348   :  { %2598 = vtanh.f32 %v2511_v61 }
 0x34f   :  { %v2593_v2 = vpop.eup %2592 }
 0x350   :  { %v2595_v5 = vpop.eup %2594  ;;  %v973_v7 = vadd.f32 1.0, %v2593_v2 }
 0x351   :  { %v979_v8 = vadd.f32 1.0, %v2595_v5  ;;  %v2597_v11 = vpop.eup %2596 }
 0x352   :  { %2600 = vrcp.f32 %v973_v7  ;;  %v2599_v12 = vpop.eup %2598  ;;  %v986_v21 = vadd.f32 1.0, %v2597_v11 }
 0x353   :  { %2602 = vrcp.f32 %v979_v8 }
 0x354   :  { %2604 = vrcp.f32 %v986_v21 }
 0x35c   :  { %v2601_v15 = vpop.eup %2600 }
 0x35d   :  { %v2603_v17 = vpop.eup %2602  ;;  %v990_v20 = vmul.f32 %v2601_v15, %v2599_v12 }
 0x35e   :  { %v989_v24 = vmul.f32 %v2603_v17, %v3026_v30  ;;  %v2605_v33 = vpop.eup %2604 }
 0x360   :  { %v3071_v28 = vadd.f32 %v990_v20, %v989_v24 }
 0x362   :  { %2606 = vtanh.f32 %v3071_v28 }
 0x36c   :  { %v2607_v34 = vpop.eup %2606 }
 0x36d   :  { %v993_v39 = vmul.f32 %v2607_v34, %v2605_v33 }
 0x36f   :  { %1894 = vst [vmem:[%s3263_s4 + $0x10] sm:$0xff] %v993_v39  ;;  %1065 = vmatmul.mubr.f32.vlgmr.msra.gmra.mrb[6].mxu0 %v993_v39  ;;  %1136 = vmatmul.mubr.f32.vlgmr.msra.gmra.mrb[6].mxu1 %v993_v39 }
 0x370   :  { %2238 = vmatpush1.bf16.msra.mxu0 %v2799_v47  ;;  %2270 = vmatpush1.bf16.msra.mxu1 %v2802_v50 }
 0x371   :  { %2240 = vmatprep.subr.bf16.mxu0 %v2805_v53  ;;  %2272 = vmatprep.subr.bf16.mxu1 %v2807_v56 }
 0x372   :  { %1240 = vmatprep.mubr.f32.mxu0 %v2740_v0  ;;  %1311 = vmatprep.mubr.f32.mxu1 %v2740_v0 }
 0x374   :  { %2242 = vmatpush1.bf16.msra.mxu0 %v2813_v60  ;;  %2274 = vmatpush1.bf16.msra.mxu1 %v2817_v63 }
 0x375   :  { %2244 = vmatprep.subr.bf16.mxu0 %v2821_v3  ;;  %2276 = vmatprep.subr.bf16.mxu1 %v2824_v6 }
 0x378   :  { %2246 = vmatpush1.bf16.msra.mxu0 %v2830_v10  ;;  %2278 = vmatpush1.bf16.msra.mxu1 %v2834_v13 }
 0x379   :  { %2248 = vmatprep.subr.bf16.mxu0 %v2838_v16  ;;  %2280 = vmatprep.subr.bf16.mxu1 %v2841_v19 }
 0x37c   :  { %2250 = vmatpush1.bf16.msra.mxu0 %v2847_v23  ;;  %2282 = vmatpush1.bf16.msra.mxu1 %v2851_v26 }
 0x37d   :  { %2252 = vmatprep.subr.bf16.mxu0 %v2855_v29  ;;  %2284 = vmatprep.subr.bf16.mxu1 %v2858_v32 }
 0x380   :  { %2254 = vmatpush1.bf16.msra.mxu0 %v2864_v36  ;;  %2286 = vmatpush1.bf16.msra.mxu1 %v2868_v40 }
 0x381   :  { %2256 = vmatprep.subr.bf16.mxu0 %v2872_v44  ;;  %2288 = vmatprep.subr.bf16.mxu1 %v2875_v48 }
 0x384   :  { %2258 = vmatpush1.bf16.msra.mxu0 %v2881_v54  ;;  %2290 = vmatpush1.bf16.msra.mxu1 %v2885_v58 }
 0x385   :  { %2260 = vmatprep.subr.bf16.mxu0 %v2889_v62  ;;  %2292 = vmatprep.subr.bf16.mxu1 %v2892_v4 }
 0x388   :  { %2262 = vmatpush1.bf16.msra.mxu0 %v2898_v9  ;;  %2294 = vmatpush1.bf16.msra.mxu1 %v2902_v14 }
 0x389   :  { %2264 = vmatprep.subr.bf16.mxu0 %v2906_v18  ;;  %2296 = vmatprep.subr.bf16.mxu1 %v2909_v22 }
 0x38c   :  { %2266 = vmatpush1.bf16.msra.mxu0 %v2915_v25  ;;  %2298 = vmatpush1.bf16.msra.mxu1 %v2919_v27 }
 0x38d   :  { %2300 = vmatprep.subr.bf16.mxu0 %v2792_v38  ;;  %2332 = vmatprep.subr.bf16.mxu1 %v2794_v41 }
 0x442   :  { %v1066_v30 = vpop.f32.mrb[6].mxu0  ;;  %v1137_v31 = vpop.f32.mrb[6].mxu1 }
 0x443   :  { %v2497_v42 = vadd.f32 %v1066_v30, %v2969_v35  ;;  %v1068_v43 = vpop.f32.mrb[7].mxu0  ;;  %v1139_v45 = vpop.f32.mrb[7].mxu1  ;;  %v2513_v59 = vadd.f32 %v1137_v31, %v2978_v1 }
 0x444   :  { %v2498_v46 = vadd.f32 %v1068_v43, %v2971_v37  ;;  %v2514_v52 = vadd.f32 %v1139_v45, %v2975_v57 }
 0x445   :  { %v1895_v49 = vmul.f32 -1.442695, %v2497_v42 }
 0x446   :  { %v1896_v51 = vmul.f32 -1.442695, %v2498_v46  ;;  %v1897_v55 = vmul.f32 -1.442695, %v2514_v52 }
 0x447   :  { %2608 = vpow2.f32 %v1895_v49 }
 0x448   :  { %2610 = vpow2.f32 %v1896_v51 }
 0x449   :  { %2612 = vpow2.f32 %v1897_v55 }
 0x44a   :  { %2614 = vtanh.f32 %v2513_v59 }
 0x451   :  { %v2609_v61 = vpop.eup %2608 }
 0x452   :  { %v2611_v2 = vpop.eup %2610  ;;  %v1149_v5 = vadd.f32 1.0, %v2609_v61 }
 0x453   :  { %v1155_v7 = vadd.f32 1.0, %v2611_v2  ;;  %v2613_v8 = vpop.eup %2612 }
 0x454   :  { %2616 = vrcp.f32 %v1149_v5  ;;  %v2615_v11 = vpop.eup %2614  ;;  %v1162_v20 = vadd.f32 1.0, %v2613_v8 }
 0x455   :  { %2618 = vrcp.f32 %v1155_v7 }
 0x456   :  { %2620 = vrcp.f32 %v1162_v20 }
 0x45e   :  { %v2617_v12 = vpop.eup %2616 }
 0x45f   :  { %v2619_v15 = vpop.eup %2618  ;;  %v1166_v17 = vmul.f32 %v2617_v12, %v2615_v11 }
 0x460   :  { %v1165_v21 = vmul.f32 %v2619_v15, %v3071_v28  ;;  %v2621_v33 = vpop.eup %2620 }
 0x462   :  { %v3116_v24 = vadd.f32 %v1166_v17, %v1165_v21 }
 0x464   :  { %2622 = vtanh.f32 %v3116_v24 }
 0x46e   :  { %v2623_v34 = vpop.eup %2622 }
 0x46f   :  { %v1169_v39 = vmul.f32 %v2623_v34, %v2621_v33 }
 0x471   :  { %1898 = vst [vmem:[%s3263_s4 + $0x18] sm:$0xff] %v1169_v39  ;;  %1241 = vmatmul.mubr.f32.vlgmr.msra.gmra.mrb[8].mxu0 %v1169_v39  ;;  %1312 = vmatmul.mubr.f32.vlgmr.msra.gmra.mrb[8].mxu1 %v1169_v39 }
 0x472   :  { %2302 = vmatpush1.bf16.msra.mxu0 %v2799_v47  ;;  %2334 = vmatpush1.bf16.msra.mxu1 %v2802_v50 }
 0x473   :  { %2304 = vmatprep.subr.bf16.mxu0 %v2805_v53  ;;  %2336 = vmatprep.subr.bf16.mxu1 %v2807_v56 }
 0x474   :  { %1416 = vmatprep.mubr.f32.mxu0 %v2740_v0  ;;  %1487 = vmatprep.mubr.f32.mxu1 %v2740_v0 }
 0x476   :  { %2306 = vmatpush1.bf16.msra.mxu0 %v2813_v60  ;;  %2338 = vmatpush1.bf16.msra.mxu1 %v2817_v63 }
 0x477   :  { %2308 = vmatprep.subr.bf16.mxu0 %v2821_v3  ;;  %2340 = vmatprep.subr.bf16.mxu1 %v2824_v6 }
 0x47a   :  { %2310 = vmatpush1.bf16.msra.mxu0 %v2830_v10  ;;  %2342 = vmatpush1.bf16.msra.mxu1 %v2834_v13 }
 0x47b   :  { %2312 = vmatprep.subr.bf16.mxu0 %v2838_v16  ;;  %2344 = vmatprep.subr.bf16.mxu1 %v2841_v19 }
 0x47e   :  { %2314 = vmatpush1.bf16.msra.mxu0 %v2847_v23  ;;  %2346 = vmatpush1.bf16.msra.mxu1 %v2851_v26 }
 0x47f   :  { %2316 = vmatprep.subr.bf16.mxu0 %v2855_v29  ;;  %2348 = vmatprep.subr.bf16.mxu1 %v2858_v32 }
 0x482   :  { %2318 = vmatpush1.bf16.msra.mxu0 %v2864_v36  ;;  %2350 = vmatpush1.bf16.msra.mxu1 %v2868_v40 }
 0x483   :  { %2320 = vmatprep.subr.bf16.mxu0 %v2872_v44  ;;  %2352 = vmatprep.subr.bf16.mxu1 %v2875_v48 }
 0x486   :  { %2322 = vmatpush1.bf16.msra.mxu0 %v2881_v54  ;;  %2354 = vmatpush1.bf16.msra.mxu1 %v2885_v58 }
 0x487   :  { %2324 = vmatprep.subr.bf16.mxu0 %v2889_v62  ;;  %2356 = vmatprep.subr.bf16.mxu1 %v2892_v4 }
 0x48a   :  { %2326 = vmatpush1.bf16.msra.mxu0 %v2898_v9  ;;  %2358 = vmatpush1.bf16.msra.mxu1 %v2902_v14 }
 0x48b   :  { %2328 = vmatprep.subr.bf16.mxu0 %v2906_v18  ;;  %2360 = vmatprep.subr.bf16.mxu1 %v2909_v22 }
 0x48e   :  { %2330 = vmatpush1.bf16.msra.mxu0 %v2915_v25  ;;  %2362 = vmatpush1.bf16.msra.mxu1 %v2919_v27 }
 0x48f   :  { %2364 = vmatprep.subr.bf16.mxu0 %v2792_v38  ;;  %2396 = vmatprep.subr.bf16.mxu1 %v2794_v41 }
 0x544   :  { %v1242_v28 = vpop.f32.mrb[8].mxu0  ;;  %v1313_v30 = vpop.f32.mrb[8].mxu1 }
 0x545   :  { %v2499_v31 = vadd.f32 %v1242_v28, %v2969_v35  ;;  %v1244_v42 = vpop.f32.mrb[9].mxu0  ;;  %v1315_v43 = vpop.f32.mrb[9].mxu1  ;;  %v2515_v55 = vadd.f32 %v1313_v30, %v2978_v1 }
 0x546   :  { %v2500_v45 = vadd.f32 %v1244_v42, %v2971_v37  ;;  %v2516_v51 = vadd.f32 %v1315_v43, %v2975_v57 }
 0x547   :  { %v1899_v46 = vmul.f32 -1.442695, %v2499_v31 }
 0x548   :  { %v1900_v49 = vmul.f32 -1.442695, %v2500_v45  ;;  %v1901_v52 = vmul.f32 -1.442695, %v2516_v51 }
 0x549   :  { %2624 = vpow2.f32 %v1899_v46 }
 0x54a   :  { %2626 = vpow2.f32 %v1900_v49 }
 0x54b   :  { %2628 = vpow2.f32 %v1901_v52 }
 0x54c   :  { %2630 = vtanh.f32 %v2515_v55 }
 0x553   :  { %v2625_v59 = vpop.eup %2624 }
 0x554   :  { %v2627_v61 = vpop.eup %2626  ;;  %v1325_v2 = vadd.f32 1.0, %v2625_v59 }
 0x555   :  { %v1331_v5 = vadd.f32 1.0, %v2627_v61  ;;  %v2629_v7 = vpop.eup %2628 }
 0x556   :  { %2632 = vrcp.f32 %v1325_v2  ;;  %v2631_v8 = vpop.eup %2630  ;;  %v1338_v17 = vadd.f32 1.0, %v2629_v7 }
 0x557   :  { %2634 = vrcp.f32 %v1331_v5 }
 0x558   :  { %2636 = vrcp.f32 %v1338_v17 }
 0x560   :  { %v2633_v11 = vpop.eup %2632 }
 0x561   :  { %v2635_v12 = vpop.eup %2634  ;;  %v1342_v15 = vmul.f32 %v2633_v11, %v2631_v8 }
 0x562   :  { %v1341_v20 = vmul.f32 %v2635_v12, %v3116_v24  ;;  %v2637_v33 = vpop.eup %2636 }
 0x564   :  { %v3161_v21 = vadd.f32 %v1342_v15, %v1341_v20 }
 0x566   :  { %2638 = vtanh.f32 %v3161_v21 }
 0x570   :  { %v2639_v34 = vpop.eup %2638 }
 0x571   :  { %v1345_v39 = vmul.f32 %v2639_v34, %v2637_v33 }
 0x573   :  { %1902 = vst [vmem:[%s3263_s4 + $0x20] sm:$0xff] %v1345_v39  ;;  %1417 = vmatmul.mubr.f32.vlgmr.msra.gmra.mrb[10].mxu0 %v1345_v39  ;;  %1488 = vmatmul.mubr.f32.vlgmr.msra.gmra.mrb[10].mxu1 %v1345_v39 }
 0x574   :  { %2366 = vmatpush1.bf16.msra.mxu0 %v2799_v47  ;;  %2398 = vmatpush1.bf16.msra.mxu1 %v2802_v50 }
 0x575   :  { %2368 = vmatprep.subr.bf16.mxu0 %v2805_v53  ;;  %2400 = vmatprep.subr.bf16.mxu1 %v2807_v56 }
 0x576   :  { %1592 = vmatprep.mubr.f32.mxu0 %v2740_v0  ;;  %1663 = vmatprep.mubr.f32.mxu1 %v2740_v0 }
 0x578   :  { %2370 = vmatpush1.bf16.msra.mxu0 %v2813_v60  ;;  %2402 = vmatpush1.bf16.msra.mxu1 %v2817_v63 }
 0x579   :  { %2372 = vmatprep.subr.bf16.mxu0 %v2821_v3  ;;  %2404 = vmatprep.subr.bf16.mxu1 %v2824_v6 }
 0x57c   :  { %2374 = vmatpush1.bf16.msra.mxu0 %v2830_v10  ;;  %2406 = vmatpush1.bf16.msra.mxu1 %v2834_v13 }
 0x57d   :  { %2376 = vmatprep.subr.bf16.mxu0 %v2838_v16  ;;  %2408 = vmatprep.subr.bf16.mxu1 %v2841_v19 }
 0x580   :  { %2378 = vmatpush1.bf16.msra.mxu0 %v2847_v23  ;;  %2410 = vmatpush1.bf16.msra.mxu1 %v2851_v26 }
 0x581   :  { %2380 = vmatprep.subr.bf16.mxu0 %v2855_v29  ;;  %2412 = vmatprep.subr.bf16.mxu1 %v2858_v32 }
 0x584   :  { %2382 = vmatpush1.bf16.msra.mxu0 %v2864_v36  ;;  %2414 = vmatpush1.bf16.msra.mxu1 %v2868_v40 }
 0x585   :  { %2384 = vmatprep.subr.bf16.mxu0 %v2872_v44  ;;  %2416 = vmatprep.subr.bf16.mxu1 %v2875_v48 }
 0x588   :  { %2386 = vmatpush1.bf16.msra.mxu0 %v2881_v54  ;;  %2418 = vmatpush1.bf16.msra.mxu1 %v2885_v58 }
 0x589   :  { %2388 = vmatprep.subr.bf16.mxu0 %v2889_v62  ;;  %2420 = vmatprep.subr.bf16.mxu1 %v2892_v4 }
 0x58c   :  { %2390 = vmatpush1.bf16.msra.mxu0 %v2898_v9  ;;  %2422 = vmatpush1.bf16.msra.mxu1 %v2902_v14 }
 0x58d   :  { %2392 = vmatprep.subr.bf16.mxu0 %v2906_v18  ;;  %2424 = vmatprep.subr.bf16.mxu1 %v2909_v22 }
 0x590   :  { %2394 = vmatpush1.bf16.msra.mxu0 %v2915_v25  ;;  %2426 = vmatpush1.bf16.msra.mxu1 %v2919_v27 }
 0x591   :  { %2428 = vmatprep.subr.bf16.mxu0 %v2792_v38  ;;  %2460 = vmatprep.subr.bf16.mxu1 %v2794_v41 }
 0x646   :  { %v1418_v24 = vpop.f32.mrb[10].mxu0  ;;  %v1489_v28 = vpop.f32.mrb[10].mxu1 }
 0x647   :  { %v2501_v30 = vadd.f32 %v1418_v24, %v2969_v35  ;;  %v1420_v31 = vpop.f32.mrb[11].mxu0  ;;  %v1491_v42 = vpop.f32.mrb[11].mxu1  ;;  %v2517_v52 = vadd.f32 %v1489_v28, %v2978_v1 }
 0x648   :  { %v2502_v43 = vadd.f32 %v1420_v31, %v2971_v37  ;;  %v2518_v49 = vadd.f32 %v1491_v42, %v2975_v57 }
 0x649   :  { %v1903_v45 = vmul.f32 -1.442695, %v2501_v30 }
 0x64a   :  { %v1904_v46 = vmul.f32 -1.442695, %v2502_v43  ;;  %v1905_v51 = vmul.f32 -1.442695, %v2518_v49 }
 0x64b   :  { %2640 = vpow2.f32 %v1903_v45 }
 0x64c   :  { %2642 = vpow2.f32 %v1904_v46 }
 0x64d   :  { %2644 = vpow2.f32 %v1905_v51 }
 0x64e   :  { %2646 = vtanh.f32 %v2517_v52 }
 0x655   :  { %v2641_v38 = vpop.eup %2640 }
 0x656   :  { %v2643_v55 = vpop.eup %2642  ;;  %v1501_v41 = vadd.f32 1.0, %v2641_v38 }
 0x657   :  { %v1507_v59 = vadd.f32 1.0, %v2643_v55  ;;  %v2645_v61 = vpop.eup %2644 }
 0x658   :  { %2648 = vrcp.f32 %v1501_v41  ;;  %v2647_v2 = vpop.eup %2646  ;;  %v1514_v11 = vadd.f32 1.0, %v2645_v61 }
 0x659   :  { %2650 = vrcp.f32 %v1507_v59 }
 0x65a   :  { %2652 = vrcp.f32 %v1514_v11 }
 0x662   :  { %v2649_v5 = vpop.eup %2648 }
 0x663   :  { %v2651_v7 = vpop.eup %2650  ;;  %v1518_v8 = vmul.f32 %v2649_v5, %v2647_v2 }
 0x664   :  { %v1517_v12 = vmul.f32 %v2651_v7, %v3161_v21  ;;  %v2653_v17 = vpop.eup %2652 }
 0x666   :  { %v3206_v15 = vadd.f32 %v1518_v8, %v1517_v12 }
 0x668   :  { %2654 = vtanh.f32 %v3206_v15 }
 0x672   :  { %v2655_v20 = vpop.eup %2654 }
 0x673   :  { %v1521_v33 = vmul.f32 %v2655_v20, %v2653_v17 }
 0x675   :  { %1906 = vst [vmem:[%s3263_s4 + $0x28] sm:$0xff] %v1521_v33  ;;  %1593 = vmatmul.mubr.f32.vlgmr.msra.gmra.mrb[12].mxu0 %v1521_v33  ;;  %1664 = vmatmul.mubr.f32.vlgmr.msra.gmra.mrb[12].mxu1 %v1521_v33 }
 0x676   :  { %2430 = vmatpush1.bf16.msra.mxu0 %v2799_v47  ;;  %2462 = vmatpush1.bf16.msra.mxu1 %v2802_v50 }
 0x677   :  { %2432 = vmatprep.subr.bf16.mxu0 %v2805_v53  ;;  %2464 = vmatprep.subr.bf16.mxu1 %v2807_v56 }
 0x678   :  { %1768 = vmatprep.mubr.f32.mxu0 %v2740_v0  ;;  %1839 = vmatprep.mubr.f32.mxu1 %v2740_v0 }
 0x67a   :  { %2434 = vmatpush1.bf16.msra.mxu0 %v2813_v60  ;;  %2466 = vmatpush1.bf16.msra.mxu1 %v2817_v63 }
 0x67b   :  { %2436 = vmatprep.subr.bf16.mxu0 %v2821_v3  ;;  %2468 = vmatprep.subr.bf16.mxu1 %v2824_v6 }
 0x67e   :  { %2438 = vmatpush1.bf16.msra.mxu0 %v2830_v10  ;;  %2470 = vmatpush1.bf16.msra.mxu1 %v2834_v13 }
 0x67f   :  { %2440 = vmatprep.subr.bf16.mxu0 %v2838_v16  ;;  %2472 = vmatprep.subr.bf16.mxu1 %v2841_v19 }
 0x682   :  { %2442 = vmatpush1.bf16.msra.mxu0 %v2847_v23  ;;  %2474 = vmatpush1.bf16.msra.mxu1 %v2851_v26 }
 0x683   :  { %2444 = vmatprep.subr.bf16.mxu0 %v2855_v29  ;;  %2476 = vmatprep.subr.bf16.mxu1 %v2858_v32 }
 0x686   :  { %2446 = vmatpush1.bf16.msra.mxu0 %v2864_v36  ;;  %2478 = vmatpush1.bf16.msra.mxu1 %v2868_v40 }
 0x687   :  { %2448 = vmatprep.subr.bf16.mxu0 %v2872_v44  ;;  %2480 = vmatprep.subr.bf16.mxu1 %v2875_v48 }
 0x68a   :  { %2450 = vmatpush1.bf16.msra.mxu0 %v2881_v54  ;;  %2482 = vmatpush1.bf16.msra.mxu1 %v2885_v58 }
 0x68b   :  { %2452 = vmatprep.subr.bf16.mxu0 %v2889_v62  ;;  %2484 = vmatprep.subr.bf16.mxu1 %v2892_v4 }
 0x68e   :  { %2454 = vmatpush1.bf16.msra.mxu0 %v2898_v9  ;;  %2486 = vmatpush1.bf16.msra.mxu1 %v2902_v14 }
 0x68f   :  { %2456 = vmatprep.subr.bf16.mxu0 %v2906_v18  ;;  %2488 = vmatprep.subr.bf16.mxu1 %v2909_v22 }
 0x692   :  { %2458 = vmatpush1.bf16.msra.mxu0 %v2915_v25  ;;  %2490 = vmatpush1.bf16.msra.mxu1 %v2919_v27 }
 0x748   :  { %v1594_v0 = vpop.f32.mrb[12].mxu0  ;;  %v1665_v47 = vpop.f32.mrb[12].mxu1 }
 0x749   :  { %v2503_v50 = vadd.f32 %v1594_v0, %v2969_v35  ;;  %v1596_v53 = vpop.f32.mrb[13].mxu0  ;;  %v1667_v56 = vpop.f32.mrb[13].mxu1  ;;  %v2519_v13 = vadd.f32 %v1665_v47, %v2978_v1 }
 0x74a   :  { %v2504_v60 = vadd.f32 %v1596_v53, %v2971_v37  ;;  %v2520_v6 = vadd.f32 %v1667_v56, %v2975_v57 }
 0x74b   :  { %v1907_v63 = vmul.f32 -1.442695, %v2503_v50 }
 0x74c   :  { %v1908_v3 = vmul.f32 -1.442695, %v2504_v60  ;;  %v1909_v10 = vmul.f32 -1.442695, %v2520_v6 }
 0x74d   :  { %2656 = vpow2.f32 %v1907_v63 }
 0x74e   :  { %2658 = vpow2.f32 %v1908_v3 }
 0x74f   :  { %2660 = vpow2.f32 %v1909_v10 }
 0x750   :  { %2662 = vtanh.f32 %v2519_v13 }
 0x757   :  { %v2657_v16 = vpop.eup %2656 }
 0x758   :  { %v2659_v19 = vpop.eup %2658  ;;  %v1677_v23 = vadd.f32 1.0, %v2657_v16 }
 0x759   :  { %v1683_v26 = vadd.f32 1.0, %v2659_v19  ;;  %v2661_v29 = vpop.eup %2660 }
 0x75a   :  { %2664 = vrcp.f32 %v1677_v23  ;;  %v2663_v32 = vpop.eup %2662  ;;  %v1690_v48 = vadd.f32 1.0, %v2661_v29 }
 0x75b   :  { %2666 = vrcp.f32 %v1683_v26 }
 0x75c   :  { %2668 = vrcp.f32 %v1690_v48 }
 0x764   :  { %v2665_v36 = vpop.eup %2664 }
 0x765   :  { %v2667_v40 = vpop.eup %2666  ;;  %v1694_v44 = vmul.f32 %v2665_v36, %v2663_v32 }
 0x766   :  { %v1693_v54 = vmul.f32 %v2667_v40, %v3206_v15  ;;  %v2669_v62 = vpop.eup %2668 }
 0x768   :  { %v1695_v58 = vadd.f32 %v1694_v44, %v1693_v54 }
 0x76a   :  { %2670 = vtanh.f32 %v1695_v58 }
 0x774   :  { %v2671_v4 = vpop.eup %2670 }
 0x775   :  { %v1697_v9 = vmul.f32 %v2671_v4, %v2669_v62 }
 0x777   :  { %1910 = vst [vmem:[%s3263_s4 + $0x30] sm:$0xff] %v1697_v9  ;;  %1769 = vmatmul.mubr.f32.vlgmr.msra.gmra.mrb[14].mxu0 %v1697_v9  ;;  %1840 = vmatmul.mubr.f32.vlgmr.msra.gmra.mrb[14].mxu1 %v1697_v9 }
 0x84a   :  { %v1770_v14 = vpop.f32.mrb[14].mxu0  ;;  %v1841_v18 = vpop.f32.mrb[14].mxu1 }
 0x84b   :  { %v2505_v22 = vadd.f32 %v1770_v14, %v2969_v35  ;;  %v1772_v25 = vpop.f32.mrb[15].mxu0  ;;  %v1843_v27 = vpop.f32.mrb[15].mxu1  ;;  %v2521_v30 = vadd.f32 %v1841_v18, %v2978_v1 }
 0x84c   :  { %v2506_v21 = vadd.f32 %v1772_v25, %v2971_v37  ;;  %v2522_v24 = vadd.f32 %v1843_v27, %v2975_v57 }
 0x84d   :  { %v1911_v34 = vmul.f32 -1.442695, %v2505_v22 }
 0x84e   :  { %v1912_v39 = vmul.f32 -1.442695, %v2506_v21  ;;  %v1913_v28 = vmul.f32 -1.442695, %v2522_v24 }
 0x84f   :  { %2672 = vpow2.f32 %v1911_v34 }
 0x850   :  { %2674 = vpow2.f32 %v1912_v39 }
 0x851   :  { %2676 = vpow2.f32 %v1913_v28 }
 0x852   :  { %2678 = vtanh.f32 %v2521_v30 }
 0x859   :  { %v2673_v31 = vpop.eup %2672 }
 0x85a   :  { %v2675_v42 = vpop.eup %2674  ;;  %v1853_v43 = vadd.f32 1.0, %v2673_v31 }
 0x85b   :  { %v1859_v45 = vadd.f32 1.0, %v2675_v42  ;;  %v2677_v35 = vpop.eup %2676 }
 0x85c   :  { %2680 = vrcp.f32 %v1853_v43  ;;  %v2679_v46 = vpop.eup %2678  ;;  %v1866_v52 = vadd.f32 1.0, %v2677_v35 }
 0x85d   :  { %2682 = vrcp.f32 %v1859_v45 }
 0x85e   :  { %2684 = vrcp.f32 %v1866_v52 }
 0x866   :  { %v2681_v37 = vpop.eup %2680 }
 0x867   :  { %v2683_v49 = vpop.eup %2682  ;;  %v1870_v51 = vmul.f32 %v2681_v37, %v2679_v46 }
 0x868   :  { %v1869_v38 = vmul.f32 %v2683_v49, %v1695_v58  ;;  %v2685_v57 = vpop.eup %2684 }
 0x86a   :  { %v1871_v55 = vadd.f32 %v1870_v51, %v1869_v38 }
 0x86c   :  { %2686 = vtanh.f32 %v1871_v55 }
 0x876   :  { %v2687_v1 = vpop.eup %2686 }
 0x877   :  { %v1873_v41 = vmul.f32 %v2687_v1, %v2685_v57 }
 0x879   :  { %1914 = vst [vmem:[%s3263_s4 + $0x38] sm:$0xff] %v1873_v41 }
 0x87a   :  { %1882 = vsyncpa [#allocation6], 1 }
 0x87b   :  { %1883 = vsyncpa [#allocation8], 1 }

// kernel: _lstm_model_impl.4
= control target key start
LH: loop header
LB: loop body
LE: loop exit
PB: predicated region body
PF: predicated region fallthrough
CT: control target
= control target key end

     0   :  { %v2654_v3 = vmov 0.0   ;;  %s3533_s1 = inlined_call_operand.vmem [shape: f32[128,512], index: 1, kind: input, shape index: {}]   ;;  %s3534_s2 = inlined_call_operand.vmem [shape: f32[128,512], index: 2, kind: input, shape index: {}]   ;;  %s3535_s0 = inlined_call_operand.vmem [shape: f32[8,8,128], index: 0, kind: input, shape index: {}]   ;;  %s3536_s3 = inlined_call_operand.vmem [shape: f32[1,512], index: 3, kind: input, shape index: {}]   ;;  %s3537_s4 = inlined_call_operand.vmem [shape: f32[8,8,128], index: 4, kind: output, shape index: {}]  }
   0x1   :  { %v24_v0 = vld [vmem:[%s3533_s1 + $0x8] sm:$0xff]  ;;  %v26_v2 = vld [vmem:[%s3533_s1 + $0x18] sm:$0xff]  ;;  %245 = vmatprep.mubr.f32.mxu0 %v2654_v3  ;;  %358 = vmatprep.mubr.f32.mxu1 %v2654_v3  ;;  %v23_v6 = vld [vmem:[%s3533_s1] sm:$0xff] }
   0x2   :  { %v28_v1 = vld [vmem:[%s3533_s1 + $0x28] sm:$0xff]  ;;  %v30_v5 = vld [vmem:[%s3533_s1 + $0x38] sm:$0xff]  ;;  %v27_v7 = vld [vmem:[%s3533_s1 + $0x20] sm:$0xff] }
   0x3   :  { %v1885_v4 = vpack.c.bf16 %v28_v1, %v24_v0  ;;  %v1917_v8 = vpack.c.bf16 %v30_v5, %v26_v2  ;;  %v1887_v9 = vpack.c.bf16 %v27_v7, %v23_v6  ;;  %v25_v10 = vld [vmem:[%s3533_s1 + $0x10] sm:$0xff]  ;;  %v32_v12 = vld [vmem:[%s3533_s1 + $0x48] sm:$0xff]  ;;  %v34_v15 = vld [vmem:[%s3533_s1 + $0x58] sm:$0xff] }
   0x4   :  { %v29_v11 = vld [vmem:[%s3533_s1 + $0x30] sm:$0xff]  ;;  %v36_v14 = vld [vmem:[%s3533_s1 + $0x68] sm:$0xff]  ;;  %v38_v16 = vld [vmem:[%s3533_s1 + $0x78] sm:$0xff] }
   0x5   :  { %1886 = vmatprep.subr.bf16.mxu0 %v1885_v4  ;;  %v1919_v13 = vpack.c.bf16 %v29_v11, %v25_v10  ;;  %1918 = vmatprep.subr.bf16.mxu1 %v1917_v8  ;;  %v1889_v17 = vpack.c.bf16 %v36_v14, %v32_v12  ;;  %v1921_v18 = vpack.c.bf16 %v38_v16, %v34_v15  ;;  %v31_v19 = vld [vmem:[%s3533_s1 + $0x40] sm:$0xff]  ;;  %v33_v21 = vld [vmem:[%s3533_s1 + $0x50] sm:$0xff]  ;;  %v40_v24 = vld [vmem:[%s3533_s1 + $0x88] sm:$0xff] }
   0x6   :  { %1888 = vmatpush1.bf16.msra.mxu0 %v1887_v9  ;;  %v35_v20 = vld [vmem:[%s3533_s1 + $0x60] sm:$0xff]  ;;  %v37_v23 = vld [vmem:[%s3533_s1 + $0x70] sm:$0xff]  ;;  %v44_v25 = vld [vmem:[%s3533_s1 + $0xa8] sm:$0xff] }
   0x7   :  { %1920 = vmatpush1.bf16.msra.mxu1 %v1919_v13  ;;  %v1891_v22 = vpack.c.bf16 %v35_v20, %v31_v19  ;;  %1890 = vmatprep.subr.bf16.mxu0 %v1889_v17  ;;  %v1923_v26 = vpack.c.bf16 %v37_v23, %v33_v21  ;;  %v1893_v27 = vpack.c.bf16 %v44_v25, %v40_v24  ;;  %v42_v28 = vld [vmem:[%s3533_s1 + $0x98] sm:$0xff]  ;;  %v39_v30 = vld [vmem:[%s3533_s1 + $0x80] sm:$0xff]  ;;  %v41_v33 = vld [vmem:[%s3533_s1 + $0x90] sm:$0xff] }
   0x8   :  { %1922 = vmatprep.subr.bf16.mxu1 %v1921_v18  ;;  %v46_v29 = vld [vmem:[%s3533_s1 + $0xb8] sm:$0xff]  ;;  %v43_v32 = vld [vmem:[%s3533_s1 + $0xa0] sm:$0xff]  ;;  %v45_v34 = vld [vmem:[%s3533_s1 + $0xb0] sm:$0xff] }
   0x9   :  { %v1925_v31 = vpack.c.bf16 %v46_v29, %v42_v28  ;;  %v1895_v35 = vpack.c.bf16 %v43_v32, %v39_v30  ;;  %v48_v36 = vld [vmem:[%s3533_s1 + $0xc8] sm:$0xff]  ;;  %v50_v38 = vld [vmem:[%s3533_s1 + $0xd8] sm:$0xff]  ;;  %v1927_v39 = vpack.c.bf16 %v45_v34, %v41_v33  ;;  %v47_v42 = vld [vmem:[%s3533_s1 + $0xc0] sm:$0xff] }
   0xa   :  { %1892 = vmatpush1.bf16.msra.mxu0 %v1891_v22  ;;  %v52_v37 = vld [vmem:[%s3533_s1 + $0xe8] sm:$0xff]  ;;  %v54_v41 = vld [vmem:[%s3533_s1 + $0xf8] sm:$0xff]  ;;  %v51_v43 = vld [vmem:[%s3533_s1 + $0xe0] sm:$0xff] }
   0xb   :  { %1924 = vmatpush1.bf16.msra.mxu1 %v1923_v26  ;;  %1894 = vmatprep.subr.bf16.mxu0 %v1893_v27  ;;  %v1897_v40 = vpack.c.bf16 %v52_v37, %v48_v36  ;;  %v1929_v44 = vpack.c.bf16 %v54_v41, %v50_v38  ;;  %v49_v45 = vld [vmem:[%s3533_s1 + $0xd0] sm:$0xff]  ;;  %v56_v47 = vld [vmem:[%s3533_s1 + $0x108] sm:$0xff]  ;;  %v58_v49 = vld [vmem:[%s3533_s1 + $0x118] sm:$0xff]  ;;  %v1899_v51 = vpack.c.bf16 %v51_v43, %v47_v42 }
   0xc   :  { %1926 = vmatprep.subr.bf16.mxu1 %v1925_v31  ;;  %v53_v46 = vld [vmem:[%s3533_s1 + $0xf0] sm:$0xff]  ;;  %v60_v48 = vld [vmem:[%s3533_s1 + $0x128] sm:$0xff]  ;;  %v62_v50 = vld [vmem:[%s3533_s1 + $0x138] sm:$0xff] }
   0xd   :  { %v1931_v52 = vpack.c.bf16 %v53_v46, %v49_v45  ;;  %v1901_v53 = vpack.c.bf16 %v60_v48, %v56_v47  ;;  %v55_v54 = vld [vmem:[%s3533_s1 + $0x100] sm:$0xff]  ;;  %v57_v56 = vld [vmem:[%s3533_s1 + $0x110] sm:$0xff]  ;;  %v1933_v57 = vpack.c.bf16 %v62_v50, %v58_v49  ;;  %v64_v59 = vld [vmem:[%s3533_s1 + $0x148] sm:$0xff] }
   0xe   :  { %1896 = vmatpush1.bf16.msra.mxu0 %v1895_v35  ;;  %v59_v55 = vld [vmem:[%s3533_s1 + $0x120] sm:$0xff]  ;;  %v61_v58 = vld [vmem:[%s3533_s1 + $0x130] sm:$0xff]  ;;  %v68_v60 = vld [vmem:[%s3533_s1 + $0x168] sm:$0xff] }
   0xf   :  { %1928 = vmatpush1.bf16.msra.mxu1 %v1927_v39  ;;  %1898 = vmatprep.subr.bf16.mxu0 %v1897_v40  ;;  %v66_v61 = vld [vmem:[%s3533_s1 + $0x158] sm:$0xff]  ;;  %v1903_v63 = vpack.c.bf16 %v59_v55, %v55_v54  ;;  %v1935_v0 = vpack.c.bf16 %v61_v58, %v57_v56  ;;  %v1905_v1 = vpack.c.bf16 %v68_v60, %v64_v59  ;;  %v63_v2 = vld [vmem:[%s3533_s1 + $0x140] sm:$0xff]  ;;  %v65_v5 = vld [vmem:[%s3533_s1 + $0x150] sm:$0xff] }
  0x10   :  { %1930 = vmatprep.subr.bf16.mxu1 %v1929_v44  ;;  %v70_v62 = vld [vmem:[%s3533_s1 + $0x178] sm:$0xff]  ;;  %v67_v4 = vld [vmem:[%s3533_s1 + $0x160] sm:$0xff]  ;;  %v69_v7 = vld [vmem:[%s3533_s1 + $0x170] sm:$0xff] }
  0x11   :  { %v1937_v6 = vpack.c.bf16 %v70_v62, %v66_v61  ;;  %v72_v8 = vld [vmem:[%s3533_s1 + $0x188] sm:$0xff]  ;;  %v74_v10 = vld [vmem:[%s3533_s1 + $0x198] sm:$0xff]  ;;  %v1907_v12 = vpack.c.bf16 %v67_v4, %v63_v2  ;;  %v1939_v13 = vpack.c.bf16 %v69_v7, %v65_v5  ;;  %v71_v15 = vld [vmem:[%s3533_s1 + $0x180] sm:$0xff] }
  0x12   :  { %1900 = vmatpush1.bf16.msra.mxu0 %v1899_v51  ;;  %v76_v9 = vld [vmem:[%s3533_s1 + $0x1a8] sm:$0xff]  ;;  %v78_v11 = vld [vmem:[%s3533_s1 + $0x1b8] sm:$0xff]  ;;  %v75_v16 = vld [vmem:[%s3533_s1 + $0x1a0] sm:$0xff] }
  0x13   :  { %1932 = vmatpush1.bf16.msra.mxu1 %v1931_v52  ;;  %1902 = vmatprep.subr.bf16.mxu0 %v1901_v53  ;;  %v1909_v14 = vpack.c.bf16 %v76_v9, %v72_v8  ;;  %v73_v17 = vld [vmem:[%s3533_s1 + $0x190] sm:$0xff]  ;;  %v1941_v18 = vpack.c.bf16 %v78_v11, %v74_v10  ;;  %v80_v20 = vld [vmem:[%s3533_s1 + $0x1c8] sm:$0xff]  ;;  %v82_v22 = vld [vmem:[%s3533_s1 + $0x1d8] sm:$0xff]  ;;  %v1911_v24 = vpack.c.bf16 %v75_v16, %v71_v15 }
  0x14   :  { %1934 = vmatprep.subr.bf16.mxu1 %v1933_v57  ;;  %v77_v19 = vld [vmem:[%s3533_s1 + $0x1b0] sm:$0xff]  ;;  %v84_v21 = vld [vmem:[%s3533_s1 + $0x1e8] sm:$0xff]  ;;  %v86_v23 = vld [vmem:[%s3533_s1 + $0x1f8] sm:$0xff] }
  0x15   :  { %v1943_v25 = vpack.c.bf16 %v77_v19, %v73_v17  ;;  %v1913_v26 = vpack.c.bf16 %v84_v21, %v80_v20  ;;  %v79_v27 = vld [vmem:[%s3533_s1 + $0x1c0] sm:$0xff]  ;;  %v81_v29 = vld [vmem:[%s3533_s1 + $0x1d0] sm:$0xff]  ;;  %v1945_v30 = vpack.c.bf16 %v86_v23, %v82_v22  ;;  %v88_v32 = vld [vmem:[%s3534_s2 + $0x8] sm:$0xff] }
  0x16   :  { %1904 = vmatpush1.bf16.msra.mxu0 %v1903_v63  ;;  %v83_v28 = vld [vmem:[%s3533_s1 + $0x1e0] sm:$0xff]  ;;  %v85_v31 = vld [vmem:[%s3533_s1 + $0x1f0] sm:$0xff]  ;;  %v92_v33 = vld [vmem:[%s3534_s2 + $0x28] sm:$0xff] }
  0x17   :  { %1936 = vmatpush1.bf16.msra.mxu1 %v1935_v0  ;;  %1906 = vmatprep.subr.bf16.mxu0 %v1905_v1  ;;  %v90_v34 = vld [vmem:[%s3534_s2 + $0x18] sm:$0xff]  ;;  %v1915_v36 = vpack.c.bf16 %v83_v28, %v79_v27  ;;  %v1947_v37 = vpack.c.bf16 %v85_v31, %v81_v29  ;;  %v2886_v38 = vpack.c.bf16 %v92_v33, %v88_v32  ;;  %v87_v39 = vld [vmem:[%s3534_s2] sm:$0xff]  ;;  %v89_v42 = vld [vmem:[%s3534_s2 + $0x10] sm:$0xff] }
  0x18   :  { %1938 = vmatprep.subr.bf16.mxu1 %v1937_v6  ;;  %v94_v35 = vld [vmem:[%s3534_s2 + $0x38] sm:$0xff]  ;;  %v91_v40 = vld [vmem:[%s3534_s2 + $0x20] sm:$0xff]  ;;  %v93_v43 = vld [vmem:[%s3534_s2 + $0x30] sm:$0xff] }
  0x19   :  { %v2894_v41 = vpack.c.bf16 %v94_v35, %v90_v34  ;;  %v96_v44 = vld [vmem:[%s3534_s2 + $0x48] sm:$0xff]  ;;  %v152_v46 = vld [vmem:[%s3535_s0] sm:$0xff]  ;;  %v2911_v47 = vpack.c.bf16 %v91_v40, %v87_v39  ;;  %v98_v48 = vld [vmem:[%s3534_s2 + $0x58] sm:$0xff]  ;;  %v2920_v50 = vpack.c.bf16 %v93_v43, %v89_v42 }
  0x1a   :  { %1908 = vmatpush1.bf16.msra.mxu0 %v1907_v12  ;;  %v100_v45 = vld [vmem:[%s3534_s2 + $0x68] sm:$0xff]  ;;  %v102_v49 = vld [vmem:[%s3534_s2 + $0x78] sm:$0xff]  ;;  %v95_v51 = vld [vmem:[%s3534_s2 + $0x40] sm:$0xff] }
  0x1b   :  { %1940 = vmatpush1.bf16.msra.mxu1 %v1939_v13  ;;  %1910 = vmatprep.subr.bf16.mxu0 %v1909_v14  ;;  %v99_v52 = vld [vmem:[%s3534_s2 + $0x60] sm:$0xff]  ;;  %v2929_v53 = vpack.c.bf16 %v100_v45, %v96_v44  ;;  %v97_v54 = vld [vmem:[%s3534_s2 + $0x50] sm:$0xff]  ;;  %v2937_v56 = vpack.c.bf16 %v102_v49, %v98_v48  ;;  %v104_v57 = vld [vmem:[%s3534_s2 + $0x88] sm:$0xff] }
  0x1c   :  { %1942 = vmatprep.subr.bf16.mxu1 %v1941_v18  ;;  %v101_v55 = vld [vmem:[%s3534_s2 + $0x70] sm:$0xff]  ;;  %v108_v58 = vld [vmem:[%s3534_s2 + $0xa8] sm:$0xff]  ;;  %v2949_v60 = vpack.c.bf16 %v99_v52, %v95_v51  ;;  %v106_v61 = vld [vmem:[%s3534_s2 + $0x98] sm:$0xff] }
  0x1d   :  { %v153_v59 = vld [vmem:[%s3535_s0 + $0x8] sm:$0xff]  ;;  %v110_v62 = vld [vmem:[%s3534_s2 + $0xb8] sm:$0xff]  ;;  %v2959_v63 = vpack.c.bf16 %v101_v55, %v97_v54  ;;  %v103_v0 = vld [vmem:[%s3534_s2 + $0x80] sm:$0xff]  ;;  %v2969_v2 = vpack.c.bf16 %v108_v58, %v104_v57 }
  0x1e   :  { %1912 = vmatpush1.bf16.msra.mxu0 %v1911_v24  ;;  %v107_v1 = vld [vmem:[%s3534_s2 + $0xa0] sm:$0xff]  ;;  %v105_v4 = vld [vmem:[%s3534_s2 + $0x90] sm:$0xff]  ;;  %v2978_v6 = vpack.c.bf16 %v110_v62, %v106_v61  ;;  %v112_v7 = vld [vmem:[%s3534_s2 + $0xc8] sm:$0xff] }
  0x1f   :  { %1944 = vmatpush1.bf16.msra.mxu1 %v1943_v25  ;;  %1914 = vmatprep.subr.bf16.mxu0 %v1913_v26  ;;  %v109_v5 = vld [vmem:[%s3534_s2 + $0xb0] sm:$0xff]  ;;  %v116_v8 = vld [vmem:[%s3534_s2 + $0xe8] sm:$0xff]  ;;  %v2990_v10 = vpack.c.bf16 %v107_v1, %v103_v0  ;;  %v114_v11 = vld [vmem:[%s3534_s2 + $0xd8] sm:$0xff] }
  0x20   :  { %1946 = vmatprep.subr.bf16.mxu1 %v1945_v30  ;;  %v154_v9 = vld [vmem:[%s3535_s0 + $0x10] sm:$0xff]  ;;  %v118_v12 = vld [vmem:[%s3534_s2 + $0xf8] sm:$0xff]  ;;  %v3000_v13 = vpack.c.bf16 %v109_v5, %v105_v4  ;;  %v111_v14 = vld [vmem:[%s3534_s2 + $0xc0] sm:$0xff]  ;;  %v3010_v16 = vpack.c.bf16 %v116_v8, %v112_v7 }
  0x21   :  { %v115_v15 = vld [vmem:[%s3534_s2 + $0xe0] sm:$0xff]  ;;  %v113_v17 = vld [vmem:[%s3534_s2 + $0xd0] sm:$0xff]  ;;  %v3019_v19 = vpack.c.bf16 %v118_v12, %v114_v11  ;;  %v120_v20 = vld [vmem:[%s3534_s2 + $0x108] sm:$0xff] }
  0x22   :  { %1916 = vmatpush1.bf16.msra.mxu0 %v1915_v36  ;;  %v117_v18 = vld [vmem:[%s3534_s2 + $0xf0] sm:$0xff]  ;;  %v124_v21 = vld [vmem:[%s3534_s2 + $0x128] sm:$0xff]  ;;  %v155_v22 = vld [vmem:[%s3535_s0 + $0x18] sm:$0xff]  ;;  %v3031_v23 = vpack.c.bf16 %v115_v15, %v111_v14 }
  0x23   :  { %1948 = vmatpush1.bf16.msra.mxu1 %v1947_v37  ;;  %1950 = vmatprep.subr.bf16.mxu0 %v2886_v38  ;;  %v122_v24 = vld [vmem:[%s3534_s2 + $0x118] sm:$0xff]  ;;  %v3041_v26 = vpack.c.bf16 %v117_v18, %v113_v17  ;;  %v119_v27 = vld [vmem:[%s3534_s2 + $0x100] sm:$0xff]  ;;  %v3051_v29 = vpack.c.bf16 %v124_v21, %v120_v20  ;;  %v121_v30 = vld [vmem:[%s3534_s2 + $0x110] sm:$0xff] }
  0x24   :  { %1982 = vmatprep.subr.bf16.mxu1 %v2894_v41  ;;  %v126_v25 = vld [vmem:[%s3534_s2 + $0x138] sm:$0xff]  ;;  %v123_v28 = vld [vmem:[%s3534_s2 + $0x120] sm:$0xff]  ;;  %v125_v31 = vld [vmem:[%s3534_s2 + $0x130] sm:$0xff] }
  0x25   :  { %246 = vmatmul.mubr.f32.vlgmr.msra.gmra.mrb[0].mxu0 %v152_v46  ;;  %v3060_v32 = vpack.c.bf16 %v126_v25, %v122_v24  ;;  %v128_v33 = vld [vmem:[%s3534_s2 + $0x148] sm:$0xff]  ;;  %v156_v35 = vld [vmem:[%s3535_s0 + $0x20] sm:$0xff]  ;;  %v3072_v36 = vpack.c.bf16 %v123_v28, %v119_v27  ;;  %v130_v37 = vld [vmem:[%s3534_s2 + $0x158] sm:$0xff]  ;;  %v3082_v40 = vpack.c.bf16 %v125_v31, %v121_v30  ;;  %v161_v28 = vlaneseq }
  0x26   :  { %359 = vmatmul.mubr.f32.vlgmr.msra.gmra.mrb[0].mxu1 %v152_v46  ;;  %1952 = vmatpush1.bf16.msra.mxu0 %v2911_v47  ;;  %v132_v34 = vld [vmem:[%s3534_s2 + $0x168] sm:$0xff]  ;;  %v134_v39 = vld [vmem:[%s3534_s2 + $0x178] sm:$0xff]  ;;  %v127_v42 = vld [vmem:[%s3534_s2 + $0x140] sm:$0xff] }
  0x27   :  { %1984 = vmatpush1.bf16.msra.mxu1 %v2920_v50  ;;  %251 = vmatprep.mubr.f32.mxu0 %v2654_v3  ;;  %v131_v43 = vld [vmem:[%s3534_s2 + $0x160] sm:$0xff]  ;;  %v3092_v44 = vpack.c.bf16 %v132_v34, %v128_v33  ;;  %v129_v45 = vld [vmem:[%s3534_s2 + $0x150] sm:$0xff]  ;;  %v3101_v48 = vpack.c.bf16 %v134_v39, %v130_v37  ;;  %v136_v49 = vld [vmem:[%s3534_s2 + $0x188] sm:$0xff]  ;;  %v162_v30 = vshrl.u32 %v161_v28, 7 }
  0x28   :  { %364 = vmatprep.mubr.f32.mxu1 %v2654_v3  ;;  %1954 = vmatprep.subr.bf16.mxu0 %v2929_v53  ;;  %v133_v46 = vld [vmem:[%s3534_s2 + $0x170] sm:$0xff]  ;;  %v140_v51 = vld [vmem:[%s3534_s2 + $0x1a8] sm:$0xff]  ;;  %v3113_v54 = vpack.c.bf16 %v131_v43, %v127_v42  ;;  %v138_v55 = vld [vmem:[%s3534_s2 + $0x198] sm:$0xff] }
  0x29   :  { %252 = vmatmul.mubr.f32.gmra.mrb[2].mxu0 %v153_v59  ;;  %1986 = vmatprep.subr.bf16.mxu1 %v2937_v56  ;;  %v157_v52 = vld [vmem:[%s3535_s0 + $0x28] sm:$0xff]  ;;  %v142_v57 = vld [vmem:[%s3534_s2 + $0x1b8] sm:$0xff]  ;;  %v3123_v58 = vpack.c.bf16 %v133_v46, %v129_v45  ;;  %v139_v61 = vld [vmem:[%s3534_s2 + $0x1a0] sm:$0xff]  ;;  %v3133_v62 = vpack.c.bf16 %v140_v51, %v136_v49  ;;  %v163_v31 = vsub.s32 0, %v162_v30  ;;  %v167_v34 = vsub.s32 1, %v162_v30 }
  0x2a   :  { %365 = vmatmul.mubr.f32.gmra.mrb[2].mxu1 %v153_v59  ;;  %1956 = vmatpush1.bf16.msra.mxu0 %v2949_v60  ;;  %v135_v59 = vld [vmem:[%s3534_s2 + $0x180] sm:$0xff]  ;;  %v137_v0 = vld [vmem:[%s3534_s2 + $0x190] sm:$0xff]  ;;  %v3142_v4 = vpack.c.bf16 %v142_v57, %v138_v55  ;;  %v144_v5 = vld [vmem:[%s3534_s2 + $0x1c8] sm:$0xff]  ;;  %v175_v42 = vsub.s32 3, %v162_v30 }
  0x2b   :  { %1988 = vmatpush1.bf16.msra.mxu1 %v2959_v63  ;;  %257 = vmatprep.mubr.f32.mxu0 %v2654_v3  ;;  %v141_v1 = vld [vmem:[%s3534_s2 + $0x1b0] sm:$0xff]  ;;  %v148_v7 = vld [vmem:[%s3534_s2 + $0x1e8] sm:$0xff]  ;;  %v146_v11 = vld [vmem:[%s3534_s2 + $0x1d8] sm:$0xff] }
  0x2c   :  { %370 = vmatprep.mubr.f32.mxu1 %v2654_v3  ;;  %1958 = vmatprep.subr.bf16.mxu0 %v2969_v2  ;;  %v158_v8 = vld [vmem:[%s3535_s0 + $0x30] sm:$0xff]  ;;  %v150_v12 = vld [vmem:[%s3534_s2 + $0x1f8] sm:$0xff]  ;;  %v3164_v14 = vpack.c.bf16 %v141_v1, %v137_v0  ;;  %v143_v15 = vld [vmem:[%s3534_s2 + $0x1c0] sm:$0xff]  ;;  %v3174_v18 = vpack.c.bf16 %v148_v7, %v144_v5 }
  0x2d   :  { %258 = vmatmul.mubr.f32.gmra.mrb[4].mxu0 %v154_v9  ;;  %1990 = vmatprep.subr.bf16.mxu1 %v2978_v6  ;;  %v147_v17 = vld [vmem:[%s3534_s2 + $0x1e0] sm:$0xff]  ;;  %v145_v20 = vld [vmem:[%s3534_s2 + $0x1d0] sm:$0xff]  ;;  %v159_v24 = vld [vmem:[%s3535_s0 + $0x38] sm:$0xff] }
  0x2e   :  { %371 = vmatmul.mubr.f32.gmra.mrb[4].mxu1 %v154_v9  ;;  %1960 = vmatpush1.bf16.msra.mxu0 %v2990_v10  ;;  %v3154_v9 = vpack.c.bf16 %v139_v61, %v135_v59  ;;  %v149_v21 = vld [vmem:[%s3534_s2 + $0x1f0] sm:$0xff]  ;;  %v3189_v25 = vpack.c.bf16 %v147_v17, %v143_v15  ;;  %v151_v33 = vld [vmem:[%s3536_s3] sm:$0xf]  ;;  %v171_v59 = vsub.s32 2, %v162_v30 }
  0x2f   :  { %1992 = vmatpush1.bf16.msra.mxu1 %v3000_v13  ;;  %263 = vmatprep.mubr.f32.mxu0 %v2654_v3  ;;  %v3193_v27 = vpack.c.bf16 %v149_v21, %v145_v20  ;;  %v3245_v37 = vrot.slane %v151_v33, %v167_v34  ;;  %v3249_v57 = vrot.slane %v151_v33, %v175_v42 }
  0x30   :  { %376 = vmatprep.mubr.f32.mxu1 %v2654_v3  ;;  %1962 = vmatprep.subr.bf16.mxu0 %v3010_v16  ;;  %v3252_v0 = vrot.slane %v151_v33, %v171_v59 }
  0x31   :  { %264 = vmatmul.mubr.f32.gmra.mrb[6].mxu0 %v155_v22  ;;  %1994 = vmatprep.subr.bf16.mxu1 %v3019_v19 }
  0x32   :  { %377 = vmatmul.mubr.f32.gmra.mrb[6].mxu1 %v155_v22  ;;  %1964 = vmatpush1.bf16.msra.mxu0 %v3031_v23  ;;  %v3183_v22 = vpack.c.bf16 %v150_v12, %v146_v11 }
  0x33   :  { %1996 = vmatpush1.bf16.msra.mxu1 %v3041_v26  ;;  %269 = vmatprep.mubr.f32.mxu0 %v2654_v3 }
  0x34   :  { %382 = vmatprep.mubr.f32.mxu1 %v2654_v3  ;;  %1966 = vmatprep.subr.bf16.mxu0 %v3051_v29 }
  0x35   :  { %270 = vmatmul.mubr.f32.gmra.mrb[8].mxu0 %v156_v35  ;;  %1998 = vmatprep.subr.bf16.mxu1 %v3060_v32 }
  0x36   :  { %383 = vmatmul.mubr.f32.gmra.mrb[8].mxu1 %v156_v35  ;;  %1968 = vmatpush1.bf16.msra.mxu0 %v3072_v36  ;;  %v3243_v35 = vrot.slane %v151_v33, %v163_v31 }
  0x37   :  { %2000 = vmatpush1.bf16.msra.mxu1 %v3082_v40  ;;  %275 = vmatprep.mubr.f32.mxu0 %v2654_v3 }
  0x38   :  { %388 = vmatprep.mubr.f32.mxu1 %v2654_v3  ;;  %1970 = vmatprep.subr.bf16.mxu0 %v3092_v44 }
  0x39   :  { %276 = vmatmul.mubr.f32.gmra.mrb[10].mxu0 %v157_v52  ;;  %2002 = vmatprep.subr.bf16.mxu1 %v3101_v48 }
  0x3a   :  { %389 = vmatmul.mubr.f32.gmra.mrb[10].mxu1 %v157_v52  ;;  %1972 = vmatpush1.bf16.msra.mxu0 %v3113_v54 }
  0x3b   :  { %2004 = vmatpush1.bf16.msra.mxu1 %v3123_v58  ;;  %281 = vmatprep.mubr.f32.mxu0 %v2654_v3 }
  0x3c   :  { %394 = vmatprep.mubr.f32.mxu1 %v2654_v3  ;;  %1974 = vmatprep.subr.bf16.mxu0 %v3133_v62 }
  0x3d   :  { %282 = vmatmul.mubr.f32.gmra.mrb[12].mxu0 %v158_v8  ;;  %2006 = vmatprep.subr.bf16.mxu1 %v3142_v4 }
  0x3e   :  { %395 = vmatmul.mubr.f32.gmra.mrb[12].mxu1 %v158_v8  ;;  %1976 = vmatpush1.bf16.msra.mxu0 %v3154_v9 }
  0x3f   :  { %2008 = vmatpush1.bf16.msra.mxu1 %v3164_v14  ;;  %287 = vmatprep.mubr.f32.mxu0 %v2654_v3 }
  0x40   :  { %400 = vmatprep.mubr.f32.mxu1 %v2654_v3  ;;  %1978 = vmatprep.subr.bf16.mxu0 %v3174_v18 }
  0x41   :  { %288 = vmatmul.mubr.f32.gmra.mrb[14].mxu0 %v159_v24  ;;  %2010 = vmatprep.subr.bf16.mxu1 %v3183_v22 }
  0x42   :  { %401 = vmatmul.mubr.f32.gmra.mrb[14].mxu1 %v159_v24  ;;  %1980 = vmatpush1.bf16.msra.mxu0 %v3189_v25 }
  0x43   :  { %2012 = vmatpush1.bf16.msra.mxu1 %v3193_v27  ;;  %509 = vmatprep.mubr.f32.mxu0 %v2654_v3 }
  0x44   :  { %580 = vmatprep.mubr.f32.mxu1 %v2654_v3  ;;  %2014 = vmatprep.subr.bf16.mxu0 %v2886_v38 }
  0x45   :  { %510 = vmatmul.mubr.f32.vlgmr.msra.gmra.mrb[0].mxu0 %v2654_v3  ;;  %2046 = vmatprep.subr.bf16.mxu1 %v2894_v41 }
  0x46   :  { %581 = vmatmul.mubr.f32.vlgmr.msra.gmra.mrb[0].mxu1 %v2654_v3  ;;  %2016 = vmatpush1.bf16.msra.mxu0 %v2911_v47 }
  0x47   :  { %2048 = vmatpush1.bf16.msra.mxu1 %v2920_v50  ;;  %2018 = vmatprep.subr.bf16.mxu0 %v2929_v53 }
  0x48   :  { %2050 = vmatprep.subr.bf16.mxu1 %v2937_v56  ;;  %684 = vmatprep.mubr.f32.mxu0 %v2654_v3 }
  0x49   :  { %755 = vmatprep.mubr.f32.mxu1 %v2654_v3 }
  0x4a   :  { %2020 = vmatpush1.bf16.msra.mxu0 %v2949_v60 }
  0x4b   :  { %2052 = vmatpush1.bf16.msra.mxu1 %v2959_v63  ;;  %2022 = vmatprep.subr.bf16.mxu0 %v2969_v2 }
  0x4c   :  { %2054 = vmatprep.subr.bf16.mxu1 %v2978_v6 }
  0x4e   :  { %2024 = vmatpush1.bf16.msra.mxu0 %v2990_v10 }
  0x4f   :  { %2056 = vmatpush1.bf16.msra.mxu1 %v3000_v13  ;;  %2026 = vmatprep.subr.bf16.mxu0 %v3010_v16 }
  0x50   :  { %2058 = vmatprep.subr.bf16.mxu1 %v3019_v19 }
  0x52   :  { %2028 = vmatpush1.bf16.msra.mxu0 %v3031_v23 }
  0x53   :  { %2060 = vmatpush1.bf16.msra.mxu1 %v3041_v26  ;;  %2030 = vmatprep.subr.bf16.mxu0 %v3051_v29 }
  0x54   :  { %2062 = vmatprep.subr.bf16.mxu1 %v3060_v32 }
  0x56   :  { %2032 = vmatpush1.bf16.msra.mxu0 %v3072_v36 }
  0x57   :  { %2064 = vmatpush1.bf16.msra.mxu1 %v3082_v40  ;;  %2034 = vmatprep.subr.bf16.mxu0 %v3092_v44 }
  0x58   :  { %2066 = vmatprep.subr.bf16.mxu1 %v3101_v48 }
  0x5a   :  { %2036 = vmatpush1.bf16.msra.mxu0 %v3113_v54 }
  0x5b   :  { %2068 = vmatpush1.bf16.msra.mxu1 %v3123_v58  ;;  %2038 = vmatprep.subr.bf16.mxu0 %v3133_v62 }
  0x5c   :  { %2070 = vmatprep.subr.bf16.mxu1 %v3142_v4 }
  0x5e   :  { %2040 = vmatpush1.bf16.msra.mxu0 %v3154_v9 }
  0x5f   :  { %2072 = vmatpush1.bf16.msra.mxu1 %v3164_v14  ;;  %2042 = vmatprep.subr.bf16.mxu0 %v3174_v18 }
  0x60   :  { %2074 = vmatprep.subr.bf16.mxu1 %v3183_v22 }
  0x62   :  { %2044 = vmatpush1.bf16.msra.mxu0 %v3189_v25 }
  0x63   :  { %2076 = vmatpush1.bf16.msra.mxu1 %v3193_v27  ;;  %2078 = vmatprep.subr.bf16.mxu0 %v2886_v38 }
  0x64   :  { %2110 = vmatprep.subr.bf16.mxu1 %v2894_v41 }
 0x118   :  { %v511_v39 = vpop.f32.mrb[0].mxu0 }
 0x119   :  { %v2461_v43 = vadd.f32 %v511_v39, %v3243_v35  ;;  %v582_v45 = vpop.f32.mrb[0].mxu1  ;;  %v513_v46 = vpop.f32.mrb[1].mxu0 }
 0x11a   :  { %v2462_v49 = vadd.f32 %v513_v46, %v3245_v37  ;;  %v584_v51 = vpop.f32.mrb[1].mxu1  ;;  %v2477_v5 = vadd.f32 %v582_v45, %v3252_v0 }
 0x11b   :  { %v1854_v52 = vmul.f32 -1.442695, %v2461_v43  ;;  %v2478_v61 = vadd.f32 %v584_v51, %v3249_v57 }
 0x11c   :  { %v1855_v55 = vmul.f32 -1.442695, %v2462_v49 }
 0x11d   :  { %2526 = vpow2.f32 %v1854_v52  ;;  %v1856_v1 = vmul.f32 -1.442695, %v2478_v61 }
 0x11e   :  { %2528 = vpow2.f32 %v1855_v55 }
 0x11f   :  { %2530 = vpow2.f32 %v1856_v1 }
 0x120   :  { %2532 = vtanh.f32 %v2477_v5 }
 0x127   :  { %v2527_v7 = vpop.eup %2526 }
 0x128   :  { %v2529_v8 = vpop.eup %2528  ;;  %v594_v11 = vadd.f32 1.0, %v2527_v7 }
 0x129   :  { %v600_v12 = vadd.f32 1.0, %v2529_v8  ;;  %v2531_v15 = vpop.eup %2530 }
 0x12a   :  { %2534 = vrcp.f32 %v594_v11  ;;  %v2533_v17 = vpop.eup %2532  ;;  %v607_v28 = vadd.f32 1.0, %v2531_v15 }
 0x12b   :  { %2536 = vrcp.f32 %v600_v12 }
 0x12c   :  { %2538 = vrcp.f32 %v607_v28 }
 0x134   :  { %v2535_v20 = vpop.eup %2534 }
 0x135   :  { %v2537_v21 = vpop.eup %2536  ;;  %v611_v24 = vmul.f32 %v2535_v20, %v2533_v17 }
 0x136   :  { %v610_v30 = vmul.f32 0.0, %v2537_v21  ;;  %v2539_v33 = vpop.eup %2538 }
 0x138   :  { %v3255_v31 = vadd.f32 %v611_v24, %v610_v30 }
 0x13a   :  { %2540 = vtanh.f32 %v3255_v31 }
 0x144   :  { %v2541_v34 = vpop.eup %2540 }
 0x145   :  { %v614_v39 = vmul.f32 %v2541_v34, %v2539_v33 }
 0x147   :  { %615 = vst [vmem:[%s3537_s4] sm:$0xff] %v614_v39  ;;  %685 = vmatmul.mubr.f32.vlgmr.msra.gmra.mrb[2].mxu0 %v614_v39  ;;  %756 = vmatmul.mubr.f32.vlgmr.msra.gmra.mrb[2].mxu1 %v614_v39 }
 0x148   :  { %2080 = vmatpush1.bf16.msra.mxu0 %v2911_v47  ;;  %2112 = vmatpush1.bf16.msra.mxu1 %v2920_v50 }
 0x149   :  { %2082 = vmatprep.subr.bf16.mxu0 %v2929_v53  ;;  %2114 = vmatprep.subr.bf16.mxu1 %v2937_v56 }
 0x14a   :  { %860 = vmatprep.mubr.f32.mxu0 %v2654_v3  ;;  %931 = vmatprep.mubr.f32.mxu1 %v2654_v3 }
 0x14c   :  { %2084 = vmatpush1.bf16.msra.mxu0 %v2949_v60  ;;  %2116 = vmatpush1.bf16.msra.mxu1 %v2959_v63 }
 0x14d   :  { %2086 = vmatprep.subr.bf16.mxu0 %v2969_v2  ;;  %2118 = vmatprep.subr.bf16.mxu1 %v2978_v6 }
 0x150   :  { %2088 = vmatpush1.bf16.msra.mxu0 %v2990_v10  ;;  %2120 = vmatpush1.bf16.msra.mxu1 %v3000_v13 }
 0x151   :  { %2090 = vmatprep.subr.bf16.mxu0 %v3010_v16  ;;  %2122 = vmatprep.subr.bf16.mxu1 %v3019_v19 }
 0x154   :  { %2092 = vmatpush1.bf16.msra.mxu0 %v3031_v23  ;;  %2124 = vmatpush1.bf16.msra.mxu1 %v3041_v26 }
 0x155   :  { %2094 = vmatprep.subr.bf16.mxu0 %v3051_v29  ;;  %2126 = vmatprep.subr.bf16.mxu1 %v3060_v32 }
 0x158   :  { %2096 = vmatpush1.bf16.msra.mxu0 %v3072_v36  ;;  %2128 = vmatpush1.bf16.msra.mxu1 %v3082_v40 }
 0x159   :  { %2098 = vmatprep.subr.bf16.mxu0 %v3092_v44  ;;  %2130 = vmatprep.subr.bf16.mxu1 %v3101_v48 }
 0x15c   :  { %2100 = vmatpush1.bf16.msra.mxu0 %v3113_v54  ;;  %2132 = vmatpush1.bf16.msra.mxu1 %v3123_v58 }
 0x15d   :  { %2102 = vmatprep.subr.bf16.mxu0 %v3133_v62  ;;  %2134 = vmatprep.subr.bf16.mxu1 %v3142_v4 }
 0x160   :  { %2104 = vmatpush1.bf16.msra.mxu0 %v3154_v9  ;;  %2136 = vmatpush1.bf16.msra.mxu1 %v3164_v14 }
 0x161   :  { %2106 = vmatprep.subr.bf16.mxu0 %v3174_v18  ;;  %2138 = vmatprep.subr.bf16.mxu1 %v3183_v22 }
 0x164   :  { %2108 = vmatpush1.bf16.msra.mxu0 %v3189_v25  ;;  %2140 = vmatpush1.bf16.msra.mxu1 %v3193_v27 }
 0x165   :  { %2142 = vmatprep.subr.bf16.mxu0 %v2886_v38  ;;  %2174 = vmatprep.subr.bf16.mxu1 %v2894_v41 }
 0x21a   :  { %v686_v42 = vpop.f32.mrb[2].mxu0  ;;  %v757_v43 = vpop.f32.mrb[2].mxu1 }
 0x21b   :  { %v2463_v45 = vadd.f32 %v686_v42, %v3243_v35  ;;  %v688_v46 = vpop.f32.mrb[3].mxu0  ;;  %v759_v49 = vpop.f32.mrb[3].mxu1  ;;  %v2479_v1 = vadd.f32 %v757_v43, %v3252_v0 }
 0x21c   :  { %v2464_v51 = vadd.f32 %v688_v46, %v3245_v37  ;;  %v2480_v59 = vadd.f32 %v759_v49, %v3249_v57 }
 0x21d   :  { %v1857_v52 = vmul.f32 -1.442695, %v2463_v45 }
 0x21e   :  { %v1858_v55 = vmul.f32 -1.442695, %v2464_v51  ;;  %v1859_v61 = vmul.f32 -1.442695, %v2480_v59 }
 0x21f   :  { %2542 = vpow2.f32 %v1857_v52 }
 0x220   :  { %2544 = vpow2.f32 %v1858_v55 }
 0x221   :  { %2546 = vpow2.f32 %v1859_v61 }
 0x222   :  { %2548 = vtanh.f32 %v2479_v1 }
 0x229   :  { %v2543_v5 = vpop.eup %2542 }
 0x22a   :  { %v2545_v7 = vpop.eup %2544  ;;  %v769_v8 = vadd.f32 1.0, %v2543_v5 }
 0x22b   :  { %v775_v11 = vadd.f32 1.0, %v2545_v7  ;;  %v2547_v12 = vpop.eup %2546 }
 0x22c   :  { %2550 = vrcp.f32 %v769_v8  ;;  %v2549_v15 = vpop.eup %2548  ;;  %v782_v24 = vadd.f32 1.0, %v2547_v12 }
 0x22d   :  { %2552 = vrcp.f32 %v775_v11 }
 0x22e   :  { %2554 = vrcp.f32 %v782_v24 }
 0x236   :  { %v2551_v17 = vpop.eup %2550 }
 0x237   :  { %v2553_v20 = vpop.eup %2552  ;;  %v786_v21 = vmul.f32 %v2551_v17, %v2549_v15 }
 0x238   :  { %v785_v28 = vmul.f32 %v2553_v20, %v3255_v31  ;;  %v2555_v33 = vpop.eup %2554 }
 0x23a   :  { %v3300_v30 = vadd.f32 %v786_v21, %v785_v28 }
 0x23c   :  { %2556 = vtanh.f32 %v3300_v30 }
 0x246   :  { %v2557_v34 = vpop.eup %2556 }
 0x247   :  { %v789_v39 = vmul.f32 %v2557_v34, %v2555_v33 }
 0x249   :  { %1860 = vst [vmem:[%s3537_s4 + $0x8] sm:$0xff] %v789_v39  ;;  %861 = vmatmul.mubr.f32.vlgmr.msra.gmra.mrb[4].mxu0 %v789_v39  ;;  %932 = vmatmul.mubr.f32.vlgmr.msra.gmra.mrb[4].mxu1 %v789_v39 }
 0x24a   :  { %2144 = vmatpush1.bf16.msra.mxu0 %v2911_v47  ;;  %2176 = vmatpush1.bf16.msra.mxu1 %v2920_v50 }
 0x24b   :  { %2146 = vmatprep.subr.bf16.mxu0 %v2929_v53  ;;  %2178 = vmatprep.subr.bf16.mxu1 %v2937_v56 }
 0x24c   :  { %1036 = vmatprep.mubr.f32.mxu0 %v2654_v3  ;;  %1107 = vmatprep.mubr.f32.mxu1 %v2654_v3 }
 0x24e   :  { %2148 = vmatpush1.bf16.msra.mxu0 %v2949_v60  ;;  %2180 = vmatpush1.bf16.msra.mxu1 %v2959_v63 }
 0x24f   :  { %2150 = vmatprep.subr.bf16.mxu0 %v2969_v2  ;;  %2182 = vmatprep.subr.bf16.mxu1 %v2978_v6 }
 0x252   :  { %2152 = vmatpush1.bf16.msra.mxu0 %v2990_v10  ;;  %2184 = vmatpush1.bf16.msra.mxu1 %v3000_v13 }
 0x253   :  { %2154 = vmatprep.subr.bf16.mxu0 %v3010_v16  ;;  %2186 = vmatprep.subr.bf16.mxu1 %v3019_v19 }
 0x256   :  { %2156 = vmatpush1.bf16.msra.mxu0 %v3031_v23  ;;  %2188 = vmatpush1.bf16.msra.mxu1 %v3041_v26 }
 0x257   :  { %2158 = vmatprep.subr.bf16.mxu0 %v3051_v29  ;;  %2190 = vmatprep.subr.bf16.mxu1 %v3060_v32 }
 0x25a   :  { %2160 = vmatpush1.bf16.msra.mxu0 %v3072_v36  ;;  %2192 = vmatpush1.bf16.msra.mxu1 %v3082_v40 }
 0x25b   :  { %2162 = vmatprep.subr.bf16.mxu0 %v3092_v44  ;;  %2194 = vmatprep.subr.bf16.mxu1 %v3101_v48 }
 0x25e   :  { %2164 = vmatpush1.bf16.msra.mxu0 %v3113_v54  ;;  %2196 = vmatpush1.bf16.msra.mxu1 %v3123_v58 }
 0x25f   :  { %2166 = vmatprep.subr.bf16.mxu0 %v3133_v62  ;;  %2198 = vmatprep.subr.bf16.mxu1 %v3142_v4 }
 0x262   :  { %2168 = vmatpush1.bf16.msra.mxu0 %v3154_v9  ;;  %2200 = vmatpush1.bf16.msra.mxu1 %v3164_v14 }
 0x263   :  { %2170 = vmatprep.subr.bf16.mxu0 %v3174_v18  ;;  %2202 = vmatprep.subr.bf16.mxu1 %v3183_v22 }
 0x266   :  { %2172 = vmatpush1.bf16.msra.mxu0 %v3189_v25  ;;  %2204 = vmatpush1.bf16.msra.mxu1 %v3193_v27 }
 0x267   :  { %2206 = vmatprep.subr.bf16.mxu0 %v2886_v38  ;;  %2238 = vmatprep.subr.bf16.mxu1 %v2894_v41 }
 0x31c   :  { %v862_v31 = vpop.f32.mrb[4].mxu0  ;;  %v933_v42 = vpop.f32.mrb[4].mxu1 }
 0x31d   :  { %v2465_v43 = vadd.f32 %v862_v31, %v3243_v35  ;;  %v864_v45 = vpop.f32.mrb[5].mxu0  ;;  %v935_v46 = vpop.f32.mrb[5].mxu1  ;;  %v2481_v61 = vadd.f32 %v933_v42, %v3252_v0 }
 0x31e   :  { %v2466_v49 = vadd.f32 %v864_v45, %v3245_v37  ;;  %v2482_v55 = vadd.f32 %v935_v46, %v3249_v57 }
 0x31f   :  { %v1861_v51 = vmul.f32 -1.442695, %v2465_v43 }
 0x320   :  { %v1862_v52 = vmul.f32 -1.442695, %v2466_v49  ;;  %v1863_v59 = vmul.f32 -1.442695, %v2482_v55 }
 0x321   :  { %2558 = vpow2.f32 %v1861_v51 }
 0x322   :  { %2560 = vpow2.f32 %v1862_v52 }
 0x323   :  { %2562 = vpow2.f32 %v1863_v59 }
 0x324   :  { %2564 = vtanh.f32 %v2481_v61 }
 0x32b   :  { %v2559_v1 = vpop.eup %2558 }
 0x32c   :  { %v2561_v5 = vpop.eup %2560  ;;  %v945_v7 = vadd.f32 1.0, %v2559_v1 }
 0x32d   :  { %v951_v8 = vadd.f32 1.0, %v2561_v5  ;;  %v2563_v11 = vpop.eup %2562 }
 0x32e   :  { %2566 = vrcp.f32 %v945_v7  ;;  %v2565_v12 = vpop.eup %2564  ;;  %v958_v21 = vadd.f32 1.0, %v2563_v11 }
 0x32f   :  { %2568 = vrcp.f32 %v951_v8 }
 0x330   :  { %2570 = vrcp.f32 %v958_v21 }
 0x338   :  { %v2567_v15 = vpop.eup %2566 }
 0x339   :  { %v2569_v17 = vpop.eup %2568  ;;  %v962_v20 = vmul.f32 %v2567_v15, %v2565_v12 }
 0x33a   :  { %v961_v24 = vmul.f32 %v2569_v17, %v3300_v30  ;;  %v2571_v33 = vpop.eup %2570 }
 0x33c   :  { %v3345_v28 = vadd.f32 %v962_v20, %v961_v24 }
 0x33e   :  { %2572 = vtanh.f32 %v3345_v28 }
 0x348   :  { %v2573_v34 = vpop.eup %2572 }
 0x349   :  { %v965_v39 = vmul.f32 %v2573_v34, %v2571_v33 }
 0x34b   :  { %1864 = vst [vmem:[%s3537_s4 + $0x10] sm:$0xff] %v965_v39  ;;  %1037 = vmatmul.mubr.f32.vlgmr.msra.gmra.mrb[6].mxu0 %v965_v39  ;;  %1108 = vmatmul.mubr.f32.vlgmr.msra.gmra.mrb[6].mxu1 %v965_v39 }
 0x34c   :  { %2208 = vmatpush1.bf16.msra.mxu0 %v2911_v47  ;;  %2240 = vmatpush1.bf16.msra.mxu1 %v2920_v50 }
 0x34d   :  { %2210 = vmatprep.subr.bf16.mxu0 %v2929_v53  ;;  %2242 = vmatprep.subr.bf16.mxu1 %v2937_v56 }
 0x34e   :  { %1212 = vmatprep.mubr.f32.mxu0 %v2654_v3  ;;  %1283 = vmatprep.mubr.f32.mxu1 %v2654_v3 }
 0x350   :  { %2212 = vmatpush1.bf16.msra.mxu0 %v2949_v60  ;;  %2244 = vmatpush1.bf16.msra.mxu1 %v2959_v63 }
 0x351   :  { %2214 = vmatprep.subr.bf16.mxu0 %v2969_v2  ;;  %2246 = vmatprep.subr.bf16.mxu1 %v2978_v6 }
 0x354   :  { %2216 = vmatpush1.bf16.msra.mxu0 %v2990_v10  ;;  %2248 = vmatpush1.bf16.msra.mxu1 %v3000_v13 }
 0x355   :  { %2218 = vmatprep.subr.bf16.mxu0 %v3010_v16  ;;  %2250 = vmatprep.subr.bf16.mxu1 %v3019_v19 }
 0x358   :  { %2220 = vmatpush1.bf16.msra.mxu0 %v3031_v23  ;;  %2252 = vmatpush1.bf16.msra.mxu1 %v3041_v26 }
 0x359   :  { %2222 = vmatprep.subr.bf16.mxu0 %v3051_v29  ;;  %2254 = vmatprep.subr.bf16.mxu1 %v3060_v32 }
 0x35c   :  { %2224 = vmatpush1.bf16.msra.mxu0 %v3072_v36  ;;  %2256 = vmatpush1.bf16.msra.mxu1 %v3082_v40 }
 0x35d   :  { %2226 = vmatprep.subr.bf16.mxu0 %v3092_v44  ;;  %2258 = vmatprep.subr.bf16.mxu1 %v3101_v48 }
 0x360   :  { %2228 = vmatpush1.bf16.msra.mxu0 %v3113_v54  ;;  %2260 = vmatpush1.bf16.msra.mxu1 %v3123_v58 }
 0x361   :  { %2230 = vmatprep.subr.bf16.mxu0 %v3133_v62  ;;  %2262 = vmatprep.subr.bf16.mxu1 %v3142_v4 }
 0x364   :  { %2232 = vmatpush1.bf16.msra.mxu0 %v3154_v9  ;;  %2264 = vmatpush1.bf16.msra.mxu1 %v3164_v14 }
 0x365   :  { %2234 = vmatprep.subr.bf16.mxu0 %v3174_v18  ;;  %2266 = vmatprep.subr.bf16.mxu1 %v3183_v22 }
 0x368   :  { %2236 = vmatpush1.bf16.msra.mxu0 %v3189_v25  ;;  %2268 = vmatpush1.bf16.msra.mxu1 %v3193_v27 }
 0x369   :  { %2270 = vmatprep.subr.bf16.mxu0 %v2886_v38  ;;  %2302 = vmatprep.subr.bf16.mxu1 %v2894_v41 }
 0x41e   :  { %v1038_v30 = vpop.f32.mrb[6].mxu0  ;;  %v1109_v31 = vpop.f32.mrb[6].mxu1 }
 0x41f   :  { %v2467_v42 = vadd.f32 %v1038_v30, %v3243_v35  ;;  %v1040_v43 = vpop.f32.mrb[7].mxu0  ;;  %v1111_v45 = vpop.f32.mrb[7].mxu1  ;;  %v2483_v59 = vadd.f32 %v1109_v31, %v3252_v0 }
 0x420   :  { %v2468_v46 = vadd.f32 %v1040_v43, %v3245_v37  ;;  %v2484_v52 = vadd.f32 %v1111_v45, %v3249_v57 }
 0x421   :  { %v1865_v49 = vmul.f32 -1.442695, %v2467_v42 }
 0x422   :  { %v1866_v51 = vmul.f32 -1.442695, %v2468_v46  ;;  %v1867_v55 = vmul.f32 -1.442695, %v2484_v52 }
 0x423   :  { %2574 = vpow2.f32 %v1865_v49 }
 0x424   :  { %2576 = vpow2.f32 %v1866_v51 }
 0x425   :  { %2578 = vpow2.f32 %v1867_v55 }
 0x426   :  { %2580 = vtanh.f32 %v2483_v59 }
 0x42d   :  { %v2575_v61 = vpop.eup %2574 }
 0x42e   :  { %v2577_v1 = vpop.eup %2576  ;;  %v1121_v5 = vadd.f32 1.0, %v2575_v61 }
 0x42f   :  { %v1127_v7 = vadd.f32 1.0, %v2577_v1  ;;  %v2579_v8 = vpop.eup %2578 }
 0x430   :  { %2582 = vrcp.f32 %v1121_v5  ;;  %v2581_v11 = vpop.eup %2580  ;;  %v1134_v20 = vadd.f32 1.0, %v2579_v8 }
 0x431   :  { %2584 = vrcp.f32 %v1127_v7 }
 0x432   :  { %2586 = vrcp.f32 %v1134_v20 }
 0x43a   :  { %v2583_v12 = vpop.eup %2582 }
 0x43b   :  { %v2585_v15 = vpop.eup %2584  ;;  %v1138_v17 = vmul.f32 %v2583_v12, %v2581_v11 }
 0x43c   :  { %v1137_v21 = vmul.f32 %v2585_v15, %v3345_v28  ;;  %v2587_v33 = vpop.eup %2586 }
 0x43e   :  { %v3390_v24 = vadd.f32 %v1138_v17, %v1137_v21 }
 0x440   :  { %2588 = vtanh.f32 %v3390_v24 }
 0x44a   :  { %v2589_v34 = vpop.eup %2588 }
 0x44b   :  { %v1141_v39 = vmul.f32 %v2589_v34, %v2587_v33 }
 0x44d   :  { %1868 = vst [vmem:[%s3537_s4 + $0x18] sm:$0xff] %v1141_v39  ;;  %1213 = vmatmul.mubr.f32.vlgmr.msra.gmra.mrb[8].mxu0 %v1141_v39  ;;  %1284 = vmatmul.mubr.f32.vlgmr.msra.gmra.mrb[8].mxu1 %v1141_v39 }
 0x44e   :  { %2272 = vmatpush1.bf16.msra.mxu0 %v2911_v47  ;;  %2304 = vmatpush1.bf16.msra.mxu1 %v2920_v50 }
 0x44f   :  { %2274 = vmatprep.subr.bf16.mxu0 %v2929_v53  ;;  %2306 = vmatprep.subr.bf16.mxu1 %v2937_v56 }
 0x450   :  { %1388 = vmatprep.mubr.f32.mxu0 %v2654_v3  ;;  %1459 = vmatprep.mubr.f32.mxu1 %v2654_v3 }
 0x452   :  { %2276 = vmatpush1.bf16.msra.mxu0 %v2949_v60  ;;  %2308 = vmatpush1.bf16.msra.mxu1 %v2959_v63 }
 0x453   :  { %2278 = vmatprep.subr.bf16.mxu0 %v2969_v2  ;;  %2310 = vmatprep.subr.bf16.mxu1 %v2978_v6 }
 0x456   :  { %2280 = vmatpush1.bf16.msra.mxu0 %v2990_v10  ;;  %2312 = vmatpush1.bf16.msra.mxu1 %v3000_v13 }
 0x457   :  { %2282 = vmatprep.subr.bf16.mxu0 %v3010_v16  ;;  %2314 = vmatprep.subr.bf16.mxu1 %v3019_v19 }
 0x45a   :  { %2284 = vmatpush1.bf16.msra.mxu0 %v3031_v23  ;;  %2316 = vmatpush1.bf16.msra.mxu1 %v3041_v26 }
 0x45b   :  { %2286 = vmatprep.subr.bf16.mxu0 %v3051_v29  ;;  %2318 = vmatprep.subr.bf16.mxu1 %v3060_v32 }
 0x45e   :  { %2288 = vmatpush1.bf16.msra.mxu0 %v3072_v36  ;;  %2320 = vmatpush1.bf16.msra.mxu1 %v3082_v40 }
 0x45f   :  { %2290 = vmatprep.subr.bf16.mxu0 %v3092_v44  ;;  %2322 = vmatprep.subr.bf16.mxu1 %v3101_v48 }
 0x462   :  { %2292 = vmatpush1.bf16.msra.mxu0 %v3113_v54  ;;  %2324 = vmatpush1.bf16.msra.mxu1 %v3123_v58 }
 0x463   :  { %2294 = vmatprep.subr.bf16.mxu0 %v3133_v62  ;;  %2326 = vmatprep.subr.bf16.mxu1 %v3142_v4 }
 0x466   :  { %2296 = vmatpush1.bf16.msra.mxu0 %v3154_v9  ;;  %2328 = vmatpush1.bf16.msra.mxu1 %v3164_v14 }
 0x467   :  { %2298 = vmatprep.subr.bf16.mxu0 %v3174_v18  ;;  %2330 = vmatprep.subr.bf16.mxu1 %v3183_v22 }
 0x46a   :  { %2300 = vmatpush1.bf16.msra.mxu0 %v3189_v25  ;;  %2332 = vmatpush1.bf16.msra.mxu1 %v3193_v27 }
 0x46b   :  { %2334 = vmatprep.subr.bf16.mxu0 %v2886_v38  ;;  %2366 = vmatprep.subr.bf16.mxu1 %v2894_v41 }
 0x520   :  { %v1214_v28 = vpop.f32.mrb[8].mxu0  ;;  %v1285_v30 = vpop.f32.mrb[8].mxu1 }
 0x521   :  { %v2469_v31 = vadd.f32 %v1214_v28, %v3243_v35  ;;  %v1216_v42 = vpop.f32.mrb[9].mxu0  ;;  %v1287_v43 = vpop.f32.mrb[9].mxu1  ;;  %v2485_v55 = vadd.f32 %v1285_v30, %v3252_v0 }
 0x522   :  { %v2470_v45 = vadd.f32 %v1216_v42, %v3245_v37  ;;  %v2486_v51 = vadd.f32 %v1287_v43, %v3249_v57 }
 0x523   :  { %v1869_v46 = vmul.f32 -1.442695, %v2469_v31 }
 0x524   :  { %v1870_v49 = vmul.f32 -1.442695, %v2470_v45  ;;  %v1871_v52 = vmul.f32 -1.442695, %v2486_v51 }
 0x525   :  { %2590 = vpow2.f32 %v1869_v46 }
 0x526   :  { %2592 = vpow2.f32 %v1870_v49 }
 0x527   :  { %2594 = vpow2.f32 %v1871_v52 }
 0x528   :  { %2596 = vtanh.f32 %v2485_v55 }
 0x52f   :  { %v2591_v59 = vpop.eup %2590 }
 0x530   :  { %v2593_v61 = vpop.eup %2592  ;;  %v1297_v1 = vadd.f32 1.0, %v2591_v59 }
 0x531   :  { %v1303_v5 = vadd.f32 1.0, %v2593_v61  ;;  %v2595_v7 = vpop.eup %2594 }
 0x532   :  { %2598 = vrcp.f32 %v1297_v1  ;;  %v2597_v8 = vpop.eup %2596  ;;  %v1310_v17 = vadd.f32 1.0, %v2595_v7 }
 0x533   :  { %2600 = vrcp.f32 %v1303_v5 }
 0x534   :  { %2602 = vrcp.f32 %v1310_v17 }
 0x53c   :  { %v2599_v11 = vpop.eup %2598 }
 0x53d   :  { %v2601_v12 = vpop.eup %2600  ;;  %v1314_v15 = vmul.f32 %v2599_v11, %v2597_v8 }
 0x53e   :  { %v1313_v20 = vmul.f32 %v2601_v12, %v3390_v24  ;;  %v2603_v33 = vpop.eup %2602 }
 0x540   :  { %v3435_v21 = vadd.f32 %v1314_v15, %v1313_v20 }
 0x542   :  { %2604 = vtanh.f32 %v3435_v21 }
 0x54c   :  { %v2605_v34 = vpop.eup %2604 }
 0x54d   :  { %v1317_v39 = vmul.f32 %v2605_v34, %v2603_v33 }
 0x54f   :  { %1872 = vst [vmem:[%s3537_s4 + $0x20] sm:$0xff] %v1317_v39  ;;  %1389 = vmatmul.mubr.f32.vlgmr.msra.gmra.mrb[10].mxu0 %v1317_v39  ;;  %1460 = vmatmul.mubr.f32.vlgmr.msra.gmra.mrb[10].mxu1 %v1317_v39 }
 0x550   :  { %2336 = vmatpush1.bf16.msra.mxu0 %v2911_v47  ;;  %2368 = vmatpush1.bf16.msra.mxu1 %v2920_v50 }
 0x551   :  { %2338 = vmatprep.subr.bf16.mxu0 %v2929_v53  ;;  %2370 = vmatprep.subr.bf16.mxu1 %v2937_v56 }
 0x552   :  { %1564 = vmatprep.mubr.f32.mxu0 %v2654_v3  ;;  %1635 = vmatprep.mubr.f32.mxu1 %v2654_v3 }
 0x554   :  { %2340 = vmatpush1.bf16.msra.mxu0 %v2949_v60  ;;  %2372 = vmatpush1.bf16.msra.mxu1 %v2959_v63 }
 0x555   :  { %2342 = vmatprep.subr.bf16.mxu0 %v2969_v2  ;;  %2374 = vmatprep.subr.bf16.mxu1 %v2978_v6 }
 0x558   :  { %2344 = vmatpush1.bf16.msra.mxu0 %v2990_v10  ;;  %2376 = vmatpush1.bf16.msra.mxu1 %v3000_v13 }
 0x559   :  { %2346 = vmatprep.subr.bf16.mxu0 %v3010_v16  ;;  %2378 = vmatprep.subr.bf16.mxu1 %v3019_v19 }
 0x55c   :  { %2348 = vmatpush1.bf16.msra.mxu0 %v3031_v23  ;;  %2380 = vmatpush1.bf16.msra.mxu1 %v3041_v26 }
 0x55d   :  { %2350 = vmatprep.subr.bf16.mxu0 %v3051_v29  ;;  %2382 = vmatprep.subr.bf16.mxu1 %v3060_v32 }
 0x560   :  { %2352 = vmatpush1.bf16.msra.mxu0 %v3072_v36  ;;  %2384 = vmatpush1.bf16.msra.mxu1 %v3082_v40 }
 0x561   :  { %2354 = vmatprep.subr.bf16.mxu0 %v3092_v44  ;;  %2386 = vmatprep.subr.bf16.mxu1 %v3101_v48 }
 0x564   :  { %2356 = vmatpush1.bf16.msra.mxu0 %v3113_v54  ;;  %2388 = vmatpush1.bf16.msra.mxu1 %v3123_v58 }
 0x565   :  { %2358 = vmatprep.subr.bf16.mxu0 %v3133_v62  ;;  %2390 = vmatprep.subr.bf16.mxu1 %v3142_v4 }
 0x568   :  { %2360 = vmatpush1.bf16.msra.mxu0 %v3154_v9  ;;  %2392 = vmatpush1.bf16.msra.mxu1 %v3164_v14 }
 0x569   :  { %2362 = vmatprep.subr.bf16.mxu0 %v3174_v18  ;;  %2394 = vmatprep.subr.bf16.mxu1 %v3183_v22 }
 0x56c   :  { %2364 = vmatpush1.bf16.msra.mxu0 %v3189_v25  ;;  %2396 = vmatpush1.bf16.msra.mxu1 %v3193_v27 }
 0x56d   :  { %2398 = vmatprep.subr.bf16.mxu0 %v2886_v38  ;;  %2430 = vmatprep.subr.bf16.mxu1 %v2894_v41 }
 0x622   :  { %v1390_v24 = vpop.f32.mrb[10].mxu0  ;;  %v1461_v28 = vpop.f32.mrb[10].mxu1 }
 0x623   :  { %v2471_v30 = vadd.f32 %v1390_v24, %v3243_v35  ;;  %v1392_v31 = vpop.f32.mrb[11].mxu0  ;;  %v1463_v42 = vpop.f32.mrb[11].mxu1  ;;  %v2487_v52 = vadd.f32 %v1461_v28, %v3252_v0 }
 0x624   :  { %v2472_v43 = vadd.f32 %v1392_v31, %v3245_v37  ;;  %v2488_v49 = vadd.f32 %v1463_v42, %v3249_v57 }
 0x625   :  { %v1873_v45 = vmul.f32 -1.442695, %v2471_v30 }
 0x626   :  { %v1874_v46 = vmul.f32 -1.442695, %v2472_v43  ;;  %v1875_v51 = vmul.f32 -1.442695, %v2488_v49 }
 0x627   :  { %2606 = vpow2.f32 %v1873_v45 }
 0x628   :  { %2608 = vpow2.f32 %v1874_v46 }
 0x629   :  { %2610 = vpow2.f32 %v1875_v51 }
 0x62a   :  { %2612 = vtanh.f32 %v2487_v52 }
 0x631   :  { %v2607_v38 = vpop.eup %2606 }
 0x632   :  { %v2609_v55 = vpop.eup %2608  ;;  %v1473_v41 = vadd.f32 1.0, %v2607_v38 }
 0x633   :  { %v1479_v59 = vadd.f32 1.0, %v2609_v55  ;;  %v2611_v61 = vpop.eup %2610 }
 0x634   :  { %2614 = vrcp.f32 %v1473_v41  ;;  %v2613_v1 = vpop.eup %2612  ;;  %v1486_v11 = vadd.f32 1.0, %v2611_v61 }
 0x635   :  { %2616 = vrcp.f32 %v1479_v59 }
 0x636   :  { %2618 = vrcp.f32 %v1486_v11 }
 0x63e   :  { %v2615_v5 = vpop.eup %2614 }
 0x63f   :  { %v2617_v7 = vpop.eup %2616  ;;  %v1490_v8 = vmul.f32 %v2615_v5, %v2613_v1 }
 0x640   :  { %v1489_v12 = vmul.f32 %v2617_v7, %v3435_v21  ;;  %v2619_v17 = vpop.eup %2618 }
 0x642   :  { %v3480_v15 = vadd.f32 %v1490_v8, %v1489_v12 }
 0x644   :  { %2620 = vtanh.f32 %v3480_v15 }
 0x64e   :  { %v2621_v20 = vpop.eup %2620 }
 0x64f   :  { %v1493_v33 = vmul.f32 %v2621_v20, %v2619_v17 }
 0x651   :  { %1876 = vst [vmem:[%s3537_s4 + $0x28] sm:$0xff] %v1493_v33  ;;  %1565 = vmatmul.mubr.f32.vlgmr.msra.gmra.mrb[12].mxu0 %v1493_v33  ;;  %1636 = vmatmul.mubr.f32.vlgmr.msra.gmra.mrb[12].mxu1 %v1493_v33 }
 0x652   :  { %2400 = vmatpush1.bf16.msra.mxu0 %v2911_v47  ;;  %2432 = vmatpush1.bf16.msra.mxu1 %v2920_v50 }
 0x653   :  { %2402 = vmatprep.subr.bf16.mxu0 %v2929_v53  ;;  %2434 = vmatprep.subr.bf16.mxu1 %v2937_v56 }
 0x654   :  { %1740 = vmatprep.mubr.f32.mxu0 %v2654_v3  ;;  %1811 = vmatprep.mubr.f32.mxu1 %v2654_v3 }
 0x656   :  { %2404 = vmatpush1.bf16.msra.mxu0 %v2949_v60  ;;  %2436 = vmatpush1.bf16.msra.mxu1 %v2959_v63 }
 0x657   :  { %2406 = vmatprep.subr.bf16.mxu0 %v2969_v2  ;;  %2438 = vmatprep.subr.bf16.mxu1 %v2978_v6 }
 0x65a   :  { %2408 = vmatpush1.bf16.msra.mxu0 %v2990_v10  ;;  %2440 = vmatpush1.bf16.msra.mxu1 %v3000_v13 }
 0x65b   :  { %2410 = vmatprep.subr.bf16.mxu0 %v3010_v16  ;;  %2442 = vmatprep.subr.bf16.mxu1 %v3019_v19 }
 0x65e   :  { %2412 = vmatpush1.bf16.msra.mxu0 %v3031_v23  ;;  %2444 = vmatpush1.bf16.msra.mxu1 %v3041_v26 }
 0x65f   :  { %2414 = vmatprep.subr.bf16.mxu0 %v3051_v29  ;;  %2446 = vmatprep.subr.bf16.mxu1 %v3060_v32 }
 0x662   :  { %2416 = vmatpush1.bf16.msra.mxu0 %v3072_v36  ;;  %2448 = vmatpush1.bf16.msra.mxu1 %v3082_v40 }
 0x663   :  { %2418 = vmatprep.subr.bf16.mxu0 %v3092_v44  ;;  %2450 = vmatprep.subr.bf16.mxu1 %v3101_v48 }
 0x666   :  { %2420 = vmatpush1.bf16.msra.mxu0 %v3113_v54  ;;  %2452 = vmatpush1.bf16.msra.mxu1 %v3123_v58 }
 0x667   :  { %2422 = vmatprep.subr.bf16.mxu0 %v3133_v62  ;;  %2454 = vmatprep.subr.bf16.mxu1 %v3142_v4 }
 0x66a   :  { %2424 = vmatpush1.bf16.msra.mxu0 %v3154_v9  ;;  %2456 = vmatpush1.bf16.msra.mxu1 %v3164_v14 }
 0x66b   :  { %2426 = vmatprep.subr.bf16.mxu0 %v3174_v18  ;;  %2458 = vmatprep.subr.bf16.mxu1 %v3183_v22 }
 0x66e   :  { %2428 = vmatpush1.bf16.msra.mxu0 %v3189_v25  ;;  %2460 = vmatpush1.bf16.msra.mxu1 %v3193_v27 }
 0x724   :  { %v1566_v3 = vpop.f32.mrb[12].mxu0  ;;  %v1637_v47 = vpop.f32.mrb[12].mxu1 }
 0x725   :  { %v2473_v50 = vadd.f32 %v1566_v3, %v3243_v35  ;;  %v1568_v53 = vpop.f32.mrb[13].mxu0  ;;  %v1639_v56 = vpop.f32.mrb[13].mxu1  ;;  %v2489_v13 = vadd.f32 %v1637_v47, %v3252_v0 }
 0x726   :  { %v2474_v60 = vadd.f32 %v1568_v53, %v3245_v37  ;;  %v2490_v6 = vadd.f32 %v1639_v56, %v3249_v57 }
 0x727   :  { %v1877_v63 = vmul.f32 -1.442695, %v2473_v50 }
 0x728   :  { %v1878_v2 = vmul.f32 -1.442695, %v2474_v60  ;;  %v1879_v10 = vmul.f32 -1.442695, %v2490_v6 }
 0x729   :  { %2622 = vpow2.f32 %v1877_v63 }
 0x72a   :  { %2624 = vpow2.f32 %v1878_v2 }
 0x72b   :  { %2626 = vpow2.f32 %v1879_v10 }
 0x72c   :  { %2628 = vtanh.f32 %v2489_v13 }
 0x733   :  { %v2623_v16 = vpop.eup %2622 }
 0x734   :  { %v2625_v19 = vpop.eup %2624  ;;  %v1649_v23 = vadd.f32 1.0, %v2623_v16 }
 0x735   :  { %v1655_v26 = vadd.f32 1.0, %v2625_v19  ;;  %v2627_v29 = vpop.eup %2626 }
 0x736   :  { %2630 = vrcp.f32 %v1649_v23  ;;  %v2629_v32 = vpop.eup %2628  ;;  %v1662_v48 = vadd.f32 1.0, %v2627_v29 }
 0x737   :  { %2632 = vrcp.f32 %v1655_v26 }
 0x738   :  { %2634 = vrcp.f32 %v1662_v48 }
 0x740   :  { %v2631_v36 = vpop.eup %2630 }
 0x741   :  { %v2633_v40 = vpop.eup %2632  ;;  %v1666_v44 = vmul.f32 %v2631_v36, %v2629_v32 }
 0x742   :  { %v1665_v54 = vmul.f32 %v2633_v40, %v3480_v15  ;;  %v2635_v62 = vpop.eup %2634 }
 0x744   :  { %v1667_v58 = vadd.f32 %v1666_v44, %v1665_v54 }
 0x746   :  { %2636 = vtanh.f32 %v1667_v58 }
 0x750   :  { %v2637_v4 = vpop.eup %2636 }
 0x751   :  { %v1669_v9 = vmul.f32 %v2637_v4, %v2635_v62 }
 0x753   :  { %1880 = vst [vmem:[%s3537_s4 + $0x30] sm:$0xff] %v1669_v9  ;;  %1741 = vmatmul.mubr.f32.vlgmr.msra.gmra.mrb[14].mxu0 %v1669_v9  ;;  %1812 = vmatmul.mubr.f32.vlgmr.msra.gmra.mrb[14].mxu1 %v1669_v9 }
 0x826   :  { %v1742_v14 = vpop.f32.mrb[14].mxu0  ;;  %v1813_v18 = vpop.f32.mrb[14].mxu1 }
 0x827   :  { %v2475_v22 = vadd.f32 %v1742_v14, %v3243_v35  ;;  %v1744_v25 = vpop.f32.mrb[15].mxu0  ;;  %v1815_v27 = vpop.f32.mrb[15].mxu1  ;;  %v2491_v30 = vadd.f32 %v1813_v18, %v3252_v0 }
 0x828   :  { %v2476_v21 = vadd.f32 %v1744_v25, %v3245_v37  ;;  %v2492_v24 = vadd.f32 %v1815_v27, %v3249_v57 }
 0x829   :  { %v1881_v34 = vmul.f32 -1.442695, %v2475_v22 }
 0x82a   :  { %v1882_v39 = vmul.f32 -1.442695, %v2476_v21  ;;  %v1883_v28 = vmul.f32 -1.442695, %v2492_v24 }
 0x82b   :  { %2638 = vpow2.f32 %v1881_v34 }
 0x82c   :  { %2640 = vpow2.f32 %v1882_v39 }
 0x82d   :  { %2642 = vpow2.f32 %v1883_v28 }
 0x82e   :  { %2644 = vtanh.f32 %v2491_v30 }
 0x835   :  { %v2639_v31 = vpop.eup %2638 }
 0x836   :  { %v2641_v42 = vpop.eup %2640  ;;  %v1825_v43 = vadd.f32 1.0, %v2639_v31 }
 0x837   :  { %v1831_v45 = vadd.f32 1.0, %v2641_v42  ;;  %v2643_v35 = vpop.eup %2642 }
 0x838   :  { %2646 = vrcp.f32 %v1825_v43  ;;  %v2645_v46 = vpop.eup %2644  ;;  %v1838_v52 = vadd.f32 1.0, %v2643_v35 }
 0x839   :  { %2648 = vrcp.f32 %v1831_v45 }
 0x83a   :  { %2650 = vrcp.f32 %v1838_v52 }
 0x842   :  { %v2647_v37 = vpop.eup %2646 }
 0x843   :  { %v2649_v49 = vpop.eup %2648  ;;  %v1842_v51 = vmul.f32 %v2647_v37, %v2645_v46 }
 0x844   :  { %v1841_v38 = vmul.f32 %v2649_v49, %v1667_v58  ;;  %v2651_v57 = vpop.eup %2650 }
 0x846   :  { %v1843_v55 = vadd.f32 %v1842_v51, %v1841_v38 }
 0x848   :  { %2652 = vtanh.f32 %v1843_v55 }
 0x852   :  { %v2653_v0 = vpop.eup %2652 }
 0x853   :  { %v1845_v41 = vmul.f32 %v2653_v0, %v2651_v57 }
 0x855   :  { %1884 = vst [vmem:[%s3537_s4 + $0x38] sm:$0xff] %v1845_v41 }

</bundles_post_ra>
